<compile_context>
chip_gen: v7x
topology: tpu7x:2x2x1
jax: 0.10.0
libtpu: 0.0.40
codegen_flags: <defaults>
</compile_context>

<pallas_src>
import functools
import math

import jax
import jax.numpy as jnp
from jax import lax
from jax.experimental import pallas as pl
from jax.experimental.pallas import tpu as pltpu

_LN_EPS = 1e-5                 # torch.nn.LayerNorm default
_MXU_DTYPE = jnp.bfloat16      # MXU input dtype; accumulation stays float32
_LANE = 128                    # TPU lane width
_SUBLANE = 8                   # f32 sublane width


def _round_up(x, m):
    return (x + m - 1) // m * m


def _masked_layernorm(y, gamma, beta, n_real, mask):
    """LayerNorm over the last dim ignoring zero-padded lanes.

    Requires padded columns of `y` to be exactly zero and gamma/beta to be
    zero on padded columns (so padded outputs stay zero)."""
    mean = jnp.sum(y, axis=-1, keepdims=True) / n_real
    diff = (y - mean) * mask
    var = jnp.sum(diff * diff, axis=-1, keepdims=True) / n_real
    return diff * lax.rsqrt(var + _LN_EPS) * gamma + beta


def _dense_forward(y, dense_refs, num_dense, hidden, mask):
    """[Linear -> ReLU -> LayerNorm] * num_dense on a 2-D (rows, feat) slab."""
    for l in range(num_dense):
        w_ref, b_ref, g_ref, beta_ref = dense_refs[4 * l:4 * l + 4]
        y = jnp.dot(y.astype(_MXU_DTYPE), w_ref[...],
                    preferred_element_type=jnp.float32) + b_ref[...]
        y = jnp.maximum(y, 0.0)                                  # ReLU
        y = _masked_layernorm(y, g_ref[...], beta_ref[...], hidden, mask)
    return y


# ---------------------------------------------------------------------------
# Fused kernel: dense stack + multi-layer AutoReset GRU + output LayerNorm
# ---------------------------------------------------------------------------
def backbone_kernel(*refs, num_dense, num_rnn, seq_len, batch_tile,
                    hidden, hidden_pad):
    obs_ref, keep_ref, h0_ref = refs[0:3]
    dense_refs = refs[3:3 + 4 * num_dense]
    (wih_ref, whh_ref, bih_ref, bhn_ref, g_ref, beta_ref,
     feat_ref, hout_ref, gx_scr) = refs[3 + 4 * num_dense:]

    f32 = jnp.float32
    rows = seq_len * batch_tile
    # Lane mask for the real hidden columns (computed once, hoisted).
    mask = (lax.broadcasted_iota(jnp.int32, (1, hidden_pad), 1)
            < hidden).astype(f32)

    # ---- fused dense stack (one MXU GEMM per layer, no HBM round-trip) ----
    obs = obs_ref[...].astype(f32)
    y = _dense_forward(obs.reshape(rows, obs.shape[-1]),
                       dense_refs, num_dense, hidden, mask)

    # ---- multi-layer auto-reset GRU, layer-major ---------------------------
    for layer in range(num_rnn):
        if layer == 0:
            seq_in = y
        else:
            seq_in = feat_ref[...].astype(f32).reshape(rows, hidden_pad)

        # Input projection for ALL timesteps: one big MXU GEMM per layer,
        # hoisted out of the serial recurrence.  Gate columns r | z | n are
        # each 128-aligned so the per-step slices below are free views.
        gx_scr[...] = (jnp.dot(seq_in.astype(_MXU_DTYPE), wih_ref[layer],
                               preferred_element_type=f32)
                       + bih_ref[layer]
                       ).reshape(seq_len, batch_tile, 3 * hidden_pad)

        whh = whh_ref[layer]                         # (H_pad, 3H_pad), resident
        bhn = bhn_ref[layer]                         # (1, H_pad)

        def step(t, h, whh=whh, bhn=bhn):
            keep = keep_ref[t]                       # (B_tile, 1)
            h_prev = h * keep                        # auto-reset
            gx = gx_scr[t]                           # (B_tile, 3H_pad)
            gh = jnp.dot(h_prev.astype(_MXU_DTYPE), whh,
                         preferred_element_type=f32)
            # PyTorch GRU gate ordering: r, z, n  (b_hh(r,z) folded into gx)
            r = jax.nn.sigmoid(gx[:, :hidden_pad] + gh[:, :hidden_pad])
            z = jax.nn.sigmoid(gx[:, hidden_pad:2 * hidden_pad]
                               + gh[:, hidden_pad:2 * hidden_pad])
            n = jnp.tanh(gx[:, 2 * hidden_pad:]
                         + r * (gh[:, 2 * hidden_pad:] + bhn))
            h_new = (1.0 - z) * n + z * h_prev
            feat_ref[t] = h_new                      # raw (pre-norm) output
            return h_new

        h_final = lax.fori_loop(0, seq_len, step,
                                h0_ref[layer].astype(f32),
                                unroll=seq_len if seq_len <= 32 else 8)
        hout_ref[layer] = h_final                    # written once per layer

    # Output LayerNorm hoisted out of the serial recurrence: one lane-parallel
    # pass over the whole (T, B_tile, H_pad) block.
    feat_ref[...] = _masked_layernorm(feat_ref[...], g_ref[...], beta_ref[...],
                                      hidden, mask)


# ---------------------------------------------------------------------------
# Dense-only kernel (num_rnn_layers == 0 path)
# ---------------------------------------------------------------------------
def dense_only_kernel(*refs, num_dense, seq_len, batch_tile, hidden,
                      hidden_pad):
    obs_ref = refs[0]
    dense_refs = refs[1:1 + 4 * num_dense]
    feat_ref = refs[-1]
    rows = seq_len * batch_tile
    mask = (lax.broadcasted_iota(jnp.int32, (1, hidden_pad), 1)
            < hidden).astype(jnp.float32)
    obs = obs_ref[...].astype(jnp.float32)
    y = _dense_forward(obs.reshape(rows, obs.shape[-1]),
                       dense_refs, num_dense, hidden, mask)
    feat_ref[...] = y.reshape(seq_len, batch_tile, hidden_pad)


def _vmem_limit_bytes(seq_len, batch_tile, obs_pad, hidden_pad, num_rnn, fc):
    f32 = 4
    wb = jnp.dtype(_MXU_DTYPE).itemsize
    blocks = seq_len * batch_tile * obs_pad * f32                 # obs
    blocks += seq_len * batch_tile * _LANE * f32                  # keep (lane-padded)
    blocks += 2 * num_rnn * batch_tile * hidden_pad * f32         # h0 + h_out
    blocks += seq_len * batch_tile * hidden_pad * f32             # feats out
    weights = sum(w.size * wb + 3 * w.shape[1] * f32 for w, _, _, _ in fc)
    weights += num_rnn * (2 * hidden_pad * 3 * hidden_pad * wb
                          + 4 * hidden_pad * f32) + 2 * hidden_pad * f32
    scratch = seq_len * batch_tile * 3 * hidden_pad * f32         # gx
    est = 2 * (blocks + weights) + scratch                        # double buffers
    return int(min(max(4 * est, 8 << 20), 64 << 20))              # + temp margin


# ---------------------------------------------------------------------------
# Parameter construction (matches module __init__ shapes/init), device layout
# ---------------------------------------------------------------------------
def init_params(key, obs_dim, hidden_dim, dense_layers, num_rnn_layers,
                dense_layer_gain=math.sqrt(2)):
    """Parameters in TPU device layout:
       * all feature dims padded to multiples of 128 (lane-dense),
       * weights transposed to (in, out), stored in _MXU_DTYPE,
       * GRU gate weights fused as (H_pad, 3*H_pad) with 128-aligned r|z|n,
       * b_hh(r,z) folded into the fused input bias; b_hn kept separate
         (torch: n = tanh(W_in x + b_in + r*(W_hn h + b_hn)))."""
    H = hidden_dim
    H_pad = _round_up(H, _LANE)
    obs_pad = _round_up(obs_dim, _LANE)
    ortho = jax.nn.initializers.orthogonal
    k_fc, k_rnn = jax.random.split(key)

    sizes = [obs_dim] + [H] * dense_layers
    pads = [obs_pad] + [H_pad] * dense_layers
    fc = []
    if dense_layers:
        fc_keys = jax.random.split(k_fc, dense_layers)
        for i in range(dense_layers):
            # torch stores (out, in); transpose to (in, out) for x @ w
            w = ortho(scale=dense_layer_gain)(
                fc_keys[i], (sizes[i + 1], sizes[i]), jnp.float32).T
            w_pad = jnp.zeros((pads[i], pads[i + 1]), jnp.float32
                              ).at[:sizes[i], :sizes[i + 1]].set(w)
            b = jnp.zeros((1, pads[i + 1]), jnp.float32)
            g = jnp.zeros((1, pads[i + 1]), jnp.float32
                          ).at[:, :sizes[i + 1]].set(1.0)
            beta = jnp.zeros((1, pads[i + 1]), jnp.float32)
            fc.append((w_pad.astype(_MXU_DTYPE), b, g, beta))

    params = {"fc": fc, "num_rnn_layers": num_rnn_layers, "hidden_dim": H}

    if num_rnn_layers:
        rnn_keys = jax.random.split(k_rnn, 2 * num_rnn_layers)
        w_ih_l, w_hh_l = [], []
        for l in range(num_rnn_layers):
            wih = ortho()(rnn_keys[2 * l], (3 * H, H), jnp.float32)
            whh = ortho()(rnn_keys[2 * l + 1], (3 * H, H), jnp.float32)
            wih_p = jnp.zeros((H_pad, 3 * H_pad), jnp.float32)
            whh_p = jnp.zeros((H_pad, 3 * H_pad), jnp.float32)
            for gate in range(3):              # r | z | n, 128-aligned blocks
                wih_p = wih_p.at[:H, gate * H_pad:gate * H_pad + H].set(
                    wih[gate * H:(gate + 1) * H, :].T)
                whh_p = whh_p.at[:H, gate * H_pad:gate * H_pad + H].set(
                    whh[gate * H:(gate + 1) * H, :].T)
            w_ih_l.append(wih_p.astype(_MXU_DTYPE))
            w_hh_l.append(whh_p.astype(_MXU_DTYPE))
        params["gru"] = (
            jnp.stack(w_ih_l),                                    # (L, H_pad, 3H_pad)
            jnp.stack(w_hh_l),                                    # (L, H_pad, 3H_pad)
            jnp.zeros((num_rnn_layers, 1, 3 * H_pad), jnp.float32),  # b_i* + b_h{r,z}
            jnp.zeros((num_rnn_layers, 1, H_pad), jnp.float32),      # b_hn
        )
        params["rnn_norm"] = (
            jnp.zeros((1, H_pad), jnp.float32).at[:, :H].set(1.0),
            jnp.zeros((1, H_pad), jnp.float32),
        )
    return params


# ---------------------------------------------------------------------------
# Forward wrapper
# ---------------------------------------------------------------------------
def recurrent_backbone_forward(params, obs, hx, on_reset=None):
    """obs: (T, B, obs_dim), hx: (L, B, H), on_reset: (T, B, 1) or None."""
    T, B, obs_dim = obs.shape
    L = int(params["num_rnn_layers"])
    H = int(params["hidden_dim"])
    fc = params["fc"]
    num_dense = len(fc)

    if num_dense == 0 and L == 0:
        return obs, hx
    if num_dense == 0 and L > 0:
        assert obs_dim == H, ("AutoResetRNN input width must equal hidden_dim "
                              "when dense_layers == 0")

    H_pad = _round_up(H, _LANE)
    obs_pad = _round_up(obs_dim, _LANE)
    B_pad = _round_up(B, _SUBLANE)
    B_tile = min(B_pad, 128)                 # batch-tile grid axis ("parallel")
    B_pad = _round_up(B_pad, B_tile)
    grid = (B_pad // B_tile,)

    f32 = jnp.float32
    obs_p = jnp.pad(obs.astype(f32),
                    ((0, 0), (0, B_pad - B), (0, obs_pad - obs_dim)))

    dense_args, dense_specs = [], []
    for (w, b, g, beta) in fc:
        din_p, dout_p = w.shape
        dense_args += [w, b, g, beta]
        dense_specs += [
            pl.BlockSpec((din_p, dout_p), lambda i: (0, 0)),
            pl.BlockSpec((1, dout_p), lambda i: (0, 0)),
            pl.BlockSpec((1, dout_p), lambda i: (0, 0)),
            pl.BlockSpec((1, dout_p), lambda i: (0, 0)),
        ]

    vmem_bytes = _vmem_limit_bytes(T, B_tile, obs_pad, H_pad, L, fc)

    if L == 0:
        kernel = functools.partial(dense_only_kernel, num_dense=num_dense,
                                   seq_len=T, batch_tile=B_tile, hidden=H,
                                   hidden_pad=H_pad)
        feats = pl.pallas_call(
            kernel,
            out_shape=jax.ShapeDtypeStruct((T, B_pad, H_pad), f32),
            grid_spec=pltpu.PrefetchScalarGridSpec(
                num_scalar_prefetch=0, grid=grid,
                in_specs=[pl.BlockSpec((T, B_tile, obs_pad),
                                       lambda b: (0, b, 0))] + dense_specs,
                out_specs=pl.BlockSpec((T, B_tile, H_pad),
                                       lambda b: (0, b, 0))),
            compiler_params=pltpu.CompilerParams(
                dimension_semantics=("parallel",),
                vmem_limit_bytes=vmem_bytes),
        )(obs_p, *dense_args)
        return feats[:, :B, :H], hx

    # keep = 1 - on_reset, seq-major (T, B, 1); padded batch rows keep=1.
    # Note: the (B_tile, 1) trailing dims lane-pad in VMEM, but HBM stays
    # compact and the per-step load is a direct (B,1) view (no transposes).
    if on_reset is None:
        keep = jnp.ones((T, B_pad, 1), f32)
    else:
        keep = jnp.pad(1.0 - on_reset.astype(f32),
                       ((0, 0), (0, B_pad - B), (0, 0)), constant_values=1.0)
    hx_p = jnp.pad(hx.astype(f32), ((0, 0), (0, B_pad - B), (0, H_pad - H)))

    w_ih, w_hh, b_ih, b_hn = params["gru"]
    ln_g, ln_b = params["rnn_norm"]

    kernel = functools.partial(backbone_kernel, num_dense=num_dense, num_rnn=L,
                               seq_len=T, batch_tile=B_tile, hidden=H,
                               hidden_pad=H_pad)

    in_specs = ([pl.BlockSpec((T, B_tile, obs_pad), lambda b: (0, b, 0)),   # obs
                 pl.BlockSpec((T, B_tile, 1), lambda b: (0, b, 0)),         # keep
                 pl.BlockSpec((L, B_tile, H_pad), lambda b: (0, b, 0))]     # h0
                + dense_specs
                + [pl.BlockSpec((L, H_pad, 3 * H_pad), lambda b: (0, 0, 0)),  # W_ih
                   pl.BlockSpec((L, H_pad, 3 * H_pad), lambda b: (0, 0, 0)),  # W_hh
                   pl.BlockSpec((L, 1, 3 * H_pad), lambda b: (0, 0, 0)),      # b_ih
                   pl.BlockSpec((L, 1, H_pad), lambda b: (0, 0, 0)),          # b_hn
                   pl.BlockSpec((1, H_pad), lambda b: (0, 0)),                # ln g
                   pl.BlockSpec((1, H_pad), lambda b: (0, 0))])               # ln b
    out_specs = (pl.BlockSpec((T, B_tile, H_pad), lambda b: (0, b, 0)),
                 pl.BlockSpec((L, B_tile, H_pad), lambda b: (0, b, 0)))

    feats, h_out = pl.pallas_call(
        kernel,
        out_shape=(jax.ShapeDtypeStruct((T, B_pad, H_pad), f32),
                   jax.ShapeDtypeStruct((L, B_pad, H_pad), f32)),
        grid_spec=pltpu.PrefetchScalarGridSpec(
            num_scalar_prefetch=0, grid=grid,
            in_specs=in_specs, out_specs=out_specs,
            scratch_shapes=[pltpu.VMEM((T, B_tile, 3 * H_pad), f32)]),
        compiler_params=pltpu.CompilerParams(
            dimension_semantics=("parallel",),
            vmem_limit_bytes=vmem_bytes),
    )(obs_p, keep, hx_p, *dense_args, w_ih, w_hh, b_ih, b_hn, ln_g, ln_b)

    return feats[:, :B, :H], h_out[:, :B, :H]


if __name__ == "__main__":
    T, B = 8, 4                  # seq length, batch
    OBS_DIM = 24
    HIDDEN = 32
    DENSE_LAYERS = 2
    NUM_RNN_LAYERS = 2

    root = jax.random.PRNGKey(0)
    k_param, k_obs, k_hx, k_reset = jax.random.split(root, 4)

    params = init_params(k_param, OBS_DIM, HIDDEN, DENSE_LAYERS,
                         NUM_RNN_LAYERS)

    obs = jax.random.normal(k_obs, (T, B, OBS_DIM), jnp.float32)
    hx = 0.1 * jax.random.normal(k_hx, (NUM_RNN_LAYERS, B, HIDDEN),
                                 jnp.float32)
    on_reset = (jax.random.uniform(k_reset, (T, B, 1)) < 0.2
                ).astype(jnp.float32)

    feats, h_out = recurrent_backbone_forward(params, obs, hx, on_reset)
    jax.block_until_ready((feats, h_out))
    assert feats.shape == (T, B, HIDDEN)
    assert h_out.shape == (NUM_RNN_LAYERS, B, HIDDEN)
    assert bool(jnp.all(jnp.isfinite(feats)))
    assert bool(jnp.all(jnp.isfinite(h_out)))
    print("KERNEL_OK")
</pallas_src>

<mosaic_0001>
module attributes {stable_mosaic.version = 11 : i64} {
  func.func @backbone_kernel(%arg0: i32, %arg1: memref<8x8x128xf32, #tpu.memory_space<vmem>>, %arg2: memref<8x8x1xf32, #tpu.memory_space<vmem>>, %arg3: memref<2x8x128xf32, #tpu.memory_space<vmem>>, %arg4: memref<128x128xbf16, #tpu.memory_space<vmem>>, %arg5: memref<1x128xf32, #tpu.memory_space<vmem>>, %arg6: memref<1x128xf32, #tpu.memory_space<vmem>>, %arg7: memref<1x128xf32, #tpu.memory_space<vmem>>, %arg8: memref<128x128xbf16, #tpu.memory_space<vmem>>, %arg9: memref<1x128xf32, #tpu.memory_space<vmem>>, %arg10: memref<1x128xf32, #tpu.memory_space<vmem>>, %arg11: memref<1x128xf32, #tpu.memory_space<vmem>>, %arg12: memref<2x128x384xbf16, #tpu.memory_space<vmem>>, %arg13: memref<2x128x384xbf16, #tpu.memory_space<vmem>>, %arg14: memref<2x1x384xf32, #tpu.memory_space<vmem>>, %arg15: memref<2x1x128xf32, #tpu.memory_space<vmem>>, %arg16: memref<1x128xf32, #tpu.memory_space<vmem>>, %arg17: memref<1x128xf32, #tpu.memory_space<vmem>>, %arg18: memref<8x8x128xf32, #tpu.memory_space<vmem>>, %arg19: memref<2x8x128xf32, #tpu.memory_space<vmem>>, %arg20: memref<8x8x384xf32, #tpu.memory_space<vmem>>) attributes {dimension_semantics = [#tpu.dimension_semantics<parallel>], iteration_bounds = array<i64: 1>, scalar_prefetch = 0 : i64, scratch_operands = 1 : i64, tpu.core_type = #tpu.core_type<tc>, window_params = [{transform_indices = @transform_0, window_bounds = array<i64: 8, 8, 128>}, {transform_indices = @transform_1, window_bounds = array<i64: 8, 8, 1>}, {transform_indices = @transform_2, window_bounds = array<i64: 2, 8, 128>}, {pipeline_mode = #tpu.pipeline_mode<synchronous>, transform_indices = @transform_3, window_bounds = array<i64: 128, 128>}, {pipeline_mode = #tpu.pipeline_mode<synchronous>, transform_indices = @transform_4, window_bounds = array<i64: 1, 128>}, {pipeline_mode = #tpu.pipeline_mode<synchronous>, transform_indices = @transform_5, window_bounds = array<i64: 1, 128>}, {pipeline_mode = #tpu.pipeline_mode<synchronous>, transform_indices = @transform_6, window_bounds = array<i64: 1, 128>}, {pipeline_mode = #tpu.pipeline_mode<synchronous>, transform_indices = @transform_7, window_bounds = array<i64: 128, 128>}, {pipeline_mode = #tpu.pipeline_mode<synchronous>, transform_indices = @transform_8, window_bounds = array<i64: 1, 128>}, {pipeline_mode = #tpu.pipeline_mode<synchronous>, transform_indices = @transform_9, window_bounds = array<i64: 1, 128>}, {pipeline_mode = #tpu.pipeline_mode<synchronous>, transform_indices = @transform_10, window_bounds = array<i64: 1, 128>}, {pipeline_mode = #tpu.pipeline_mode<synchronous>, transform_indices = @transform_11, window_bounds = array<i64: 2, 128, 384>}, {pipeline_mode = #tpu.pipeline_mode<synchronous>, transform_indices = @transform_12, window_bounds = array<i64: 2, 128, 384>}, {pipeline_mode = #tpu.pipeline_mode<synchronous>, transform_indices = @transform_13, window_bounds = array<i64: 2, 1, 384>}, {pipeline_mode = #tpu.pipeline_mode<synchronous>, transform_indices = @transform_14, window_bounds = array<i64: 2, 1, 128>}, {pipeline_mode = #tpu.pipeline_mode<synchronous>, transform_indices = @transform_15, window_bounds = array<i64: 1, 128>}, {pipeline_mode = #tpu.pipeline_mode<synchronous>, transform_indices = @transform_16, window_bounds = array<i64: 1, 128>}, {transform_indices = @transform_17, window_bounds = array<i64: 8, 8, 128>}, {transform_indices = @transform_18, window_bounds = array<i64: 2, 8, 128>}]} {
    %0 = tpu.iota {dimensions = array<i32: 1>} : vector<1x128xi32>
    %c32_i32 = arith.constant 32 : i32
    %1 = vector.broadcast %c32_i32 : i32 to vector<1x128xi32>
    %2 = arith.cmpi slt, %0, %1 : vector<1x128xi32>
    %3 = arith.extui %2 : vector<1x128xi1> to vector<1x128xi32>
    %4 = arith.sitofp %3 : vector<1x128xi32> to vector<1x128xf32>
    %c0 = arith.constant 0 : index
    %c0_0 = arith.constant 0 : index
    %c0_1 = arith.constant 0 : index
    %5 = vector.load %arg1[%c0, %c0_0, %c0_1] : memref<8x8x128xf32, #tpu.memory_space<vmem>>, vector<8x8x128xf32>
    %6 = vector.shape_cast %5 : vector<8x8x128xf32> to vector<64x128xf32>
    %7 = arith.truncf %6 : vector<64x128xf32> to vector<64x128xbf16>
    %c0_2 = arith.constant 0 : index
    %c0_3 = arith.constant 0 : index
    %8 = vector.load %arg4[%c0_2, %c0_3] : memref<128x128xbf16, #tpu.memory_space<vmem>>, vector<128x128xbf16>
    %cst = arith.constant dense<0.000000e+00> : vector<64x128xf32>
    %9 = tpu.matmul %7, %8, %cst {dimension_numbers = #tpu.dot_dimension_numbers<[1], [0], [0], [1], [0, 0, 1, 1], [], []>} : vector<64x128xbf16>, vector<128x128xbf16>, vector<64x128xf32> -> vector<64x128xf32>
    %c0_4 = arith.constant 0 : index
    %c0_5 = arith.constant 0 : index
    %10 = vector.load %arg5[%c0_4, %c0_5] : memref<1x128xf32, #tpu.memory_space<vmem>>, vector<1x128xf32>
    %11 = vector.broadcast %10 : vector<1x128xf32> to vector<64x128xf32>
    %12 = arith.addf %9, %11 : vector<64x128xf32>
    %cst_6 = arith.constant 0.000000e+00 : f32
    %13 = vector.broadcast %cst_6 : f32 to vector<64x128xf32>
    %14 = arith.maximumf %12, %13 : vector<64x128xf32>
    %c0_7 = arith.constant 0 : index
    %c0_8 = arith.constant 0 : index
    %15 = vector.load %arg6[%c0_7, %c0_8] : memref<1x128xf32, #tpu.memory_space<vmem>>, vector<1x128xf32>
    %c0_9 = arith.constant 0 : index
    %c0_10 = arith.constant 0 : index
    %16 = vector.load %arg7[%c0_9, %c0_10] : memref<1x128xf32, #tpu.memory_space<vmem>>, vector<1x128xf32>
    %cst_11 = arith.constant dense<0.000000e+00> : vector<64xf32>
    %17 = vector.multi_reduction <add>, %14, %cst_11 [1] : vector<64x128xf32> to vector<64xf32>
    %18 = vector.shape_cast %17 : vector<64xf32> to vector<64x1xf32>
    %cst_12 = arith.constant 3.200000e+01 : f32
    %19 = vector.broadcast %cst_12 : f32 to vector<64x1xf32>
    %20 = arith.divf %18, %19 : vector<64x1xf32>
    %21 = vector.broadcast %20 : vector<64x1xf32> to vector<64x128xf32>
    %22 = arith.subf %14, %21 : vector<64x128xf32>
    %23 = vector.broadcast %4 : vector<1x128xf32> to vector<64x128xf32>
    %24 = arith.mulf %22, %23 : vector<64x128xf32>
    %25 = arith.mulf %24, %24 : vector<64x128xf32>
    %cst_13 = arith.constant dense<0.000000e+00> : vector<64xf32>
    %26 = vector.multi_reduction <add>, %25, %cst_13 [1] : vector<64x128xf32> to vector<64xf32>
    %27 = vector.shape_cast %26 : vector<64xf32> to vector<64x1xf32>
    %cst_14 = arith.constant 3.200000e+01 : f32
    %28 = vector.broadcast %cst_14 : f32 to vector<64x1xf32>
    %29 = arith.divf %27, %28 : vector<64x1xf32>
    %cst_15 = arith.constant 9.99999974E-6 : f32
    %30 = vector.broadcast %cst_15 : f32 to vector<64x1xf32>
    %31 = arith.addf %29, %30 : vector<64x1xf32>
    %32 = math.rsqrt %31 : vector<64x1xf32>
    %33 = vector.broadcast %32 : vector<64x1xf32> to vector<64x128xf32>
    %34 = arith.mulf %24, %33 : vector<64x128xf32>
    %35 = vector.broadcast %15 : vector<1x128xf32> to vector<64x128xf32>
    %36 = arith.mulf %34, %35 : vector<64x128xf32>
    %37 = vector.broadcast %16 : vector<1x128xf32> to vector<64x128xf32>
    %38 = arith.addf %36, %37 : vector<64x128xf32>
    %39 = arith.truncf %38 : vector<64x128xf32> to vector<64x128xbf16>
    %c0_16 = arith.constant 0 : index
    %c0_17 = arith.constant 0 : index
    %40 = vector.load %arg8[%c0_16, %c0_17] : memref<128x128xbf16, #tpu.memory_space<vmem>>, vector<128x128xbf16>
    %cst_18 = arith.constant dense<0.000000e+00> : vector<64x128xf32>
    %41 = tpu.matmul %39, %40, %cst_18 {dimension_numbers = #tpu.dot_dimension_numbers<[1], [0], [0], [1], [0, 0, 1, 1], [], []>} : vector<64x128xbf16>, vector<128x128xbf16>, vector<64x128xf32> -> vector<64x128xf32>
    %c0_19 = arith.constant 0 : index
    %c0_20 = arith.constant 0 : index
    %42 = vector.load %arg9[%c0_19, %c0_20] : memref<1x128xf32, #tpu.memory_space<vmem>>, vector<1x128xf32>
    %43 = vector.broadcast %42 : vector<1x128xf32> to vector<64x128xf32>
    %44 = arith.addf %41, %43 : vector<64x128xf32>
    %cst_21 = arith.constant 0.000000e+00 : f32
    %45 = vector.broadcast %cst_21 : f32 to vector<64x128xf32>
    %46 = arith.maximumf %44, %45 : vector<64x128xf32>
    %c0_22 = arith.constant 0 : index
    %c0_23 = arith.constant 0 : index
    %47 = vector.load %arg10[%c0_22, %c0_23] : memref<1x128xf32, #tpu.memory_space<vmem>>, vector<1x128xf32>
    %c0_24 = arith.constant 0 : index
    %c0_25 = arith.constant 0 : index
    %48 = vector.load %arg11[%c0_24, %c0_25] : memref<1x128xf32, #tpu.memory_space<vmem>>, vector<1x128xf32>
    %cst_26 = arith.constant dense<0.000000e+00> : vector<64xf32>
    %49 = vector.multi_reduction <add>, %46, %cst_26 [1] : vector<64x128xf32> to vector<64xf32>
    %50 = vector.shape_cast %49 : vector<64xf32> to vector<64x1xf32>
    %cst_27 = arith.constant 3.200000e+01 : f32
    %51 = vector.broadcast %cst_27 : f32 to vector<64x1xf32>
    %52 = arith.divf %50, %51 : vector<64x1xf32>
    %53 = vector.broadcast %52 : vector<64x1xf32> to vector<64x128xf32>
    %54 = arith.subf %46, %53 : vector<64x128xf32>
    %55 = vector.broadcast %4 : vector<1x128xf32> to vector<64x128xf32>
    %56 = arith.mulf %54, %55 : vector<64x128xf32>
    %57 = arith.mulf %56, %56 : vector<64x128xf32>
    %cst_28 = arith.constant dense<0.000000e+00> : vector<64xf32>
    %58 = vector.multi_reduction <add>, %57, %cst_28 [1] : vector<64x128xf32> to vector<64xf32>
    %59 = vector.shape_cast %58 : vector<64xf32> to vector<64x1xf32>
    %cst_29 = arith.constant 3.200000e+01 : f32
    %60 = vector.broadcast %cst_29 : f32 to vector<64x1xf32>
    %61 = arith.divf %59, %60 : vector<64x1xf32>
    %cst_30 = arith.constant 9.99999974E-6 : f32
    %62 = vector.broadcast %cst_30 : f32 to vector<64x1xf32>
    %63 = arith.addf %61, %62 : vector<64x1xf32>
    %64 = math.rsqrt %63 : vector<64x1xf32>
    %65 = vector.broadcast %64 : vector<64x1xf32> to vector<64x128xf32>
    %66 = arith.mulf %56, %65 : vector<64x128xf32>
    %67 = vector.broadcast %47 : vector<1x128xf32> to vector<64x128xf32>
    %68 = arith.mulf %66, %67 : vector<64x128xf32>
    %69 = vector.broadcast %48 : vector<1x128xf32> to vector<64x128xf32>
    %70 = arith.addf %68, %69 : vector<64x128xf32>
    %71 = arith.truncf %70 : vector<64x128xf32> to vector<64x128xbf16>
    %c0_31 = arith.constant 0 : index
    %c0_32 = arith.constant 0 : index
    %c0_33 = arith.constant 0 : index
    %72 = vector.load %arg12[%c0_31, %c0_32, %c0_33] : memref<2x128x384xbf16, #tpu.memory_space<vmem>>, vector<1x128x384xbf16>
    %73 = vector.shape_cast %72 : vector<1x128x384xbf16> to vector<128x384xbf16>
    %cst_34 = arith.constant dense<0.000000e+00> : vector<64x384xf32>
    %74 = tpu.matmul %71, %73, %cst_34 {dimension_numbers = #tpu.dot_dimension_numbers<[1], [0], [0], [1], [0, 0, 1, 1], [], []>} : vector<64x128xbf16>, vector<128x384xbf16>, vector<64x384xf32> -> vector<64x384xf32>
    %c0_35 = arith.constant 0 : index
    %c0_36 = arith.constant 0 : index
    %c0_37 = arith.constant 0 : index
    %75 = vector.load %arg14[%c0_35, %c0_36, %c0_37] : memref<2x1x384xf32, #tpu.memory_space<vmem>>, vector<1x1x384xf32>
    %76 = vector.shape_cast %75 : vector<1x1x384xf32> to vector<1x384xf32>
    %77 = vector.broadcast %76 : vector<1x384xf32> to vector<64x384xf32>
    %78 = arith.addf %74, %77 : vector<64x384xf32>
    %79 = vector.shape_cast %78 : vector<64x384xf32> to vector<8x8x384xf32>
    %c0_38 = arith.constant 0 : index
    %c0_39 = arith.constant 0 : index
    %c0_40 = arith.constant 0 : index
    %80 = vector.load %arg20[%c0_38, %c0_39, %c0_40] : memref<8x8x384xf32, #tpu.memory_space<vmem>>, vector<8x8x384xf32>
    tpu.vector_store %arg20[%c0_38, %c0_39, %c0_40], %79 {strides = array<i32>} : memref<8x8x384xf32, #tpu.memory_space<vmem>>, vector<8x8x384xf32>,
    %c0_41 = arith.constant 0 : index
    %c0_42 = arith.constant 0 : index
    %c0_43 = arith.constant 0 : index
    %81 = vector.load %arg13[%c0_41, %c0_42, %c0_43] : memref<2x128x384xbf16, #tpu.memory_space<vmem>>, vector<1x128x384xbf16>
    %82 = vector.shape_cast %81 : vector<1x128x384xbf16> to vector<128x384xbf16>
    %c0_44 = arith.constant 0 : index
    %c0_45 = arith.constant 0 : index
    %c0_46 = arith.constant 0 : index
    %83 = vector.load %arg15[%c0_44, %c0_45, %c0_46] : memref<2x1x128xf32, #tpu.memory_space<vmem>>, vector<1x1x128xf32>
    %84 = vector.shape_cast %83 : vector<1x1x128xf32> to vector<1x128xf32>
    %c0_47 = arith.constant 0 : index
    %c0_48 = arith.constant 0 : index
    %c0_49 = arith.constant 0 : index
    %85 = vector.load %arg3[%c0_47, %c0_48, %c0_49] : memref<2x8x128xf32, #tpu.memory_space<vmem>>, vector<1x8x128xf32>
    %86 = vector.shape_cast %85 : vector<1x8x128xf32> to vector<8x128xf32>
    %c0_i32 = arith.constant 0 : i32
    %87 = arith.index_cast %c0_i32 : i32 to index
    %c0_50 = arith.constant 0 : index
    %c0_51 = arith.constant 0 : index
    %88 = vector.load %arg2[%87, %c0_50, %c0_51] : memref<8x8x1xf32, #tpu.memory_space<vmem>>, vector<1x8x1xf32>
    %89 = vector.shape_cast %88 : vector<1x8x1xf32> to vector<8x1xf32>
    %90 = vector.broadcast %89 : vector<8x1xf32> to vector<8x128xf32>
    %91 = arith.mulf %86, %90 : vector<8x128xf32>
    %92 = arith.index_cast %c0_i32 : i32 to index
    %c0_52 = arith.constant 0 : index
    %c0_53 = arith.constant 0 : index
    %93 = vector.load %arg20[%92, %c0_52, %c0_53] : memref<8x8x384xf32, #tpu.memory_space<vmem>>, vector<1x8x384xf32>
    %94 = vector.shape_cast %93 : vector<1x8x384xf32> to vector<8x384xf32>
    %95 = arith.truncf %91 : vector<8x128xf32> to vector<8x128xbf16>
    %cst_54 = arith.constant dense<0.000000e+00> : vector<8x384xf32>
    %96 = tpu.matmul %95, %82, %cst_54 {dimension_numbers = #tpu.dot_dimension_numbers<[1], [0], [0], [1], [0, 0, 1, 1], [], []>} : vector<8x128xbf16>, vector<128x384xbf16>, vector<8x384xf32> -> vector<8x384xf32>
    %97 = vector.extract_strided_slice %94 {offsets = [0, 0], sizes = [8, 128], strides = [1, 1]} : vector<8x384xf32> to vector<8x128xf32>
    %98 = vector.extract_strided_slice %96 {offsets = [0, 0], sizes = [8, 128], strides = [1, 1]} : vector<8x384xf32> to vector<8x128xf32>
    %99 = arith.addf %97, %98 : vector<8x128xf32>
    %100 = arith.negf %99 : vector<8x128xf32>
    %101 = math.exp %100 : vector<8x128xf32>
    %cst_55 = arith.constant 1.000000e+00 : f32
    %102 = vector.broadcast %cst_55 : f32 to vector<8x128xf32>
    %103 = arith.addf %102, %101 : vector<8x128xf32>
    %104 = arith.divf %102, %103 : vector<8x128xf32>
    %105 = vector.extract_strided_slice %94 {offsets = [0, 128], sizes = [8, 128], strides = [1, 1]} : vector<8x384xf32> to vector<8x128xf32>
    %106 = vector.extract_strided_slice %96 {offsets = [0, 128], sizes = [8, 128], strides = [1, 1]} : vector<8x384xf32> to vector<8x128xf32>
    %107 = arith.addf %105, %106 : vector<8x128xf32>
    %108 = arith.negf %107 : vector<8x128xf32>
    %109 = math.exp %108 : vector<8x128xf32>
    %cst_56 = arith.constant 1.000000e+00 : f32
    %110 = vector.broadcast %cst_56 : f32 to vector<8x128xf32>
    %111 = arith.addf %110, %109 : vector<8x128xf32>
    %112 = arith.divf %110, %111 : vector<8x128xf32>
    %113 = vector.extract_strided_slice %94 {offsets = [0, 256], sizes = [8, 128], strides = [1, 1]} : vector<8x384xf32> to vector<8x128xf32>
    %114 = vector.extract_strided_slice %96 {offsets = [0, 256], sizes = [8, 128], strides = [1, 1]} : vector<8x384xf32> to vector<8x128xf32>
    %115 = vector.broadcast %84 : vector<1x128xf32> to vector<8x128xf32>
    %116 = arith.addf %114, %115 : vector<8x128xf32>
    %117 = arith.mulf %104, %116 : vector<8x128xf32>
    %118 = arith.addf %113, %117 : vector<8x128xf32>
    %119 = math.tanh %118 : vector<8x128xf32>
    %cst_57 = arith.constant 1.000000e+00 : f32
    %120 = vector.broadcast %cst_57 : f32 to vector<8x128xf32>
    %121 = arith.subf %120, %112 : vector<8x128xf32>
    %122 = arith.mulf %121, %119 : vector<8x128xf32>
    %123 = arith.mulf %112, %91 : vector<8x128xf32>
    %124 = arith.addf %122, %123 : vector<8x128xf32>
    %125 = arith.index_cast %c0_i32 : i32 to index
    %c0_58 = arith.constant 0 : index
    %c0_59 = arith.constant 0 : index
    %126 = vector.load %arg18[%125, %c0_58, %c0_59] : memref<8x8x128xf32, #tpu.memory_space<vmem>>, vector<1x8x128xf32>
    %127 = vector.shape_cast %126 : vector<1x8x128xf32> to vector<8x128xf32>
    %128 = vector.shape_cast %124 : vector<8x128xf32> to vector<1x8x128xf32>
    tpu.vector_store %arg18[%125, %c0_58, %c0_59], %128 {strides = array<i32>} : memref<8x8x128xf32, #tpu.memory_space<vmem>>, vector<1x8x128xf32>,
    %c1_i32 = arith.constant 1 : i32
    %129 = arith.index_cast %c1_i32 : i32 to index
    %c0_60 = arith.constant 0 : index
    %c0_61 = arith.constant 0 : index
    %130 = vector.load %arg2[%129, %c0_60, %c0_61] : memref<8x8x1xf32, #tpu.memory_space<vmem>>, vector<1x8x1xf32>
    %131 = vector.shape_cast %130 : vector<1x8x1xf32> to vector<8x1xf32>
    %132 = vector.broadcast %131 : vector<8x1xf32> to vector<8x128xf32>
    %133 = arith.mulf %124, %132 : vector<8x128xf32>
    %134 = arith.index_cast %c1_i32 : i32 to index
    %c0_62 = arith.constant 0 : index
    %c0_63 = arith.constant 0 : index
    %135 = vector.load %arg20[%134, %c0_62, %c0_63] : memref<8x8x384xf32, #tpu.memory_space<vmem>>, vector<1x8x384xf32>
    %136 = vector.shape_cast %135 : vector<1x8x384xf32> to vector<8x384xf32>
    %137 = arith.truncf %133 : vector<8x128xf32> to vector<8x128xbf16>
    %cst_64 = arith.constant dense<0.000000e+00> : vector<8x384xf32>
    %138 = tpu.matmul %137, %82, %cst_64 {dimension_numbers = #tpu.dot_dimension_numbers<[1], [0], [0], [1], [0, 0, 1, 1], [], []>} : vector<8x128xbf16>, vector<128x384xbf16>, vector<8x384xf32> -> vector<8x384xf32>
    %139 = vector.extract_strided_slice %136 {offsets = [0, 0], sizes = [8, 128], strides = [1, 1]} : vector<8x384xf32> to vector<8x128xf32>
    %140 = vector.extract_strided_slice %138 {offsets = [0, 0], sizes = [8, 128], strides = [1, 1]} : vector<8x384xf32> to vector<8x128xf32>
    %141 = arith.addf %139, %140 : vector<8x128xf32>
    %142 = arith.negf %141 : vector<8x128xf32>
    %143 = math.exp %142 : vector<8x128xf32>
    %cst_65 = arith.constant 1.000000e+00 : f32
    %144 = vector.broadcast %cst_65 : f32 to vector<8x128xf32>
    %145 = arith.addf %144, %143 : vector<8x128xf32>
    %146 = arith.divf %144, %145 : vector<8x128xf32>
    %147 = vector.extract_strided_slice %136 {offsets = [0, 128], sizes = [8, 128], strides = [1, 1]} : vector<8x384xf32> to vector<8x128xf32>
    %148 = vector.extract_strided_slice %138 {offsets = [0, 128], sizes = [8, 128], strides = [1, 1]} : vector<8x384xf32> to vector<8x128xf32>
    %149 = arith.addf %147, %148 : vector<8x128xf32>
    %150 = arith.negf %149 : vector<8x128xf32>
    %151 = math.exp %150 : vector<8x128xf32>
    %cst_66 = arith.constant 1.000000e+00 : f32
    %152 = vector.broadcast %cst_66 : f32 to vector<8x128xf32>
    %153 = arith.addf %152, %151 : vector<8x128xf32>
    %154 = arith.divf %152, %153 : vector<8x128xf32>
    %155 = vector.extract_strided_slice %136 {offsets = [0, 256], sizes = [8, 128], strides = [1, 1]} : vector<8x384xf32> to vector<8x128xf32>
    %156 = vector.extract_strided_slice %138 {offsets = [0, 256], sizes = [8, 128], strides = [1, 1]} : vector<8x384xf32> to vector<8x128xf32>
    %157 = vector.broadcast %84 : vector<1x128xf32> to vector<8x128xf32>
    %158 = arith.addf %156, %157 : vector<8x128xf32>
    %159 = arith.mulf %146, %158 : vector<8x128xf32>
    %160 = arith.addf %155, %159 : vector<8x128xf32>
    %161 = math.tanh %160 : vector<8x128xf32>
    %cst_67 = arith.constant 1.000000e+00 : f32
    %162 = vector.broadcast %cst_67 : f32 to vector<8x128xf32>
    %163 = arith.subf %162, %154 : vector<8x128xf32>
    %164 = arith.mulf %163, %161 : vector<8x128xf32>
    %165 = arith.mulf %154, %133 : vector<8x128xf32>
    %166 = arith.addf %164, %165 : vector<8x128xf32>
    %167 = arith.index_cast %c1_i32 : i32 to index
    %c0_68 = arith.constant 0 : index
    %c0_69 = arith.constant 0 : index
    %168 = vector.load %arg18[%167, %c0_68, %c0_69] : memref<8x8x128xf32, #tpu.memory_space<vmem>>, vector<1x8x128xf32>
    %169 = vector.shape_cast %168 : vector<1x8x128xf32> to vector<8x128xf32>
    %170 = vector.shape_cast %166 : vector<8x128xf32> to vector<1x8x128xf32>
    tpu.vector_store %arg18[%167, %c0_68, %c0_69], %170 {strides = array<i32>} : memref<8x8x128xf32, #tpu.memory_space<vmem>>, vector<1x8x128xf32>,
    %c2_i32 = arith.constant 2 : i32
    %171 = arith.index_cast %c2_i32 : i32 to index
    %c0_70 = arith.constant 0 : index
    %c0_71 = arith.constant 0 : index
    %172 = vector.load %arg2[%171, %c0_70, %c0_71] : memref<8x8x1xf32, #tpu.memory_space<vmem>>, vector<1x8x1xf32>
    %173 = vector.shape_cast %172 : vector<1x8x1xf32> to vector<8x1xf32>
    %174 = vector.broadcast %173 : vector<8x1xf32> to vector<8x128xf32>
    %175 = arith.mulf %166, %174 : vector<8x128xf32>
    %176 = arith.index_cast %c2_i32 : i32 to index
    %c0_72 = arith.constant 0 : index
    %c0_73 = arith.constant 0 : index
    %177 = vector.load %arg20[%176, %c0_72, %c0_73] : memref<8x8x384xf32, #tpu.memory_space<vmem>>, vector<1x8x384xf32>
    %178 = vector.shape_cast %177 : vector<1x8x384xf32> to vector<8x384xf32>
    %179 = arith.truncf %175 : vector<8x128xf32> to vector<8x128xbf16>
    %cst_74 = arith.constant dense<0.000000e+00> : vector<8x384xf32>
    %180 = tpu.matmul %179, %82, %cst_74 {dimension_numbers = #tpu.dot_dimension_numbers<[1], [0], [0], [1], [0, 0, 1, 1], [], []>} : vector<8x128xbf16>, vector<128x384xbf16>, vector<8x384xf32> -> vector<8x384xf32>
    %181 = vector.extract_strided_slice %178 {offsets = [0, 0], sizes = [8, 128], strides = [1, 1]} : vector<8x384xf32> to vector<8x128xf32>
    %182 = vector.extract_strided_slice %180 {offsets = [0, 0], sizes = [8, 128], strides = [1, 1]} : vector<8x384xf32> to vector<8x128xf32>
    %183 = arith.addf %181, %182 : vector<8x128xf32>
    %184 = arith.negf %183 : vector<8x128xf32>
    %185 = math.exp %184 : vector<8x128xf32>
    %cst_75 = arith.constant 1.000000e+00 : f32
    %186 = vector.broadcast %cst_75 : f32 to vector<8x128xf32>
    %187 = arith.addf %186, %185 : vector<8x128xf32>
    %188 = arith.divf %186, %187 : vector<8x128xf32>
    %189 = vector.extract_strided_slice %178 {offsets = [0, 128], sizes = [8, 128], strides = [1, 1]} : vector<8x384xf32> to vector<8x128xf32>
    %190 = vector.extract_strided_slice %180 {offsets = [0, 128], sizes = [8, 128], strides = [1, 1]} : vector<8x384xf32> to vector<8x128xf32>
    %191 = arith.addf %189, %190 : vector<8x128xf32>
    %192 = arith.negf %191 : vector<8x128xf32>
    %193 = math.exp %192 : vector<8x128xf32>
    %cst_76 = arith.constant 1.000000e+00 : f32
    %194 = vector.broadcast %cst_76 : f32 to vector<8x128xf32>
    %195 = arith.addf %194, %193 : vector<8x128xf32>
    %196 = arith.divf %194, %195 : vector<8x128xf32>
    %197 = vector.extract_strided_slice %178 {offsets = [0, 256], sizes = [8, 128], strides = [1, 1]} : vector<8x384xf32> to vector<8x128xf32>
    %198 = vector.extract_strided_slice %180 {offsets = [0, 256], sizes = [8, 128], strides = [1, 1]} : vector<8x384xf32> to vector<8x128xf32>
    %199 = vector.broadcast %84 : vector<1x128xf32> to vector<8x128xf32>
    %200 = arith.addf %198, %199 : vector<8x128xf32>
    %201 = arith.mulf %188, %200 : vector<8x128xf32>
    %202 = arith.addf %197, %201 : vector<8x128xf32>
    %203 = math.tanh %202 : vector<8x128xf32>
    %cst_77 = arith.constant 1.000000e+00 : f32
    %204 = vector.broadcast %cst_77 : f32 to vector<8x128xf32>
    %205 = arith.subf %204, %196 : vector<8x128xf32>
    %206 = arith.mulf %205, %203 : vector<8x128xf32>
    %207 = arith.mulf %196, %175 : vector<8x128xf32>
    %208 = arith.addf %206, %207 : vector<8x128xf32>
    %209 = arith.index_cast %c2_i32 : i32 to index
    %c0_78 = arith.constant 0 : index
    %c0_79 = arith.constant 0 : index
    %210 = vector.load %arg18[%209, %c0_78, %c0_79] : memref<8x8x128xf32, #tpu.memory_space<vmem>>, vector<1x8x128xf32>
    %211 = vector.shape_cast %210 : vector<1x8x128xf32> to vector<8x128xf32>
    %212 = vector.shape_cast %208 : vector<8x128xf32> to vector<1x8x128xf32>
    tpu.vector_store %arg18[%209, %c0_78, %c0_79], %212 {strides = array<i32>} : memref<8x8x128xf32, #tpu.memory_space<vmem>>, vector<1x8x128xf32>,
    %c3_i32 = arith.constant 3 : i32
    %213 = arith.index_cast %c3_i32 : i32 to index
    %c0_80 = arith.constant 0 : index
    %c0_81 = arith.constant 0 : index
    %214 = vector.load %arg2[%213, %c0_80, %c0_81] : memref<8x8x1xf32, #tpu.memory_space<vmem>>, vector<1x8x1xf32>
    %215 = vector.shape_cast %214 : vector<1x8x1xf32> to vector<8x1xf32>
    %216 = vector.broadcast %215 : vector<8x1xf32> to vector<8x128xf32>
    %217 = arith.mulf %208, %216 : vector<8x128xf32>
    %218 = arith.index_cast %c3_i32 : i32 to index
    %c0_82 = arith.constant 0 : index
    %c0_83 = arith.constant 0 : index
    %219 = vector.load %arg20[%218, %c0_82, %c0_83] : memref<8x8x384xf32, #tpu.memory_space<vmem>>, vector<1x8x384xf32>
    %220 = vector.shape_cast %219 : vector<1x8x384xf32> to vector<8x384xf32>
    %221 = arith.truncf %217 : vector<8x128xf32> to vector<8x128xbf16>
    %cst_84 = arith.constant dense<0.000000e+00> : vector<8x384xf32>
    %222 = tpu.matmul %221, %82, %cst_84 {dimension_numbers = #tpu.dot_dimension_numbers<[1], [0], [0], [1], [0, 0, 1, 1], [], []>} : vector<8x128xbf16>, vector<128x384xbf16>, vector<8x384xf32> -> vector<8x384xf32>
    %223 = vector.extract_strided_slice %220 {offsets = [0, 0], sizes = [8, 128], strides = [1, 1]} : vector<8x384xf32> to vector<8x128xf32>
    %224 = vector.extract_strided_slice %222 {offsets = [0, 0], sizes = [8, 128], strides = [1, 1]} : vector<8x384xf32> to vector<8x128xf32>
    %225 = arith.addf %223, %224 : vector<8x128xf32>
    %226 = arith.negf %225 : vector<8x128xf32>
    %227 = math.exp %226 : vector<8x128xf32>
    %cst_85 = arith.constant 1.000000e+00 : f32
    %228 = vector.broadcast %cst_85 : f32 to vector<8x128xf32>
    %229 = arith.addf %228, %227 : vector<8x128xf32>
    %230 = arith.divf %228, %229 : vector<8x128xf32>
    %231 = vector.extract_strided_slice %220 {offsets = [0, 128], sizes = [8, 128], strides = [1, 1]} : vector<8x384xf32> to vector<8x128xf32>
    %232 = vector.extract_strided_slice %222 {offsets = [0, 128], sizes = [8, 128], strides = [1, 1]} : vector<8x384xf32> to vector<8x128xf32>
    %233 = arith.addf %231, %232 : vector<8x128xf32>
    %234 = arith.negf %233 : vector<8x128xf32>
    %235 = math.exp %234 : vector<8x128xf32>
    %cst_86 = arith.constant 1.000000e+00 : f32
    %236 = vector.broadcast %cst_86 : f32 to vector<8x128xf32>
    %237 = arith.addf %236, %235 : vector<8x128xf32>
    %238 = arith.divf %236, %237 : vector<8x128xf32>
    %239 = vector.extract_strided_slice %220 {offsets = [0, 256], sizes = [8, 128], strides = [1, 1]} : vector<8x384xf32> to vector<8x128xf32>
    %240 = vector.extract_strided_slice %222 {offsets = [0, 256], sizes = [8, 128], strides = [1, 1]} : vector<8x384xf32> to vector<8x128xf32>
    %241 = vector.broadcast %84 : vector<1x128xf32> to vector<8x128xf32>
    %242 = arith.addf %240, %241 : vector<8x128xf32>
    %243 = arith.mulf %230, %242 : vector<8x128xf32>
    %244 = arith.addf %239, %243 : vector<8x128xf32>
    %245 = math.tanh %244 : vector<8x128xf32>
    %cst_87 = arith.constant 1.000000e+00 : f32
    %246 = vector.broadcast %cst_87 : f32 to vector<8x128xf32>
    %247 = arith.subf %246, %238 : vector<8x128xf32>
    %248 = arith.mulf %247, %245 : vector<8x128xf32>
    %249 = arith.mulf %238, %217 : vector<8x128xf32>
    %250 = arith.addf %248, %249 : vector<8x128xf32>
    %251 = arith.index_cast %c3_i32 : i32 to index
    %c0_88 = arith.constant 0 : index
    %c0_89 = arith.constant 0 : index
    %252 = vector.load %arg18[%251, %c0_88, %c0_89] : memref<8x8x128xf32, #tpu.memory_space<vmem>>, vector<1x8x128xf32>
    %253 = vector.shape_cast %252 : vector<1x8x128xf32> to vector<8x128xf32>
    %254 = vector.shape_cast %250 : vector<8x128xf32> to vector<1x8x128xf32>
    tpu.vector_store %arg18[%251, %c0_88, %c0_89], %254 {strides = array<i32>} : memref<8x8x128xf32, #tpu.memory_space<vmem>>, vector<1x8x128xf32>,
    %c4_i32 = arith.constant 4 : i32
    %255 = arith.index_cast %c4_i32 : i32 to index
    %c0_90 = arith.constant 0 : index
    %c0_91 = arith.constant 0 : index
    %256 = vector.load %arg2[%255, %c0_90, %c0_91] : memref<8x8x1xf32, #tpu.memory_space<vmem>>, vector<1x8x1xf32>
    %257 = vector.shape_cast %256 : vector<1x8x1xf32> to vector<8x1xf32>
    %258 = vector.broadcast %257 : vector<8x1xf32> to vector<8x128xf32>
    %259 = arith.mulf %250, %258 : vector<8x128xf32>
    %260 = arith.index_cast %c4_i32 : i32 to index
    %c0_92 = arith.constant 0 : index
    %c0_93 = arith.constant 0 : index
    %261 = vector.load %arg20[%260, %c0_92, %c0_93] : memref<8x8x384xf32, #tpu.memory_space<vmem>>, vector<1x8x384xf32>
    %262 = vector.shape_cast %261 : vector<1x8x384xf32> to vector<8x384xf32>
    %263 = arith.truncf %259 : vector<8x128xf32> to vector<8x128xbf16>
    %cst_94 = arith.constant dense<0.000000e+00> : vector<8x384xf32>
    %264 = tpu.matmul %263, %82, %cst_94 {dimension_numbers = #tpu.dot_dimension_numbers<[1], [0], [0], [1], [0, 0, 1, 1], [], []>} : vector<8x128xbf16>, vector<128x384xbf16>, vector<8x384xf32> -> vector<8x384xf32>
    %265 = vector.extract_strided_slice %262 {offsets = [0, 0], sizes = [8, 128], strides = [1, 1]} : vector<8x384xf32> to vector<8x128xf32>
    %266 = vector.extract_strided_slice %264 {offsets = [0, 0], sizes = [8, 128], strides = [1, 1]} : vector<8x384xf32> to vector<8x128xf32>
    %267 = arith.addf %265, %266 : vector<8x128xf32>
    %268 = arith.negf %267 : vector<8x128xf32>
    %269 = math.exp %268 : vector<8x128xf32>
    %cst_95 = arith.constant 1.000000e+00 : f32
    %270 = vector.broadcast %cst_95 : f32 to vector<8x128xf32>
    %271 = arith.addf %270, %269 : vector<8x128xf32>
    %272 = arith.divf %270, %271 : vector<8x128xf32>
    %273 = vector.extract_strided_slice %262 {offsets = [0, 128], sizes = [8, 128], strides = [1, 1]} : vector<8x384xf32> to vector<8x128xf32>
    %274 = vector.extract_strided_slice %264 {offsets = [0, 128], sizes = [8, 128], strides = [1, 1]} : vector<8x384xf32> to vector<8x128xf32>
    %275 = arith.addf %273, %274 : vector<8x128xf32>
    %276 = arith.negf %275 : vector<8x128xf32>
    %277 = math.exp %276 : vector<8x128xf32>
    %cst_96 = arith.constant 1.000000e+00 : f32
    %278 = vector.broadcast %cst_96 : f32 to vector<8x128xf32>
    %279 = arith.addf %278, %277 : vector<8x128xf32>
    %280 = arith.divf %278, %279 : vector<8x128xf32>
    %281 = vector.extract_strided_slice %262 {offsets = [0, 256], sizes = [8, 128], strides = [1, 1]} : vector<8x384xf32> to vector<8x128xf32>
    %282 = vector.extract_strided_slice %264 {offsets = [0, 256], sizes = [8, 128], strides = [1, 1]} : vector<8x384xf32> to vector<8x128xf32>
    %283 = vector.broadcast %84 : vector<1x128xf32> to vector<8x128xf32>
    %284 = arith.addf %282, %283 : vector<8x128xf32>
    %285 = arith.mulf %272, %284 : vector<8x128xf32>
    %286 = arith.addf %281, %285 : vector<8x128xf32>
    %287 = math.tanh %286 : vector<8x128xf32>
    %cst_97 = arith.constant 1.000000e+00 : f32
    %288 = vector.broadcast %cst_97 : f32 to vector<8x128xf32>
    %289 = arith.subf %288, %280 : vector<8x128xf32>
    %290 = arith.mulf %289, %287 : vector<8x128xf32>
    %291 = arith.mulf %280, %259 : vector<8x128xf32>
    %292 = arith.addf %290, %291 : vector<8x128xf32>
    %293 = arith.index_cast %c4_i32 : i32 to index
    %c0_98 = arith.constant 0 : index
    %c0_99 = arith.constant 0 : index
    %294 = vector.load %arg18[%293, %c0_98, %c0_99] : memref<8x8x128xf32, #tpu.memory_space<vmem>>, vector<1x8x128xf32>
    %295 = vector.shape_cast %294 : vector<1x8x128xf32> to vector<8x128xf32>
    %296 = vector.shape_cast %292 : vector<8x128xf32> to vector<1x8x128xf32>
    tpu.vector_store %arg18[%293, %c0_98, %c0_99], %296 {strides = array<i32>} : memref<8x8x128xf32, #tpu.memory_space<vmem>>, vector<1x8x128xf32>,
    %c5_i32 = arith.constant 5 : i32
    %297 = arith.index_cast %c5_i32 : i32 to index
    %c0_100 = arith.constant 0 : index
    %c0_101 = arith.constant 0 : index
    %298 = vector.load %arg2[%297, %c0_100, %c0_101] : memref<8x8x1xf32, #tpu.memory_space<vmem>>, vector<1x8x1xf32>
    %299 = vector.shape_cast %298 : vector<1x8x1xf32> to vector<8x1xf32>
    %300 = vector.broadcast %299 : vector<8x1xf32> to vector<8x128xf32>
    %301 = arith.mulf %292, %300 : vector<8x128xf32>
    %302 = arith.index_cast %c5_i32 : i32 to index
    %c0_102 = arith.constant 0 : index
    %c0_103 = arith.constant 0 : index
    %303 = vector.load %arg20[%302, %c0_102, %c0_103] : memref<8x8x384xf32, #tpu.memory_space<vmem>>, vector<1x8x384xf32>
    %304 = vector.shape_cast %303 : vector<1x8x384xf32> to vector<8x384xf32>
    %305 = arith.truncf %301 : vector<8x128xf32> to vector<8x128xbf16>
    %cst_104 = arith.constant dense<0.000000e+00> : vector<8x384xf32>
    %306 = tpu.matmul %305, %82, %cst_104 {dimension_numbers = #tpu.dot_dimension_numbers<[1], [0], [0], [1], [0, 0, 1, 1], [], []>} : vector<8x128xbf16>, vector<128x384xbf16>, vector<8x384xf32> -> vector<8x384xf32>
    %307 = vector.extract_strided_slice %304 {offsets = [0, 0], sizes = [8, 128], strides = [1, 1]} : vector<8x384xf32> to vector<8x128xf32>
    %308 = vector.extract_strided_slice %306 {offsets = [0, 0], sizes = [8, 128], strides = [1, 1]} : vector<8x384xf32> to vector<8x128xf32>
    %309 = arith.addf %307, %308 : vector<8x128xf32>
    %310 = arith.negf %309 : vector<8x128xf32>
    %311 = math.exp %310 : vector<8x128xf32>
    %cst_105 = arith.constant 1.000000e+00 : f32
    %312 = vector.broadcast %cst_105 : f32 to vector<8x128xf32>
    %313 = arith.addf %312, %311 : vector<8x128xf32>
    %314 = arith.divf %312, %313 : vector<8x128xf32>
    %315 = vector.extract_strided_slice %304 {offsets = [0, 128], sizes = [8, 128], strides = [1, 1]} : vector<8x384xf32> to vector<8x128xf32>
    %316 = vector.extract_strided_slice %306 {offsets = [0, 128], sizes = [8, 128], strides = [1, 1]} : vector<8x384xf32> to vector<8x128xf32>
    %317 = arith.addf %315, %316 : vector<8x128xf32>
    %318 = arith.negf %317 : vector<8x128xf32>
    %319 = math.exp %318 : vector<8x128xf32>
    %cst_106 = arith.constant 1.000000e+00 : f32
    %320 = vector.broadcast %cst_106 : f32 to vector<8x128xf32>
    %321 = arith.addf %320, %319 : vector<8x128xf32>
    %322 = arith.divf %320, %321 : vector<8x128xf32>
    %323 = vector.extract_strided_slice %304 {offsets = [0, 256], sizes = [8, 128], strides = [1, 1]} : vector<8x384xf32> to vector<8x128xf32>
    %324 = vector.extract_strided_slice %306 {offsets = [0, 256], sizes = [8, 128], strides = [1, 1]} : vector<8x384xf32> to vector<8x128xf32>
    %325 = vector.broadcast %84 : vector<1x128xf32> to vector<8x128xf32>
    %326 = arith.addf %324, %325 : vector<8x128xf32>
    %327 = arith.mulf %314, %326 : vector<8x128xf32>
    %328 = arith.addf %323, %327 : vector<8x128xf32>
    %329 = math.tanh %328 : vector<8x128xf32>
    %cst_107 = arith.constant 1.000000e+00 : f32
    %330 = vector.broadcast %cst_107 : f32 to vector<8x128xf32>
    %331 = arith.subf %330, %322 : vector<8x128xf32>
    %332 = arith.mulf %331, %329 : vector<8x128xf32>
    %333 = arith.mulf %322, %301 : vector<8x128xf32>
    %334 = arith.addf %332, %333 : vector<8x128xf32>
    %335 = arith.index_cast %c5_i32 : i32 to index
    %c0_108 = arith.constant 0 : index
    %c0_109 = arith.constant 0 : index
    %336 = vector.load %arg18[%335, %c0_108, %c0_109] : memref<8x8x128xf32, #tpu.memory_space<vmem>>, vector<1x8x128xf32>
    %337 = vector.shape_cast %336 : vector<1x8x128xf32> to vector<8x128xf32>
    %338 = vector.shape_cast %334 : vector<8x128xf32> to vector<1x8x128xf32>
    tpu.vector_store %arg18[%335, %c0_108, %c0_109], %338 {strides = array<i32>} : memref<8x8x128xf32, #tpu.memory_space<vmem>>, vector<1x8x128xf32>,
    %c6_i32 = arith.constant 6 : i32
    %339 = arith.index_cast %c6_i32 : i32 to index
    %c0_110 = arith.constant 0 : index
    %c0_111 = arith.constant 0 : index
    %340 = vector.load %arg2[%339, %c0_110, %c0_111] : memref<8x8x1xf32, #tpu.memory_space<vmem>>, vector<1x8x1xf32>
    %341 = vector.shape_cast %340 : vector<1x8x1xf32> to vector<8x1xf32>
    %342 = vector.broadcast %341 : vector<8x1xf32> to vector<8x128xf32>
    %343 = arith.mulf %334, %342 : vector<8x128xf32>
    %344 = arith.index_cast %c6_i32 : i32 to index
    %c0_112 = arith.constant 0 : index
    %c0_113 = arith.constant 0 : index
    %345 = vector.load %arg20[%344, %c0_112, %c0_113] : memref<8x8x384xf32, #tpu.memory_space<vmem>>, vector<1x8x384xf32>
    %346 = vector.shape_cast %345 : vector<1x8x384xf32> to vector<8x384xf32>
    %347 = arith.truncf %343 : vector<8x128xf32> to vector<8x128xbf16>
    %cst_114 = arith.constant dense<0.000000e+00> : vector<8x384xf32>
    %348 = tpu.matmul %347, %82, %cst_114 {dimension_numbers = #tpu.dot_dimension_numbers<[1], [0], [0], [1], [0, 0, 1, 1], [], []>} : vector<8x128xbf16>, vector<128x384xbf16>, vector<8x384xf32> -> vector<8x384xf32>
    %349 = vector.extract_strided_slice %346 {offsets = [0, 0], sizes = [8, 128], strides = [1, 1]} : vector<8x384xf32> to vector<8x128xf32>
    %350 = vector.extract_strided_slice %348 {offsets = [0, 0], sizes = [8, 128], strides = [1, 1]} : vector<8x384xf32> to vector<8x128xf32>
    %351 = arith.addf %349, %350 : vector<8x128xf32>
    %352 = arith.negf %351 : vector<8x128xf32>
    %353 = math.exp %352 : vector<8x128xf32>
    %cst_115 = arith.constant 1.000000e+00 : f32
    %354 = vector.broadcast %cst_115 : f32 to vector<8x128xf32>
    %355 = arith.addf %354, %353 : vector<8x128xf32>
    %356 = arith.divf %354, %355 : vector<8x128xf32>
    %357 = vector.extract_strided_slice %346 {offsets = [0, 128], sizes = [8, 128], strides = [1, 1]} : vector<8x384xf32> to vector<8x128xf32>
    %358 = vector.extract_strided_slice %348 {offsets = [0, 128], sizes = [8, 128], strides = [1, 1]} : vector<8x384xf32> to vector<8x128xf32>
    %359 = arith.addf %357, %358 : vector<8x128xf32>
    %360 = arith.negf %359 : vector<8x128xf32>
    %361 = math.exp %360 : vector<8x128xf32>
    %cst_116 = arith.constant 1.000000e+00 : f32
    %362 = vector.broadcast %cst_116 : f32 to vector<8x128xf32>
    %363 = arith.addf %362, %361 : vector<8x128xf32>
    %364 = arith.divf %362, %363 : vector<8x128xf32>
    %365 = vector.extract_strided_slice %346 {offsets = [0, 256], sizes = [8, 128], strides = [1, 1]} : vector<8x384xf32> to vector<8x128xf32>
    %366 = vector.extract_strided_slice %348 {offsets = [0, 256], sizes = [8, 128], strides = [1, 1]} : vector<8x384xf32> to vector<8x128xf32>
    %367 = vector.broadcast %84 : vector<1x128xf32> to vector<8x128xf32>
    %368 = arith.addf %366, %367 : vector<8x128xf32>
    %369 = arith.mulf %356, %368 : vector<8x128xf32>
    %370 = arith.addf %365, %369 : vector<8x128xf32>
    %371 = math.tanh %370 : vector<8x128xf32>
    %cst_117 = arith.constant 1.000000e+00 : f32
    %372 = vector.broadcast %cst_117 : f32 to vector<8x128xf32>
    %373 = arith.subf %372, %364 : vector<8x128xf32>
    %374 = arith.mulf %373, %371 : vector<8x128xf32>
    %375 = arith.mulf %364, %343 : vector<8x128xf32>
    %376 = arith.addf %374, %375 : vector<8x128xf32>
    %377 = arith.index_cast %c6_i32 : i32 to index
    %c0_118 = arith.constant 0 : index
    %c0_119 = arith.constant 0 : index
    %378 = vector.load %arg18[%377, %c0_118, %c0_119] : memref<8x8x128xf32, #tpu.memory_space<vmem>>, vector<1x8x128xf32>
    %379 = vector.shape_cast %378 : vector<1x8x128xf32> to vector<8x128xf32>
    %380 = vector.shape_cast %376 : vector<8x128xf32> to vector<1x8x128xf32>
    tpu.vector_store %arg18[%377, %c0_118, %c0_119], %380 {strides = array<i32>} : memref<8x8x128xf32, #tpu.memory_space<vmem>>, vector<1x8x128xf32>,
    %c7_i32 = arith.constant 7 : i32
    %381 = arith.index_cast %c7_i32 : i32 to index
    %c0_120 = arith.constant 0 : index
    %c0_121 = arith.constant 0 : index
    %382 = vector.load %arg2[%381, %c0_120, %c0_121] : memref<8x8x1xf32, #tpu.memory_space<vmem>>, vector<1x8x1xf32>
    %383 = vector.shape_cast %382 : vector<1x8x1xf32> to vector<8x1xf32>
    %384 = vector.broadcast %383 : vector<8x1xf32> to vector<8x128xf32>
    %385 = arith.mulf %376, %384 : vector<8x128xf32>
    %386 = arith.index_cast %c7_i32 : i32 to index
    %c0_122 = arith.constant 0 : index
    %c0_123 = arith.constant 0 : index
    %387 = vector.load %arg20[%386, %c0_122, %c0_123] : memref<8x8x384xf32, #tpu.memory_space<vmem>>, vector<1x8x384xf32>
    %388 = vector.shape_cast %387 : vector<1x8x384xf32> to vector<8x384xf32>
    %389 = arith.truncf %385 : vector<8x128xf32> to vector<8x128xbf16>
    %cst_124 = arith.constant dense<0.000000e+00> : vector<8x384xf32>
    %390 = tpu.matmul %389, %82, %cst_124 {dimension_numbers = #tpu.dot_dimension_numbers<[1], [0], [0], [1], [0, 0, 1, 1], [], []>} : vector<8x128xbf16>, vector<128x384xbf16>, vector<8x384xf32> -> vector<8x384xf32>
    %391 = vector.extract_strided_slice %388 {offsets = [0, 0], sizes = [8, 128], strides = [1, 1]} : vector<8x384xf32> to vector<8x128xf32>
    %392 = vector.extract_strided_slice %390 {offsets = [0, 0], sizes = [8, 128], strides = [1, 1]} : vector<8x384xf32> to vector<8x128xf32>
    %393 = arith.addf %391, %392 : vector<8x128xf32>
    %394 = arith.negf %393 : vector<8x128xf32>
    %395 = math.exp %394 : vector<8x128xf32>
    %cst_125 = arith.constant 1.000000e+00 : f32
    %396 = vector.broadcast %cst_125 : f32 to vector<8x128xf32>
    %397 = arith.addf %396, %395 : vector<8x128xf32>
    %398 = arith.divf %396, %397 : vector<8x128xf32>
    %399 = vector.extract_strided_slice %388 {offsets = [0, 128], sizes = [8, 128], strides = [1, 1]} : vector<8x384xf32> to vector<8x128xf32>
    %400 = vector.extract_strided_slice %390 {offsets = [0, 128], sizes = [8, 128], strides = [1, 1]} : vector<8x384xf32> to vector<8x128xf32>
    %401 = arith.addf %399, %400 : vector<8x128xf32>
    %402 = arith.negf %401 : vector<8x128xf32>
    %403 = math.exp %402 : vector<8x128xf32>
    %cst_126 = arith.constant 1.000000e+00 : f32
    %404 = vector.broadcast %cst_126 : f32 to vector<8x128xf32>
    %405 = arith.addf %404, %403 : vector<8x128xf32>
    %406 = arith.divf %404, %405 : vector<8x128xf32>
    %407 = vector.extract_strided_slice %388 {offsets = [0, 256], sizes = [8, 128], strides = [1, 1]} : vector<8x384xf32> to vector<8x128xf32>
    %408 = vector.extract_strided_slice %390 {offsets = [0, 256], sizes = [8, 128], strides = [1, 1]} : vector<8x384xf32> to vector<8x128xf32>
    %409 = vector.broadcast %84 : vector<1x128xf32> to vector<8x128xf32>
    %410 = arith.addf %408, %409 : vector<8x128xf32>
    %411 = arith.mulf %398, %410 : vector<8x128xf32>
    %412 = arith.addf %407, %411 : vector<8x128xf32>
    %413 = math.tanh %412 : vector<8x128xf32>
    %cst_127 = arith.constant 1.000000e+00 : f32
    %414 = vector.broadcast %cst_127 : f32 to vector<8x128xf32>
    %415 = arith.subf %414, %406 : vector<8x128xf32>
    %416 = arith.mulf %415, %413 : vector<8x128xf32>
    %417 = arith.mulf %406, %385 : vector<8x128xf32>
    %418 = arith.addf %416, %417 : vector<8x128xf32>
    %419 = arith.index_cast %c7_i32 : i32 to index
    %c0_128 = arith.constant 0 : index
    %c0_129 = arith.constant 0 : index
    %420 = vector.load %arg18[%419, %c0_128, %c0_129] : memref<8x8x128xf32, #tpu.memory_space<vmem>>, vector<1x8x128xf32>
    %421 = vector.shape_cast %420 : vector<1x8x128xf32> to vector<8x128xf32>
    %422 = vector.shape_cast %418 : vector<8x128xf32> to vector<1x8x128xf32>
    tpu.vector_store %arg18[%419, %c0_128, %c0_129], %422 {strides = array<i32>} : memref<8x8x128xf32, #tpu.memory_space<vmem>>, vector<1x8x128xf32>,
    %c8_i32 = arith.constant 8 : i32
    %c0_130 = arith.constant 0 : index
    %c0_131 = arith.constant 0 : index
    %c0_132 = arith.constant 0 : index
    %423 = vector.load %arg19[%c0_130, %c0_131, %c0_132] : memref<2x8x128xf32, #tpu.memory_space<vmem>>, vector<1x8x128xf32>
    %424 = vector.shape_cast %423 : vector<1x8x128xf32> to vector<8x128xf32>
    %425 = vector.shape_cast %418 : vector<8x128xf32> to vector<1x8x128xf32>
    tpu.vector_store %arg19[%c0_130, %c0_131, %c0_132], %425 {strides = array<i32>} : memref<2x8x128xf32, #tpu.memory_space<vmem>>, vector<1x8x128xf32>,
    %c0_133 = arith.constant 0 : index
    %c0_134 = arith.constant 0 : index
    %c0_135 = arith.constant 0 : index
    %426 = vector.load %arg18[%c0_133, %c0_134, %c0_135] : memref<8x8x128xf32, #tpu.memory_space<vmem>>, vector<8x8x128xf32>
    %427 = vector.shape_cast %426 : vector<8x8x128xf32> to vector<64x128xf32>
    %428 = arith.truncf %427 : vector<64x128xf32> to vector<64x128xbf16>
    %c1 = arith.constant 1 : index
    %c0_136 = arith.constant 0 : index
    %c0_137 = arith.constant 0 : index
    %429 = vector.load %arg12[%c1, %c0_136, %c0_137] : memref<2x128x384xbf16, #tpu.memory_space<vmem>>, vector<1x128x384xbf16>
    %430 = vector.shape_cast %429 : vector<1x128x384xbf16> to vector<128x384xbf16>
    %cst_138 = arith.constant dense<0.000000e+00> : vector<64x384xf32>
    %431 = tpu.matmul %428, %430, %cst_138 {dimension_numbers = #tpu.dot_dimension_numbers<[1], [0], [0], [1], [0, 0, 1, 1], [], []>} : vector<64x128xbf16>, vector<128x384xbf16>, vector<64x384xf32> -> vector<64x384xf32>
    %c1_139 = arith.constant 1 : index
    %c0_140 = arith.constant 0 : index
    %c0_141 = arith.constant 0 : index
    %432 = vector.load %arg14[%c1_139, %c0_140, %c0_141] : memref<2x1x384xf32, #tpu.memory_space<vmem>>, vector<1x1x384xf32>
    %433 = vector.shape_cast %432 : vector<1x1x384xf32> to vector<1x384xf32>
    %434 = vector.broadcast %433 : vector<1x384xf32> to vector<64x384xf32>
    %435 = arith.addf %431, %434 : vector<64x384xf32>
    %436 = vector.shape_cast %435 : vector<64x384xf32> to vector<8x8x384xf32>
    %c0_142 = arith.constant 0 : index
    %c0_143 = arith.constant 0 : index
    %c0_144 = arith.constant 0 : index
    %437 = vector.load %arg20[%c0_142, %c0_143, %c0_144] : memref<8x8x384xf32, #tpu.memory_space<vmem>>, vector<8x8x384xf32>
    tpu.vector_store %arg20[%c0_142, %c0_143, %c0_144], %436 {strides = array<i32>} : memref<8x8x384xf32, #tpu.memory_space<vmem>>, vector<8x8x384xf32>,
    %c1_145 = arith.constant 1 : index
    %c0_146 = arith.constant 0 : index
    %c0_147 = arith.constant 0 : index
    %438 = vector.load %arg13[%c1_145, %c0_146, %c0_147] : memref<2x128x384xbf16, #tpu.memory_space<vmem>>, vector<1x128x384xbf16>
    %439 = vector.shape_cast %438 : vector<1x128x384xbf16> to vector<128x384xbf16>
    %c1_148 = arith.constant 1 : index
    %c0_149 = arith.constant 0 : index
    %c0_150 = arith.constant 0 : index
    %440 = vector.load %arg15[%c1_148, %c0_149, %c0_150] : memref<2x1x128xf32, #tpu.memory_space<vmem>>, vector<1x1x128xf32>
    %441 = vector.shape_cast %440 : vector<1x1x128xf32> to vector<1x128xf32>
    %c1_151 = arith.constant 1 : index
    %c0_152 = arith.constant 0 : index
    %c0_153 = arith.constant 0 : index
    %442 = vector.load %arg3[%c1_151, %c0_152, %c0_153] : memref<2x8x128xf32, #tpu.memory_space<vmem>>, vector<1x8x128xf32>
    %443 = vector.shape_cast %442 : vector<1x8x128xf32> to vector<8x128xf32>
    %c0_i32_154 = arith.constant 0 : i32
    %444 = arith.index_cast %c0_i32_154 : i32 to index
    %c0_155 = arith.constant 0 : index
    %c0_156 = arith.constant 0 : index
    %445 = vector.load %arg2[%444, %c0_155, %c0_156] : memref<8x8x1xf32, #tpu.memory_space<vmem>>, vector<1x8x1xf32>
    %446 = vector.shape_cast %445 : vector<1x8x1xf32> to vector<8x1xf32>
    %447 = vector.broadcast %446 : vector<8x1xf32> to vector<8x128xf32>
    %448 = arith.mulf %443, %447 : vector<8x128xf32>
    %449 = arith.index_cast %c0_i32_154 : i32 to index
    %c0_157 = arith.constant 0 : index
    %c0_158 = arith.constant 0 : index
    %450 = vector.load %arg20[%449, %c0_157, %c0_158] : memref<8x8x384xf32, #tpu.memory_space<vmem>>, vector<1x8x384xf32>
    %451 = vector.shape_cast %450 : vector<1x8x384xf32> to vector<8x384xf32>
    %452 = arith.truncf %448 : vector<8x128xf32> to vector<8x128xbf16>
    %cst_159 = arith.constant dense<0.000000e+00> : vector<8x384xf32>
    %453 = tpu.matmul %452, %439, %cst_159 {dimension_numbers = #tpu.dot_dimension_numbers<[1], [0], [0], [1], [0, 0, 1, 1], [], []>} : vector<8x128xbf16>, vector<128x384xbf16>, vector<8x384xf32> -> vector<8x384xf32>
    %454 = vector.extract_strided_slice %451 {offsets = [0, 0], sizes = [8, 128], strides = [1, 1]} : vector<8x384xf32> to vector<8x128xf32>
    %455 = vector.extract_strided_slice %453 {offsets = [0, 0], sizes = [8, 128], strides = [1, 1]} : vector<8x384xf32> to vector<8x128xf32>
    %456 = arith.addf %454, %455 : vector<8x128xf32>
    %457 = arith.negf %456 : vector<8x128xf32>
    %458 = math.exp %457 : vector<8x128xf32>
    %cst_160 = arith.constant 1.000000e+00 : f32
    %459 = vector.broadcast %cst_160 : f32 to vector<8x128xf32>
    %460 = arith.addf %459, %458 : vector<8x128xf32>
    %461 = arith.divf %459, %460 : vector<8x128xf32>
    %462 = vector.extract_strided_slice %451 {offsets = [0, 128], sizes = [8, 128], strides = [1, 1]} : vector<8x384xf32> to vector<8x128xf32>
    %463 = vector.extract_strided_slice %453 {offsets = [0, 128], sizes = [8, 128], strides = [1, 1]} : vector<8x384xf32> to vector<8x128xf32>
    %464 = arith.addf %462, %463 : vector<8x128xf32>
    %465 = arith.negf %464 : vector<8x128xf32>
    %466 = math.exp %465 : vector<8x128xf32>
    %cst_161 = arith.constant 1.000000e+00 : f32
    %467 = vector.broadcast %cst_161 : f32 to vector<8x128xf32>
    %468 = arith.addf %467, %466 : vector<8x128xf32>
    %469 = arith.divf %467, %468 : vector<8x128xf32>
    %470 = vector.extract_strided_slice %451 {offsets = [0, 256], sizes = [8, 128], strides = [1, 1]} : vector<8x384xf32> to vector<8x128xf32>
    %471 = vector.extract_strided_slice %453 {offsets = [0, 256], sizes = [8, 128], strides = [1, 1]} : vector<8x384xf32> to vector<8x128xf32>
    %472 = vector.broadcast %441 : vector<1x128xf32> to vector<8x128xf32>
    %473 = arith.addf %471, %472 : vector<8x128xf32>
    %474 = arith.mulf %461, %473 : vector<8x128xf32>
    %475 = arith.addf %470, %474 : vector<8x128xf32>
    %476 = math.tanh %475 : vector<8x128xf32>
    %cst_162 = arith.constant 1.000000e+00 : f32
    %477 = vector.broadcast %cst_162 : f32 to vector<8x128xf32>
    %478 = arith.subf %477, %469 : vector<8x128xf32>
    %479 = arith.mulf %478, %476 : vector<8x128xf32>
    %480 = arith.mulf %469, %448 : vector<8x128xf32>
    %481 = arith.addf %479, %480 : vector<8x128xf32>
    %482 = arith.index_cast %c0_i32_154 : i32 to index
    %c0_163 = arith.constant 0 : index
    %c0_164 = arith.constant 0 : index
    %483 = vector.load %arg18[%482, %c0_163, %c0_164] : memref<8x8x128xf32, #tpu.memory_space<vmem>>, vector<1x8x128xf32>
    %484 = vector.shape_cast %483 : vector<1x8x128xf32> to vector<8x128xf32>
    %485 = vector.shape_cast %481 : vector<8x128xf32> to vector<1x8x128xf32>
    tpu.vector_store %arg18[%482, %c0_163, %c0_164], %485 {strides = array<i32>} : memref<8x8x128xf32, #tpu.memory_space<vmem>>, vector<1x8x128xf32>,
    %c1_i32_165 = arith.constant 1 : i32
    %486 = arith.index_cast %c1_i32_165 : i32 to index
    %c0_166 = arith.constant 0 : index
    %c0_167 = arith.constant 0 : index
    %487 = vector.load %arg2[%486, %c0_166, %c0_167] : memref<8x8x1xf32, #tpu.memory_space<vmem>>, vector<1x8x1xf32>
    %488 = vector.shape_cast %487 : vector<1x8x1xf32> to vector<8x1xf32>
    %489 = vector.broadcast %488 : vector<8x1xf32> to vector<8x128xf32>
    %490 = arith.mulf %481, %489 : vector<8x128xf32>
    %491 = arith.index_cast %c1_i32_165 : i32 to index
    %c0_168 = arith.constant 0 : index
    %c0_169 = arith.constant 0 : index
    %492 = vector.load %arg20[%491, %c0_168, %c0_169] : memref<8x8x384xf32, #tpu.memory_space<vmem>>, vector<1x8x384xf32>
    %493 = vector.shape_cast %492 : vector<1x8x384xf32> to vector<8x384xf32>
    %494 = arith.truncf %490 : vector<8x128xf32> to vector<8x128xbf16>
    %cst_170 = arith.constant dense<0.000000e+00> : vector<8x384xf32>
    %495 = tpu.matmul %494, %439, %cst_170 {dimension_numbers = #tpu.dot_dimension_numbers<[1], [0], [0], [1], [0, 0, 1, 1], [], []>} : vector<8x128xbf16>, vector<128x384xbf16>, vector<8x384xf32> -> vector<8x384xf32>
    %496 = vector.extract_strided_slice %493 {offsets = [0, 0], sizes = [8, 128], strides = [1, 1]} : vector<8x384xf32> to vector<8x128xf32>
    %497 = vector.extract_strided_slice %495 {offsets = [0, 0], sizes = [8, 128], strides = [1, 1]} : vector<8x384xf32> to vector<8x128xf32>
    %498 = arith.addf %496, %497 : vector<8x128xf32>
    %499 = arith.negf %498 : vector<8x128xf32>
    %500 = math.exp %499 : vector<8x128xf32>
    %cst_171 = arith.constant 1.000000e+00 : f32
    %501 = vector.broadcast %cst_171 : f32 to vector<8x128xf32>
    %502 = arith.addf %501, %500 : vector<8x128xf32>
    %503 = arith.divf %501, %502 : vector<8x128xf32>
    %504 = vector.extract_strided_slice %493 {offsets = [0, 128], sizes = [8, 128], strides = [1, 1]} : vector<8x384xf32> to vector<8x128xf32>
    %505 = vector.extract_strided_slice %495 {offsets = [0, 128], sizes = [8, 128], strides = [1, 1]} : vector<8x384xf32> to vector<8x128xf32>
    %506 = arith.addf %504, %505 : vector<8x128xf32>
    %507 = arith.negf %506 : vector<8x128xf32>
    %508 = math.exp %507 : vector<8x128xf32>
    %cst_172 = arith.constant 1.000000e+00 : f32
    %509 = vector.broadcast %cst_172 : f32 to vector<8x128xf32>
    %510 = arith.addf %509, %508 : vector<8x128xf32>
    %511 = arith.divf %509, %510 : vector<8x128xf32>
    %512 = vector.extract_strided_slice %493 {offsets = [0, 256], sizes = [8, 128], strides = [1, 1]} : vector<8x384xf32> to vector<8x128xf32>
    %513 = vector.extract_strided_slice %495 {offsets = [0, 256], sizes = [8, 128], strides = [1, 1]} : vector<8x384xf32> to vector<8x128xf32>
    %514 = vector.broadcast %441 : vector<1x128xf32> to vector<8x128xf32>
    %515 = arith.addf %513, %514 : vector<8x128xf32>
    %516 = arith.mulf %503, %515 : vector<8x128xf32>
    %517 = arith.addf %512, %516 : vector<8x128xf32>
    %518 = math.tanh %517 : vector<8x128xf32>
    %cst_173 = arith.constant 1.000000e+00 : f32
    %519 = vector.broadcast %cst_173 : f32 to vector<8x128xf32>
    %520 = arith.subf %519, %511 : vector<8x128xf32>
    %521 = arith.mulf %520, %518 : vector<8x128xf32>
    %522 = arith.mulf %511, %490 : vector<8x128xf32>
    %523 = arith.addf %521, %522 : vector<8x128xf32>
    %524 = arith.index_cast %c1_i32_165 : i32 to index
    %c0_174 = arith.constant 0 : index
    %c0_175 = arith.constant 0 : index
    %525 = vector.load %arg18[%524, %c0_174, %c0_175] : memref<8x8x128xf32, #tpu.memory_space<vmem>>, vector<1x8x128xf32>
    %526 = vector.shape_cast %525 : vector<1x8x128xf32> to vector<8x128xf32>
    %527 = vector.shape_cast %523 : vector<8x128xf32> to vector<1x8x128xf32>
    tpu.vector_store %arg18[%524, %c0_174, %c0_175], %527 {strides = array<i32>} : memref<8x8x128xf32, #tpu.memory_space<vmem>>, vector<1x8x128xf32>,
    %c2_i32_176 = arith.constant 2 : i32
    %528 = arith.index_cast %c2_i32_176 : i32 to index
    %c0_177 = arith.constant 0 : index
    %c0_178 = arith.constant 0 : index
    %529 = vector.load %arg2[%528, %c0_177, %c0_178] : memref<8x8x1xf32, #tpu.memory_space<vmem>>, vector<1x8x1xf32>
    %530 = vector.shape_cast %529 : vector<1x8x1xf32> to vector<8x1xf32>
    %531 = vector.broadcast %530 : vector<8x1xf32> to vector<8x128xf32>
    %532 = arith.mulf %523, %531 : vector<8x128xf32>
    %533 = arith.index_cast %c2_i32_176 : i32 to index
    %c0_179 = arith.constant 0 : index
    %c0_180 = arith.constant 0 : index
    %534 = vector.load %arg20[%533, %c0_179, %c0_180] : memref<8x8x384xf32, #tpu.memory_space<vmem>>, vector<1x8x384xf32>
    %535 = vector.shape_cast %534 : vector<1x8x384xf32> to vector<8x384xf32>
    %536 = arith.truncf %532 : vector<8x128xf32> to vector<8x128xbf16>
    %cst_181 = arith.constant dense<0.000000e+00> : vector<8x384xf32>
    %537 = tpu.matmul %536, %439, %cst_181 {dimension_numbers = #tpu.dot_dimension_numbers<[1], [0], [0], [1], [0, 0, 1, 1], [], []>} : vector<8x128xbf16>, vector<128x384xbf16>, vector<8x384xf32> -> vector<8x384xf32>
    %538 = vector.extract_strided_slice %535 {offsets = [0, 0], sizes = [8, 128], strides = [1, 1]} : vector<8x384xf32> to vector<8x128xf32>
    %539 = vector.extract_strided_slice %537 {offsets = [0, 0], sizes = [8, 128], strides = [1, 1]} : vector<8x384xf32> to vector<8x128xf32>
    %540 = arith.addf %538, %539 : vector<8x128xf32>
    %541 = arith.negf %540 : vector<8x128xf32>
    %542 = math.exp %541 : vector<8x128xf32>
    %cst_182 = arith.constant 1.000000e+00 : f32
    %543 = vector.broadcast %cst_182 : f32 to vector<8x128xf32>
    %544 = arith.addf %543, %542 : vector<8x128xf32>
    %545 = arith.divf %543, %544 : vector<8x128xf32>
    %546 = vector.extract_strided_slice %535 {offsets = [0, 128], sizes = [8, 128], strides = [1, 1]} : vector<8x384xf32> to vector<8x128xf32>
    %547 = vector.extract_strided_slice %537 {offsets = [0, 128], sizes = [8, 128], strides = [1, 1]} : vector<8x384xf32> to vector<8x128xf32>
    %548 = arith.addf %546, %547 : vector<8x128xf32>
    %549 = arith.negf %548 : vector<8x128xf32>
    %550 = math.exp %549 : vector<8x128xf32>
    %cst_183 = arith.constant 1.000000e+00 : f32
    %551 = vector.broadcast %cst_183 : f32 to vector<8x128xf32>
    %552 = arith.addf %551, %550 : vector<8x128xf32>
    %553 = arith.divf %551, %552 : vector<8x128xf32>
    %554 = vector.extract_strided_slice %535 {offsets = [0, 256], sizes = [8, 128], strides = [1, 1]} : vector<8x384xf32> to vector<8x128xf32>
    %555 = vector.extract_strided_slice %537 {offsets = [0, 256], sizes = [8, 128], strides = [1, 1]} : vector<8x384xf32> to vector<8x128xf32>
    %556 = vector.broadcast %441 : vector<1x128xf32> to vector<8x128xf32>
    %557 = arith.addf %555, %556 : vector<8x128xf32>
    %558 = arith.mulf %545, %557 : vector<8x128xf32>
    %559 = arith.addf %554, %558 : vector<8x128xf32>
    %560 = math.tanh %559 : vector<8x128xf32>
    %cst_184 = arith.constant 1.000000e+00 : f32
    %561 = vector.broadcast %cst_184 : f32 to vector<8x128xf32>
    %562 = arith.subf %561, %553 : vector<8x128xf32>
    %563 = arith.mulf %562, %560 : vector<8x128xf32>
    %564 = arith.mulf %553, %532 : vector<8x128xf32>
    %565 = arith.addf %563, %564 : vector<8x128xf32>
    %566 = arith.index_cast %c2_i32_176 : i32 to index
    %c0_185 = arith.constant 0 : index
    %c0_186 = arith.constant 0 : index
    %567 = vector.load %arg18[%566, %c0_185, %c0_186] : memref<8x8x128xf32, #tpu.memory_space<vmem>>, vector<1x8x128xf32>
    %568 = vector.shape_cast %567 : vector<1x8x128xf32> to vector<8x128xf32>
    %569 = vector.shape_cast %565 : vector<8x128xf32> to vector<1x8x128xf32>
    tpu.vector_store %arg18[%566, %c0_185, %c0_186], %569 {strides = array<i32>} : memref<8x8x128xf32, #tpu.memory_space<vmem>>, vector<1x8x128xf32>,
    %c3_i32_187 = arith.constant 3 : i32
    %570 = arith.index_cast %c3_i32_187 : i32 to index
    %c0_188 = arith.constant 0 : index
    %c0_189 = arith.constant 0 : index
    %571 = vector.load %arg2[%570, %c0_188, %c0_189] : memref<8x8x1xf32, #tpu.memory_space<vmem>>, vector<1x8x1xf32>
    %572 = vector.shape_cast %571 : vector<1x8x1xf32> to vector<8x1xf32>
    %573 = vector.broadcast %572 : vector<8x1xf32> to vector<8x128xf32>
    %574 = arith.mulf %565, %573 : vector<8x128xf32>
    %575 = arith.index_cast %c3_i32_187 : i32 to index
    %c0_190 = arith.constant 0 : index
    %c0_191 = arith.constant 0 : index
    %576 = vector.load %arg20[%575, %c0_190, %c0_191] : memref<8x8x384xf32, #tpu.memory_space<vmem>>, vector<1x8x384xf32>
    %577 = vector.shape_cast %576 : vector<1x8x384xf32> to vector<8x384xf32>
    %578 = arith.truncf %574 : vector<8x128xf32> to vector<8x128xbf16>
    %cst_192 = arith.constant dense<0.000000e+00> : vector<8x384xf32>
    %579 = tpu.matmul %578, %439, %cst_192 {dimension_numbers = #tpu.dot_dimension_numbers<[1], [0], [0], [1], [0, 0, 1, 1], [], []>} : vector<8x128xbf16>, vector<128x384xbf16>, vector<8x384xf32> -> vector<8x384xf32>
    %580 = vector.extract_strided_slice %577 {offsets = [0, 0], sizes = [8, 128], strides = [1, 1]} : vector<8x384xf32> to vector<8x128xf32>
    %581 = vector.extract_strided_slice %579 {offsets = [0, 0], sizes = [8, 128], strides = [1, 1]} : vector<8x384xf32> to vector<8x128xf32>
    %582 = arith.addf %580, %581 : vector<8x128xf32>
    %583 = arith.negf %582 : vector<8x128xf32>
    %584 = math.exp %583 : vector<8x128xf32>
    %cst_193 = arith.constant 1.000000e+00 : f32
    %585 = vector.broadcast %cst_193 : f32 to vector<8x128xf32>
    %586 = arith.addf %585, %584 : vector<8x128xf32>
    %587 = arith.divf %585, %586 : vector<8x128xf32>
    %588 = vector.extract_strided_slice %577 {offsets = [0, 128], sizes = [8, 128], strides = [1, 1]} : vector<8x384xf32> to vector<8x128xf32>
    %589 = vector.extract_strided_slice %579 {offsets = [0, 128], sizes = [8, 128], strides = [1, 1]} : vector<8x384xf32> to vector<8x128xf32>
    %590 = arith.addf %588, %589 : vector<8x128xf32>
    %591 = arith.negf %590 : vector<8x128xf32>
    %592 = math.exp %591 : vector<8x128xf32>
    %cst_194 = arith.constant 1.000000e+00 : f32
    %593 = vector.broadcast %cst_194 : f32 to vector<8x128xf32>
    %594 = arith.addf %593, %592 : vector<8x128xf32>
    %595 = arith.divf %593, %594 : vector<8x128xf32>
    %596 = vector.extract_strided_slice %577 {offsets = [0, 256], sizes = [8, 128], strides = [1, 1]} : vector<8x384xf32> to vector<8x128xf32>
    %597 = vector.extract_strided_slice %579 {offsets = [0, 256], sizes = [8, 128], strides = [1, 1]} : vector<8x384xf32> to vector<8x128xf32>
    %598 = vector.broadcast %441 : vector<1x128xf32> to vector<8x128xf32>
    %599 = arith.addf %597, %598 : vector<8x128xf32>
    %600 = arith.mulf %587, %599 : vector<8x128xf32>
    %601 = arith.addf %596, %600 : vector<8x128xf32>
    %602 = math.tanh %601 : vector<8x128xf32>
    %cst_195 = arith.constant 1.000000e+00 : f32
    %603 = vector.broadcast %cst_195 : f32 to vector<8x128xf32>
    %604 = arith.subf %603, %595 : vector<8x128xf32>
    %605 = arith.mulf %604, %602 : vector<8x128xf32>
    %606 = arith.mulf %595, %574 : vector<8x128xf32>
    %607 = arith.addf %605, %606 : vector<8x128xf32>
    %608 = arith.index_cast %c3_i32_187 : i32 to index
    %c0_196 = arith.constant 0 : index
    %c0_197 = arith.constant 0 : index
    %609 = vector.load %arg18[%608, %c0_196, %c0_197] : memref<8x8x128xf32, #tpu.memory_space<vmem>>, vector<1x8x128xf32>
    %610 = vector.shape_cast %609 : vector<1x8x128xf32> to vector<8x128xf32>
    %611 = vector.shape_cast %607 : vector<8x128xf32> to vector<1x8x128xf32>
    tpu.vector_store %arg18[%608, %c0_196, %c0_197], %611 {strides = array<i32>} : memref<8x8x128xf32, #tpu.memory_space<vmem>>, vector<1x8x128xf32>,
    %c4_i32_198 = arith.constant 4 : i32
    %612 = arith.index_cast %c4_i32_198 : i32 to index
    %c0_199 = arith.constant 0 : index
    %c0_200 = arith.constant 0 : index
    %613 = vector.load %arg2[%612, %c0_199, %c0_200] : memref<8x8x1xf32, #tpu.memory_space<vmem>>, vector<1x8x1xf32>
    %614 = vector.shape_cast %613 : vector<1x8x1xf32> to vector<8x1xf32>
    %615 = vector.broadcast %614 : vector<8x1xf32> to vector<8x128xf32>
    %616 = arith.mulf %607, %615 : vector<8x128xf32>
    %617 = arith.index_cast %c4_i32_198 : i32 to index
    %c0_201 = arith.constant 0 : index
    %c0_202 = arith.constant 0 : index
    %618 = vector.load %arg20[%617, %c0_201, %c0_202] : memref<8x8x384xf32, #tpu.memory_space<vmem>>, vector<1x8x384xf32>
    %619 = vector.shape_cast %618 : vector<1x8x384xf32> to vector<8x384xf32>
    %620 = arith.truncf %616 : vector<8x128xf32> to vector<8x128xbf16>
    %cst_203 = arith.constant dense<0.000000e+00> : vector<8x384xf32>
    %621 = tpu.matmul %620, %439, %cst_203 {dimension_numbers = #tpu.dot_dimension_numbers<[1], [0], [0], [1], [0, 0, 1, 1], [], []>} : vector<8x128xbf16>, vector<128x384xbf16>, vector<8x384xf32> -> vector<8x384xf32>
    %622 = vector.extract_strided_slice %619 {offsets = [0, 0], sizes = [8, 128], strides = [1, 1]} : vector<8x384xf32> to vector<8x128xf32>
    %623 = vector.extract_strided_slice %621 {offsets = [0, 0], sizes = [8, 128], strides = [1, 1]} : vector<8x384xf32> to vector<8x128xf32>
    %624 = arith.addf %622, %623 : vector<8x128xf32>
    %625 = arith.negf %624 : vector<8x128xf32>
    %626 = math.exp %625 : vector<8x128xf32>
    %cst_204 = arith.constant 1.000000e+00 : f32
    %627 = vector.broadcast %cst_204 : f32 to vector<8x128xf32>
    %628 = arith.addf %627, %626 : vector<8x128xf32>
    %629 = arith.divf %627, %628 : vector<8x128xf32>
    %630 = vector.extract_strided_slice %619 {offsets = [0, 128], sizes = [8, 128], strides = [1, 1]} : vector<8x384xf32> to vector<8x128xf32>
    %631 = vector.extract_strided_slice %621 {offsets = [0, 128], sizes = [8, 128], strides = [1, 1]} : vector<8x384xf32> to vector<8x128xf32>
    %632 = arith.addf %630, %631 : vector<8x128xf32>
    %633 = arith.negf %632 : vector<8x128xf32>
    %634 = math.exp %633 : vector<8x128xf32>
    %cst_205 = arith.constant 1.000000e+00 : f32
    %635 = vector.broadcast %cst_205 : f32 to vector<8x128xf32>
    %636 = arith.addf %635, %634 : vector<8x128xf32>
    %637 = arith.divf %635, %636 : vector<8x128xf32>
    %638 = vector.extract_strided_slice %619 {offsets = [0, 256], sizes = [8, 128], strides = [1, 1]} : vector<8x384xf32> to vector<8x128xf32>
    %639 = vector.extract_strided_slice %621 {offsets = [0, 256], sizes = [8, 128], strides = [1, 1]} : vector<8x384xf32> to vector<8x128xf32>
    %640 = vector.broadcast %441 : vector<1x128xf32> to vector<8x128xf32>
    %641 = arith.addf %639, %640 : vector<8x128xf32>
    %642 = arith.mulf %629, %641 : vector<8x128xf32>
    %643 = arith.addf %638, %642 : vector<8x128xf32>
    %644 = math.tanh %643 : vector<8x128xf32>
    %cst_206 = arith.constant 1.000000e+00 : f32
    %645 = vector.broadcast %cst_206 : f32 to vector<8x128xf32>
    %646 = arith.subf %645, %637 : vector<8x128xf32>
    %647 = arith.mulf %646, %644 : vector<8x128xf32>
    %648 = arith.mulf %637, %616 : vector<8x128xf32>
    %649 = arith.addf %647, %648 : vector<8x128xf32>
    %650 = arith.index_cast %c4_i32_198 : i32 to index
    %c0_207 = arith.constant 0 : index
    %c0_208 = arith.constant 0 : index
    %651 = vector.load %arg18[%650, %c0_207, %c0_208] : memref<8x8x128xf32, #tpu.memory_space<vmem>>, vector<1x8x128xf32>
    %652 = vector.shape_cast %651 : vector<1x8x128xf32> to vector<8x128xf32>
    %653 = vector.shape_cast %649 : vector<8x128xf32> to vector<1x8x128xf32>
    tpu.vector_store %arg18[%650, %c0_207, %c0_208], %653 {strides = array<i32>} : memref<8x8x128xf32, #tpu.memory_space<vmem>>, vector<1x8x128xf32>,
    %c5_i32_209 = arith.constant 5 : i32
    %654 = arith.index_cast %c5_i32_209 : i32 to index
    %c0_210 = arith.constant 0 : index
    %c0_211 = arith.constant 0 : index
    %655 = vector.load %arg2[%654, %c0_210, %c0_211] : memref<8x8x1xf32, #tpu.memory_space<vmem>>, vector<1x8x1xf32>
    %656 = vector.shape_cast %655 : vector<1x8x1xf32> to vector<8x1xf32>
    %657 = vector.broadcast %656 : vector<8x1xf32> to vector<8x128xf32>
    %658 = arith.mulf %649, %657 : vector<8x128xf32>
    %659 = arith.index_cast %c5_i32_209 : i32 to index
    %c0_212 = arith.constant 0 : index
    %c0_213 = arith.constant 0 : index
    %660 = vector.load %arg20[%659, %c0_212, %c0_213] : memref<8x8x384xf32, #tpu.memory_space<vmem>>, vector<1x8x384xf32>
    %661 = vector.shape_cast %660 : vector<1x8x384xf32> to vector<8x384xf32>
    %662 = arith.truncf %658 : vector<8x128xf32> to vector<8x128xbf16>
    %cst_214 = arith.constant dense<0.000000e+00> : vector<8x384xf32>
    %663 = tpu.matmul %662, %439, %cst_214 {dimension_numbers = #tpu.dot_dimension_numbers<[1], [0], [0], [1], [0, 0, 1, 1], [], []>} : vector<8x128xbf16>, vector<128x384xbf16>, vector<8x384xf32> -> vector<8x384xf32>
    %664 = vector.extract_strided_slice %661 {offsets = [0, 0], sizes = [8, 128], strides = [1, 1]} : vector<8x384xf32> to vector<8x128xf32>
    %665 = vector.extract_strided_slice %663 {offsets = [0, 0], sizes = [8, 128], strides = [1, 1]} : vector<8x384xf32> to vector<8x128xf32>
    %666 = arith.addf %664, %665 : vector<8x128xf32>
    %667 = arith.negf %666 : vector<8x128xf32>
    %668 = math.exp %667 : vector<8x128xf32>
    %cst_215 = arith.constant 1.000000e+00 : f32
    %669 = vector.broadcast %cst_215 : f32 to vector<8x128xf32>
    %670 = arith.addf %669, %668 : vector<8x128xf32>
    %671 = arith.divf %669, %670 : vector<8x128xf32>
    %672 = vector.extract_strided_slice %661 {offsets = [0, 128], sizes = [8, 128], strides = [1, 1]} : vector<8x384xf32> to vector<8x128xf32>
    %673 = vector.extract_strided_slice %663 {offsets = [0, 128], sizes = [8, 128], strides = [1, 1]} : vector<8x384xf32> to vector<8x128xf32>
    %674 = arith.addf %672, %673 : vector<8x128xf32>
    %675 = arith.negf %674 : vector<8x128xf32>
    %676 = math.exp %675 : vector<8x128xf32>
    %cst_216 = arith.constant 1.000000e+00 : f32
    %677 = vector.broadcast %cst_216 : f32 to vector<8x128xf32>
    %678 = arith.addf %677, %676 : vector<8x128xf32>
    %679 = arith.divf %677, %678 : vector<8x128xf32>
    %680 = vector.extract_strided_slice %661 {offsets = [0, 256], sizes = [8, 128], strides = [1, 1]} : vector<8x384xf32> to vector<8x128xf32>
    %681 = vector.extract_strided_slice %663 {offsets = [0, 256], sizes = [8, 128], strides = [1, 1]} : vector<8x384xf32> to vector<8x128xf32>
    %682 = vector.broadcast %441 : vector<1x128xf32> to vector<8x128xf32>
    %683 = arith.addf %681, %682 : vector<8x128xf32>
    %684 = arith.mulf %671, %683 : vector<8x128xf32>
    %685 = arith.addf %680, %684 : vector<8x128xf32>
    %686 = math.tanh %685 : vector<8x128xf32>
    %cst_217 = arith.constant 1.000000e+00 : f32
    %687 = vector.broadcast %cst_217 : f32 to vector<8x128xf32>
    %688 = arith.subf %687, %679 : vector<8x128xf32>
    %689 = arith.mulf %688, %686 : vector<8x128xf32>
    %690 = arith.mulf %679, %658 : vector<8x128xf32>
    %691 = arith.addf %689, %690 : vector<8x128xf32>
    %692 = arith.index_cast %c5_i32_209 : i32 to index
    %c0_218 = arith.constant 0 : index
    %c0_219 = arith.constant 0 : index
    %693 = vector.load %arg18[%692, %c0_218, %c0_219] : memref<8x8x128xf32, #tpu.memory_space<vmem>>, vector<1x8x128xf32>
    %694 = vector.shape_cast %693 : vector<1x8x128xf32> to vector<8x128xf32>
    %695 = vector.shape_cast %691 : vector<8x128xf32> to vector<1x8x128xf32>
    tpu.vector_store %arg18[%692, %c0_218, %c0_219], %695 {strides = array<i32>} : memref<8x8x128xf32, #tpu.memory_space<vmem>>, vector<1x8x128xf32>,
    %c6_i32_220 = arith.constant 6 : i32
    %696 = arith.index_cast %c6_i32_220 : i32 to index
    %c0_221 = arith.constant 0 : index
    %c0_222 = arith.constant 0 : index
    %697 = vector.load %arg2[%696, %c0_221, %c0_222] : memref<8x8x1xf32, #tpu.memory_space<vmem>>, vector<1x8x1xf32>
    %698 = vector.shape_cast %697 : vector<1x8x1xf32> to vector<8x1xf32>
    %699 = vector.broadcast %698 : vector<8x1xf32> to vector<8x128xf32>
    %700 = arith.mulf %691, %699 : vector<8x128xf32>
    %701 = arith.index_cast %c6_i32_220 : i32 to index
    %c0_223 = arith.constant 0 : index
    %c0_224 = arith.constant 0 : index
    %702 = vector.load %arg20[%701, %c0_223, %c0_224] : memref<8x8x384xf32, #tpu.memory_space<vmem>>, vector<1x8x384xf32>
    %703 = vector.shape_cast %702 : vector<1x8x384xf32> to vector<8x384xf32>
    %704 = arith.truncf %700 : vector<8x128xf32> to vector<8x128xbf16>
    %cst_225 = arith.constant dense<0.000000e+00> : vector<8x384xf32>
    %705 = tpu.matmul %704, %439, %cst_225 {dimension_numbers = #tpu.dot_dimension_numbers<[1], [0], [0], [1], [0, 0, 1, 1], [], []>} : vector<8x128xbf16>, vector<128x384xbf16>, vector<8x384xf32> -> vector<8x384xf32>
    %706 = vector.extract_strided_slice %703 {offsets = [0, 0], sizes = [8, 128], strides = [1, 1]} : vector<8x384xf32> to vector<8x128xf32>
    %707 = vector.extract_strided_slice %705 {offsets = [0, 0], sizes = [8, 128], strides = [1, 1]} : vector<8x384xf32> to vector<8x128xf32>
    %708 = arith.addf %706, %707 : vector<8x128xf32>
    %709 = arith.negf %708 : vector<8x128xf32>
    %710 = math.exp %709 : vector<8x128xf32>
    %cst_226 = arith.constant 1.000000e+00 : f32
    %711 = vector.broadcast %cst_226 : f32 to vector<8x128xf32>
    %712 = arith.addf %711, %710 : vector<8x128xf32>
    %713 = arith.divf %711, %712 : vector<8x128xf32>
    %714 = vector.extract_strided_slice %703 {offsets = [0, 128], sizes = [8, 128], strides = [1, 1]} : vector<8x384xf32> to vector<8x128xf32>
    %715 = vector.extract_strided_slice %705 {offsets = [0, 128], sizes = [8, 128], strides = [1, 1]} : vector<8x384xf32> to vector<8x128xf32>
    %716 = arith.addf %714, %715 : vector<8x128xf32>
    %717 = arith.negf %716 : vector<8x128xf32>
    %718 = math.exp %717 : vector<8x128xf32>
    %cst_227 = arith.constant 1.000000e+00 : f32
    %719 = vector.broadcast %cst_227 : f32 to vector<8x128xf32>
    %720 = arith.addf %719, %718 : vector<8x128xf32>
    %721 = arith.divf %719, %720 : vector<8x128xf32>
    %722 = vector.extract_strided_slice %703 {offsets = [0, 256], sizes = [8, 128], strides = [1, 1]} : vector<8x384xf32> to vector<8x128xf32>
    %723 = vector.extract_strided_slice %705 {offsets = [0, 256], sizes = [8, 128], strides = [1, 1]} : vector<8x384xf32> to vector<8x128xf32>
    %724 = vector.broadcast %441 : vector<1x128xf32> to vector<8x128xf32>
    %725 = arith.addf %723, %724 : vector<8x128xf32>
    %726 = arith.mulf %713, %725 : vector<8x128xf32>
    %727 = arith.addf %722, %726 : vector<8x128xf32>
    %728 = math.tanh %727 : vector<8x128xf32>
    %cst_228 = arith.constant 1.000000e+00 : f32
    %729 = vector.broadcast %cst_228 : f32 to vector<8x128xf32>
    %730 = arith.subf %729, %721 : vector<8x128xf32>
    %731 = arith.mulf %730, %728 : vector<8x128xf32>
    %732 = arith.mulf %721, %700 : vector<8x128xf32>
    %733 = arith.addf %731, %732 : vector<8x128xf32>
    %734 = arith.index_cast %c6_i32_220 : i32 to index
    %c0_229 = arith.constant 0 : index
    %c0_230 = arith.constant 0 : index
    %735 = vector.load %arg18[%734, %c0_229, %c0_230] : memref<8x8x128xf32, #tpu.memory_space<vmem>>, vector<1x8x128xf32>
    %736 = vector.shape_cast %735 : vector<1x8x128xf32> to vector<8x128xf32>
    %737 = vector.shape_cast %733 : vector<8x128xf32> to vector<1x8x128xf32>
    tpu.vector_store %arg18[%734, %c0_229, %c0_230], %737 {strides = array<i32>} : memref<8x8x128xf32, #tpu.memory_space<vmem>>, vector<1x8x128xf32>,
    %c7_i32_231 = arith.constant 7 : i32
    %738 = arith.index_cast %c7_i32_231 : i32 to index
    %c0_232 = arith.constant 0 : index
    %c0_233 = arith.constant 0 : index
    %739 = vector.load %arg2[%738, %c0_232, %c0_233] : memref<8x8x1xf32, #tpu.memory_space<vmem>>, vector<1x8x1xf32>
    %740 = vector.shape_cast %739 : vector<1x8x1xf32> to vector<8x1xf32>
    %741 = vector.broadcast %740 : vector<8x1xf32> to vector<8x128xf32>
    %742 = arith.mulf %733, %741 : vector<8x128xf32>
    %743 = arith.index_cast %c7_i32_231 : i32 to index
    %c0_234 = arith.constant 0 : index
    %c0_235 = arith.constant 0 : index
    %744 = vector.load %arg20[%743, %c0_234, %c0_235] : memref<8x8x384xf32, #tpu.memory_space<vmem>>, vector<1x8x384xf32>
    %745 = vector.shape_cast %744 : vector<1x8x384xf32> to vector<8x384xf32>
    %746 = arith.truncf %742 : vector<8x128xf32> to vector<8x128xbf16>
    %cst_236 = arith.constant dense<0.000000e+00> : vector<8x384xf32>
    %747 = tpu.matmul %746, %439, %cst_236 {dimension_numbers = #tpu.dot_dimension_numbers<[1], [0], [0], [1], [0, 0, 1, 1], [], []>} : vector<8x128xbf16>, vector<128x384xbf16>, vector<8x384xf32> -> vector<8x384xf32>
    %748 = vector.extract_strided_slice %745 {offsets = [0, 0], sizes = [8, 128], strides = [1, 1]} : vector<8x384xf32> to vector<8x128xf32>
    %749 = vector.extract_strided_slice %747 {offsets = [0, 0], sizes = [8, 128], strides = [1, 1]} : vector<8x384xf32> to vector<8x128xf32>
    %750 = arith.addf %748, %749 : vector<8x128xf32>
    %751 = arith.negf %750 : vector<8x128xf32>
    %752 = math.exp %751 : vector<8x128xf32>
    %cst_237 = arith.constant 1.000000e+00 : f32
    %753 = vector.broadcast %cst_237 : f32 to vector<8x128xf32>
    %754 = arith.addf %753, %752 : vector<8x128xf32>
    %755 = arith.divf %753, %754 : vector<8x128xf32>
    %756 = vector.extract_strided_slice %745 {offsets = [0, 128], sizes = [8, 128], strides = [1, 1]} : vector<8x384xf32> to vector<8x128xf32>
    %757 = vector.extract_strided_slice %747 {offsets = [0, 128], sizes = [8, 128], strides = [1, 1]} : vector<8x384xf32> to vector<8x128xf32>
    %758 = arith.addf %756, %757 : vector<8x128xf32>
    %759 = arith.negf %758 : vector<8x128xf32>
    %760 = math.exp %759 : vector<8x128xf32>
    %cst_238 = arith.constant 1.000000e+00 : f32
    %761 = vector.broadcast %cst_238 : f32 to vector<8x128xf32>
    %762 = arith.addf %761, %760 : vector<8x128xf32>
    %763 = arith.divf %761, %762 : vector<8x128xf32>
    %764 = vector.extract_strided_slice %745 {offsets = [0, 256], sizes = [8, 128], strides = [1, 1]} : vector<8x384xf32> to vector<8x128xf32>
    %765 = vector.extract_strided_slice %747 {offsets = [0, 256], sizes = [8, 128], strides = [1, 1]} : vector<8x384xf32> to vector<8x128xf32>
    %766 = vector.broadcast %441 : vector<1x128xf32> to vector<8x128xf32>
    %767 = arith.addf %765, %766 : vector<8x128xf32>
    %768 = arith.mulf %755, %767 : vector<8x128xf32>
    %769 = arith.addf %764, %768 : vector<8x128xf32>
    %770 = math.tanh %769 : vector<8x128xf32>
    %cst_239 = arith.constant 1.000000e+00 : f32
    %771 = vector.broadcast %cst_239 : f32 to vector<8x128xf32>
    %772 = arith.subf %771, %763 : vector<8x128xf32>
    %773 = arith.mulf %772, %770 : vector<8x128xf32>
    %774 = arith.mulf %763, %742 : vector<8x128xf32>
    %775 = arith.addf %773, %774 : vector<8x128xf32>
    %776 = arith.index_cast %c7_i32_231 : i32 to index
    %c0_240 = arith.constant 0 : index
    %c0_241 = arith.constant 0 : index
    %777 = vector.load %arg18[%776, %c0_240, %c0_241] : memref<8x8x128xf32, #tpu.memory_space<vmem>>, vector<1x8x128xf32>
    %778 = vector.shape_cast %777 : vector<1x8x128xf32> to vector<8x128xf32>
    %779 = vector.shape_cast %775 : vector<8x128xf32> to vector<1x8x128xf32>
    tpu.vector_store %arg18[%776, %c0_240, %c0_241], %779 {strides = array<i32>} : memref<8x8x128xf32, #tpu.memory_space<vmem>>, vector<1x8x128xf32>,
    %c8_i32_242 = arith.constant 8 : i32
    %c1_243 = arith.constant 1 : index
    %c0_244 = arith.constant 0 : index
    %c0_245 = arith.constant 0 : index
    %780 = vector.load %arg19[%c1_243, %c0_244, %c0_245] : memref<2x8x128xf32, #tpu.memory_space<vmem>>, vector<1x8x128xf32>
    %781 = vector.shape_cast %780 : vector<1x8x128xf32> to vector<8x128xf32>
    %782 = vector.shape_cast %775 : vector<8x128xf32> to vector<1x8x128xf32>
    tpu.vector_store %arg19[%c1_243, %c0_244, %c0_245], %782 {strides = array<i32>} : memref<2x8x128xf32, #tpu.memory_space<vmem>>, vector<1x8x128xf32>,
    %c0_246 = arith.constant 0 : index
    %c0_247 = arith.constant 0 : index
    %c0_248 = arith.constant 0 : index
    %783 = vector.load %arg18[%c0_246, %c0_247, %c0_248] : memref<8x8x128xf32, #tpu.memory_space<vmem>>, vector<8x8x128xf32>
    %c0_249 = arith.constant 0 : index
    %c0_250 = arith.constant 0 : index
    %784 = vector.load %arg16[%c0_249, %c0_250] : memref<1x128xf32, #tpu.memory_space<vmem>>, vector<1x128xf32>
    %c0_251 = arith.constant 0 : index
    %c0_252 = arith.constant 0 : index
    %785 = vector.load %arg17[%c0_251, %c0_252] : memref<1x128xf32, #tpu.memory_space<vmem>>, vector<1x128xf32>
    %cst_253 = arith.constant dense<0.000000e+00> : vector<8x8xf32>
    %786 = vector.multi_reduction <add>, %783, %cst_253 [2] : vector<8x8x128xf32> to vector<8x8xf32>
    %787 = vector.shape_cast %786 : vector<8x8xf32> to vector<8x8x1xf32>
    %cst_254 = arith.constant 3.200000e+01 : f32
    %788 = vector.broadcast %cst_254 : f32 to vector<8x8x1xf32>
    %789 = arith.divf %787, %788 : vector<8x8x1xf32>
    %790 = vector.broadcast %789 : vector<8x8x1xf32> to vector<8x8x128xf32>
    %791 = arith.subf %783, %790 : vector<8x8x128xf32>
    %792 = vector.shape_cast %4 : vector<1x128xf32> to vector<1x1x128xf32>
    %793 = vector.broadcast %792 : vector<1x1x128xf32> to vector<8x8x128xf32>
    %794 = arith.mulf %791, %793 : vector<8x8x128xf32>
    %795 = arith.mulf %794, %794 : vector<8x8x128xf32>
    %cst_255 = arith.constant dense<0.000000e+00> : vector<8x8xf32>
    %796 = vector.multi_reduction <add>, %795, %cst_255 [2] : vector<8x8x128xf32> to vector<8x8xf32>
    %797 = vector.shape_cast %796 : vector<8x8xf32> to vector<8x8x1xf32>
    %cst_256 = arith.constant 3.200000e+01 : f32
    %798 = vector.broadcast %cst_256 : f32 to vector<8x8x1xf32>
    %799 = arith.divf %797, %798 : vector<8x8x1xf32>
    %cst_257 = arith.constant 9.99999974E-6 : f32
    %800 = vector.broadcast %cst_257 : f32 to vector<8x8x1xf32>
    %801 = arith.addf %799, %800 : vector<8x8x1xf32>
    %802 = math.rsqrt %801 : vector<8x8x1xf32>
    %803 = vector.broadcast %802 : vector<8x8x1xf32> to vector<8x8x128xf32>
    %804 = arith.mulf %794, %803 : vector<8x8x128xf32>
    %805 = vector.shape_cast %784 : vector<1x128xf32> to vector<1x1x128xf32>
    %806 = vector.broadcast %805 : vector<1x1x128xf32> to vector<8x8x128xf32>
    %807 = arith.mulf %804, %806 : vector<8x8x128xf32>
    %808 = vector.shape_cast %785 : vector<1x128xf32> to vector<1x1x128xf32>
    %809 = vector.broadcast %808 : vector<1x1x128xf32> to vector<8x8x128xf32>
    %810 = arith.addf %807, %809 : vector<8x8x128xf32>
    %c0_258 = arith.constant 0 : index
    %c0_259 = arith.constant 0 : index
    %c0_260 = arith.constant 0 : index
    %811 = vector.load %arg18[%c0_258, %c0_259, %c0_260] : memref<8x8x128xf32, #tpu.memory_space<vmem>>, vector<8x8x128xf32>
    tpu.vector_store %arg18[%c0_258, %c0_259, %c0_260], %810 {strides = array<i32>} : memref<8x8x128xf32, #tpu.memory_space<vmem>>, vector<8x8x128xf32>,
    return
  }
  func.func @transform_0(%arg0: i32) -> (i32, i32, i32) {
    %c0_i32 = arith.constant 0 : i32
    %c0_i32_0 = arith.constant 0 : i32
    %c0_i32_1 = arith.constant 0 : i32
    return %c0_i32, %arg0, %c0_i32_0 : i32, i32, i32
  }
  func.func @transform_1(%arg0: i32) -> (i32, i32, i32) {
    %c0_i32 = arith.constant 0 : i32
    %c0_i32_0 = arith.constant 0 : i32
    %c0_i32_1 = arith.constant 0 : i32
    return %c0_i32, %arg0, %c0_i32_0 : i32, i32, i32
  }
  func.func @transform_2(%arg0: i32) -> (i32, i32, i32) {
    %c0_i32 = arith.constant 0 : i32
    %c0_i32_0 = arith.constant 0 : i32
    %c0_i32_1 = arith.constant 0 : i32
    return %c0_i32, %arg0, %c0_i32_0 : i32, i32, i32
  }
  func.func @transform_3(%arg0: i32) -> (i32, i32) {
    %c0_i32 = arith.constant 0 : i32
    %c0_i32_0 = arith.constant 0 : i32
    %c0_i32_1 = arith.constant 0 : i32
    return %c0_i32, %c0_i32_0 : i32, i32
  }
  func.func @transform_4(%arg0: i32) -> (i32, i32) {
    %c0_i32 = arith.constant 0 : i32
    %c0_i32_0 = arith.constant 0 : i32
    %c0_i32_1 = arith.constant 0 : i32
    return %c0_i32, %c0_i32_0 : i32, i32
  }
  func.func @transform_5(%arg0: i32) -> (i32, i32) {
    %c0_i32 = arith.constant 0 : i32
    %c0_i32_0 = arith.constant 0 : i32
    %c0_i32_1 = arith.constant 0 : i32
    return %c0_i32, %c0_i32_0 : i32, i32
  }
  func.func @transform_6(%arg0: i32) -> (i32, i32) {
    %c0_i32 = arith.constant 0 : i32
    %c0_i32_0 = arith.constant 0 : i32
    %c0_i32_1 = arith.constant 0 : i32
    return %c0_i32, %c0_i32_0 : i32, i32
  }
  func.func @transform_7(%arg0: i32) -> (i32, i32) {
    %c0_i32 = arith.constant 0 : i32
    %c0_i32_0 = arith.constant 0 : i32
    %c0_i32_1 = arith.constant 0 : i32
    return %c0_i32, %c0_i32_0 : i32, i32
  }
  func.func @transform_8(%arg0: i32) -> (i32, i32) {
    %c0_i32 = arith.constant 0 : i32
    %c0_i32_0 = arith.constant 0 : i32
    %c0_i32_1 = arith.constant 0 : i32
    return %c0_i32, %c0_i32_0 : i32, i32
  }
  func.func @transform_9(%arg0: i32) -> (i32, i32) {
    %c0_i32 = arith.constant 0 : i32
    %c0_i32_0 = arith.constant 0 : i32
    %c0_i32_1 = arith.constant 0 : i32
    return %c0_i32, %c0_i32_0 : i32, i32
  }
  func.func @transform_10(%arg0: i32) -> (i32, i32) {
    %c0_i32 = arith.constant 0 : i32
    %c0_i32_0 = arith.constant 0 : i32
    %c0_i32_1 = arith.constant 0 : i32
    return %c0_i32, %c0_i32_0 : i32, i32
  }
  func.func @transform_11(%arg0: i32) -> (i32, i32, i32) {
    %c0_i32 = arith.constant 0 : i32
    %c0_i32_0 = arith.constant 0 : i32
    %c0_i32_1 = arith.constant 0 : i32
    %c0_i32_2 = arith.constant 0 : i32
    return %c0_i32, %c0_i32_0, %c0_i32_1 : i32, i32, i32
  }
  func.func @transform_12(%arg0: i32) -> (i32, i32, i32) {
    %c0_i32 = arith.constant 0 : i32
    %c0_i32_0 = arith.constant 0 : i32
    %c0_i32_1 = arith.constant 0 : i32
    %c0_i32_2 = arith.constant 0 : i32
    return %c0_i32, %c0_i32_0, %c0_i32_1 : i32, i32, i32
  }
  func.func @transform_13(%arg0: i32) -> (i32, i32, i32) {
    %c0_i32 = arith.constant 0 : i32
    %c0_i32_0 = arith.constant 0 : i32
    %c0_i32_1 = arith.constant 0 : i32
    %c0_i32_2 = arith.constant 0 : i32
    return %c0_i32, %c0_i32_0, %c0_i32_1 : i32, i32, i32
  }
  func.func @transform_14(%arg0: i32) -> (i32, i32, i32) {
    %c0_i32 = arith.constant 0 : i32
    %c0_i32_0 = arith.constant 0 : i32
    %c0_i32_1 = arith.constant 0 : i32
    %c0_i32_2 = arith.constant 0 : i32
    return %c0_i32, %c0_i32_0, %c0_i32_1 : i32, i32, i32
  }
  func.func @transform_15(%arg0: i32) -> (i32, i32) {
    %c0_i32 = arith.constant 0 : i32
    %c0_i32_0 = arith.constant 0 : i32
    %c0_i32_1 = arith.constant 0 : i32
    return %c0_i32, %c0_i32_0 : i32, i32
  }
  func.func @transform_16(%arg0: i32) -> (i32, i32) {
    %c0_i32 = arith.constant 0 : i32
    %c0_i32_0 = arith.constant 0 : i32
    %c0_i32_1 = arith.constant 0 : i32
    return %c0_i32, %c0_i32_0 : i32, i32
  }
  func.func @transform_17(%arg0: i32) -> (i32, i32, i32) {
    %c0_i32 = arith.constant 0 : i32
    %c0_i32_0 = arith.constant 0 : i32
    %c0_i32_1 = arith.constant 0 : i32
    return %c0_i32, %arg0, %c0_i32_0 : i32, i32, i32
  }
  func.func @transform_18(%arg0: i32) -> (i32, i32, i32) {
    %c0_i32 = arith.constant 0 : i32
    %c0_i32_0 = arith.constant 0 : i32
    %c0_i32_1 = arith.constant 0 : i32
    return %c0_i32, %arg0, %c0_i32_0 : i32, i32, i32
  }
}

</mosaic_0001>

<bundles_post_ra>
// kernel: tpu_custom_call.1
= control target key start
LH: loop header
LB: loop body
LE: loop exit
PB: predicated region body
PF: predicated region fallthrough
CT: control target
= control target key end

     0   :  { %s6542_s0 = inlined_call_operand.vmem [shape: f32[8,8,128], index: 0, kind: input, shape index: {}]   ;;  %s6543_s1 = inlined_call_operand.vmem [shape: f32[8,8,1], index: 1, kind: input, shape index: {}]   ;;  %s6544_s2 = inlined_call_operand.hbm [shape: f32[2,8,128], index: 2, kind: input, shape index: {}]   ;;  %s6545_s3 = inlined_call_operand.hbm [shape: bf16[128,128], index: 3, kind: input, shape index: {}]   ;;  %s6546_s4 = inlined_call_operand.vmem [shape: f32[1,128], index: 4, kind: input, shape index: {}]   ;;  %s6547_s5 = inlined_call_operand.vmem [shape: f32[1,128], index: 5, kind: input, shape index: {}]   ;;  %s6548_s6 = inlined_call_operand.vmem [shape: f32[1,128], index: 6, kind: input, shape index: {}]   ;;  %s6549_s7 = inlined_call_operand.hbm [shape: bf16[128,128], index: 7, kind: input, shape index: {}]   ;;  %s6550_s8 = inlined_call_operand.vmem [shape: f32[1,128], index: 8, kind: input, shape index: {}]   ;;  %s6551_s9 = inlined_call_operand.vmem [shape: f32[1,128], index: 9, kind: input, shape index: {}]   ;;  %s6552_s10 = inlined_call_operand.vmem [shape: f32[1,128], index: 10, kind: input, shape index: {}]   ;;  %s6553_s11 = inlined_call_operand.hbm [shape: bf16[2,128,384], index: 11, kind: input, shape index: {}]   ;;  %s6554_s12 = inlined_call_operand.hbm [shape: bf16[2,128,384], index: 12, kind: input, shape index: {}]   ;;  %s6555_s13 = inlined_call_operand.vmem [shape: f32[2,1,384], index: 13, kind: input, shape index: {}]   ;;  %s6556_s14 = inlined_call_operand.vmem [shape: f32[2,1,128], index: 14, kind: input, shape index: {}]   ;;  %s6557_s15 = inlined_call_operand.vmem [shape: f32[1,128], index: 15, kind: input, shape index: {}]   ;;  %s6558_s16 = inlined_call_operand.vmem [shape: f32[1,128], index: 16, kind: input, shape index: {}]   ;;  %s6559_s17 = inlined_call_operand.hbm [shape: f32[8,8,128], index: 17, kind: output, shape index: {0}]   ;;  %s6560_s18 = inlined_call_operand.hbm [shape: f32[2,8,128], index: 18, kind: output, shape index: {1}]  }
   0x1   :  { %6579 = sst [smem:[#allocation28_spill]] %s6542_s0 }
   0x2   :  { %6580 = sst [smem:[#allocation29_spill]] %s6543_s1 }
   0x3   :  { %6581 = sst [smem:[#allocation30_spill]] %s6544_s2 }
   0x4   :  { %24 = vsyncpa [#allocation4], 0 }
   0x5   :  { %25 = vsyncpa [#allocation7], 0 }
   0x6   :  { %26 = vsyncpa [#allocation10], 0 }
   0x7   :  { %27 = vsyncpa [#allocation5], 0 }
   0x8   :  { %28 = vsyncpa [#allocation14], 0  ;;  %s5130_s27 = smov [#allocation6]   ;;  %s4966_s0 = scalar_lea.hbm %s6545_s3, 1024 }
   0x9   :  { %s50_s28 = sshll.u32 %s5130_s27, 4  ;;  %p4967_p0 = scmp.ne.s32.totalorder %s6545_s3, %s4966_s0  ;;  %s51_s28 = int_to_ptr.vmem [resolvable:$true] %s50_s28 }
   0xa   :  { %p4970_p1 = scmp.lt.u32.totalorder %s4966_s0, %s6545_s3 }
   0xc   :  { %p4972_p2 = pnand %p4970_p1, %p4967_p0 }
   0xe   :  { %4975 = shalt.err (!%p4972_p2)
}
   0xf   :  { %s4976_s22 = scalar_lea.vmem %s51_s28, 1024  ;;  %p4981_p4 = scmp.lt.s32.totalorder %s51_s28, %s51_s28 }
  0x10   :  { %p4977_p3 = scmp.ne.s32.totalorder %s51_s28, %s4976_s22  ;;  %p4982_p5 = scmp.lt.s32.totalorder %s4976_s22, %s4976_s22 }
  0x12   :  { %p4983_p6 = por %p4982_p5, %p4981_p4 }
  0x14   :  { %p4984_p7 = pnand %p4983_p6, %p4977_p3 }
  0x16   :  { %4987 = shalt.err (!%p4984_p7)
}
  0x17   :  { %s6564_s2 = smov 64   ;;  %s6565_s23 = smov 4  }
  0x18   :  { %56 = dma.hbm_to_vmem [thread:$0]  %s6545_s3, 1024, %s51_s28, [#allocation7], %s6564_s2, %s6564_s2, %s6565_s23  }
  0x19   :  { %s5133_s26 = smov [#allocation9]   ;;  %s4988_s0 = scalar_lea.hbm %s6553_s11, 6144 }
  0x1a   :  { %s86_s27 = sshll.u32 %s5133_s26, 4  ;;  %p4989_p8 = scmp.ne.s32.totalorder %s6553_s11, %s4988_s0  ;;  %s87_s27 = int_to_ptr.vmem [resolvable:$true] %s86_s27 }
  0x1b   :  { %p4992_p9 = scmp.lt.u32.totalorder %s4988_s0, %s6553_s11 }
  0x1d   :  { %p4994_p10 = pnand %p4992_p9, %p4989_p8 }
  0x1f   :  { %4997 = shalt.err (!%p4994_p10)
}
  0x20   :  { %s4998_s22 = scalar_lea.vmem %s87_s27, 6144  ;;  %p5003_p12 = scmp.lt.s32.totalorder %s87_s27, %s87_s27 }
  0x21   :  { %p4999_p11 = scmp.ne.s32.totalorder %s87_s27, %s4998_s22  ;;  %p5004_p13 = scmp.lt.s32.totalorder %s4998_s22, %s4998_s22 }
  0x23   :  { %p5005_p0 = por %p5004_p13, %p5003_p12 }
  0x25   :  { %p5006_p1 = pnand %p5005_p0, %p4999_p11 }
  0x27   :  { %5009 = shalt.err (!%p5006_p1)
}
  0x28   :  { %s6566_s3 = smov 192   ;;  %s6567_s28 = smov 12  }
  0x29   :  { %92 = dma.hbm_to_vmem [thread:$0]  %s6553_s11, 6144, %s87_s27, [#allocation10], %s6566_s3, %s6566_s3, %s6567_s28  }
  0x2a   :  { %s5136_s26 = smov [#allocation3]   ;;  %s6582_s19 = sld [smem:[#allocation30_spill]] }
  0x2b   :  { %s38_s29 = sshll.u32 %s5136_s26, 4  ;;  %s39_s29 = int_to_ptr.vmem [resolvable:$true] %s38_s29 }
  0x30   :  { %s5010_s1 = scalar_lea.hbm %s6582_s19, 256 }
  0x31   :  { %p5011_p2 = scmp.ne.s32.totalorder %s6582_s19, %s5010_s1  ;;  %p5014_p3 = scmp.lt.u32.totalorder %s5010_s1, %s6582_s19 }
  0x33   :  { %p5016_p4 = pnand %p5014_p3, %p5011_p2 }
  0x35   :  { %5019 = shalt.err (!%p5016_p4)
}
  0x36   :  { %s5020_s23 = scalar_lea.vmem %s39_s29, 256  ;;  %p5025_p6 = scmp.lt.s32.totalorder %s39_s29, %s39_s29 }
  0x37   :  { %p5021_p5 = scmp.ne.s32.totalorder %s39_s29, %s5020_s23  ;;  %p5026_p7 = scmp.lt.s32.totalorder %s5020_s23, %s5020_s23 }
  0x39   :  { %p5027_p8 = por %p5026_p7, %p5025_p6 }
  0x3b   :  { %p5028_p9 = pnand %p5027_p8, %p5021_p5 }
  0x3d   :  { %5031 = shalt.err (!%p5028_p9)
}
  0x3e   :  { %s5137_s11 = smov 128   ;;  %s5138_s27 = smov 8  }
  0x3f   :  { %44 = dma.hbm_to_vmem [thread:$0]  %s6582_s19, 256, %s39_s29, [#allocation4], %s5137_s11, %s5137_s11, %s5138_s27  }
  0x40   :  { %s5139_s2 = smov [#allocation8]   ;;  %s5140_s30 = smov [#allocation11]  }
  0x41   :  { %s68_s26 = sshll.u32 %s5139_s2, 4  ;;  %s98_s0 = sshll.u32 %s5140_s30, 4  ;;  %s69_s26 = int_to_ptr.vmem [resolvable:$true] %s68_s26  ;;  %s99_s0 = int_to_ptr.vmem [resolvable:$true] %s98_s0 }
  0x42   :  { %s5032_s23 = scalar_lea.hbm %s6549_s7, 1024 }
  0x43   :  { %p5033_p10 = scmp.ne.s32.totalorder %s6549_s7, %s5032_s23  ;;  %p5036_p11 = scmp.lt.u32.totalorder %s5032_s23, %s6549_s7 }
  0x45   :  { %p5038_p12 = pnand %p5036_p11, %p5033_p10 }
  0x47   :  { %5041 = shalt.err (!%p5038_p12)
}
  0x48   :  { %s5042_s29 = scalar_lea.vmem %s69_s26, 1024  ;;  %p5047_p0 = scmp.lt.s32.totalorder %s69_s26, %s69_s26 }
  0x49   :  { %p5043_p13 = scmp.ne.s32.totalorder %s69_s26, %s5042_s29  ;;  %p5048_p1 = scmp.lt.s32.totalorder %s5042_s29, %s5042_s29 }
  0x4b   :  { %p5049_p2 = por %p5048_p1, %p5047_p0 }
  0x4d   :  { %p5050_p3 = pnand %p5049_p2, %p5043_p13 }
  0x4f   :  { %5053 = shalt.err (!%p5050_p3)
}
  0x50   :  { %s6583_s19 = smov 4   ;;  %s6584_s24 = smov 64  }
  0x51   :  { %74 = dma.hbm_to_vmem [thread:$0]  %s6549_s7, 1024, %s69_s26, [#allocation7], %s6584_s24, %s6584_s24, %s6583_s19  }
  0x52   :  { %s5054_s28 = scalar_lea.hbm %s6554_s12, 6144 }
  0x53   :  { %p5055_p4 = scmp.ne.s32.totalorder %s6554_s12, %s5054_s28  ;;  %p5058_p5 = scmp.lt.u32.totalorder %s5054_s28, %s6554_s12 }
  0x55   :  { %p5060_p6 = pnand %p5058_p5, %p5055_p4 }
  0x57   :  { %5063 = shalt.err (!%p5060_p6)
}
  0x58   :  { %s5064_s22 = scalar_lea.vmem %s99_s0, 6144  ;;  %p5069_p8 = scmp.lt.s32.totalorder %s99_s0, %s99_s0 }
  0x59   :  { %p5065_p7 = scmp.ne.s32.totalorder %s99_s0, %s5064_s22  ;;  %p5070_p9 = scmp.lt.s32.totalorder %s5064_s22, %s5064_s22 }
  0x5b   :  { %p5071_p10 = por %p5070_p9, %p5069_p8 }
  0x5d   :  { %p5072_p11 = pnand %p5071_p10, %p5065_p7 }
  0x5f   :  { %5075 = shalt.err (!%p5072_p11)
}
  0x60   :  { %s6585_s7 = smov 12   ;;  %s6586_s26 = smov 192  }
  0x61   :  { %104 = dma.hbm_to_vmem [thread:$0]  %s6554_s12, 6144, %s99_s0, [#allocation10], %s6586_s26, %s6586_s26, %s6585_s7  }
  0x62   :  { %5120 = dma.done.wait [#allocation4], 256  }
  0x63   :  { %5121 = vsyncadd [#allocation4], 4294967040 }
  0x64   :  { %5122 = dma.done.wait [#allocation7], 2048  }
  0x65   :  { %5123 = vsyncadd [#allocation7], 4294965248 }
  0x66   :  { %5124 = dma.done.wait [#allocation10], 12288  }
  0x67   :  { %5125 = vsyncadd [#allocation10], 4294955008  ;;  %v4564_v0 = vld [vmem:[#allocation6] sm:$0xff]   ;;  %v4565_v1 = vld [vmem:[#allocation6 + $0x8] sm:$0xff]   ;;  %s6587_s2 = sld [smem:[#allocation28_spill]]  ;;  %v129_v46 = vlaneseq  ;;  %v6573_v52 = vmov 0.0  }
  0x68   :  { %4130 = vmatprep.subr.bf16.mxu0 %v4564_v0  ;;  %v4566_v2 = vld [vmem:[#allocation6 + $0x10] sm:$0xff]   ;;  %v4567_v3 = vld [vmem:[#allocation6 + $0x18] sm:$0xff]   ;;  %v4568_v7 = vld [vmem:[#allocation6 + $0x20] sm:$0xff]   ;;  %s6589_s3 = sld [smem:[#allocation29_spill]]  ;;  %vm5143_vm1 = vmmov 0  }
  0x69   :  { %4131 = vmatpush3.bf16.msra.mxu0 %v4564_v0  ;;  %v4569_v8 = vld [vmem:[#allocation6 + $0x28] sm:$0xff]   ;;  %v4570_v9 = vld [vmem:[#allocation6 + $0x30] sm:$0xff]   ;;  %v4571_v10 = vld [vmem:[#allocation6 + $0x38] sm:$0xff]   ;;  %v130_v47 = vand.u32 127, %v129_v46 }
  0x6a   :  { %4132 = vmatprep.subr.bf16.mxu0 %v4565_v1  ;;  %v3768_v20 = vld [vmem:[%s6546_s4] ss:$0 sm:$0xff]  ;;  %v4572_v45 = vld [vmem:[#allocation8] sm:$0xff]  }
  0x6b   :  { %4154 = vmatprep.subr.bf16.mxu1 %v4572_v45  ;;  %vm131_vm0 = vcmp.lt.s32.totalorder %v130_v47, 32 }
  0x6c   :  { %4155 = vmatpush3.bf16.msra.mxu1 %v4572_v45  ;;  %v5345_v53 = vsel %vm131_vm0, 1.0, %v6573_v52 }
  0x6d   :  { %4133 = vmatpush3.bf16.msra.mxu0 %v4565_v1  ;;  %v134_v4 = vld [vmem:[%s6587_s2] sm:$0xff]  ;;  %v135_v5 = vld [vmem:[%s6587_s2 + $0x8] sm:$0xff]  ;;  %v136_v11 = vld [vmem:[%s6587_s2 + $0x10] sm:$0xff]  ;;  %6588 = vst [vmem:[#allocation20_spill] sm:$0xff] %v5345_v53 }
  0x6e   :  { %4134 = vmatprep.subr.bf16.mxu0 %v4566_v2  ;;  %v142_v6 = vpack.c.bf16 %v135_v5, %v134_v4  ;;  %v137_v12 = vld [vmem:[%s6587_s2 + $0x18] sm:$0xff]  ;;  %v138_v13 = vld [vmem:[%s6587_s2 + $0x20] sm:$0xff]  ;;  %v139_v14 = vld [vmem:[%s6587_s2 + $0x28] sm:$0xff] }
  0x6f   :  { %v143_v15 = vpack.c.bf16 %v137_v12, %v136_v11  ;;  %v144_v16 = vpack.c.bf16 %v139_v14, %v138_v13  ;;  %v140_v17 = vld [vmem:[%s6587_s2 + $0x30] sm:$0xff]  ;;  %v141_v18 = vld [vmem:[%s6587_s2 + $0x38] sm:$0xff] }
  0x70   :  { %4146 = vmatprep.mubr.bf16.mxu0 %v142_v6  ;;  %v145_v19 = vpack.c.bf16 %v141_v18, %v140_v17 }
  0x71   :  { %4135 = vmatpush3.bf16.msra.mxu0 %v4566_v2 }
  0x72   :  { %4136 = vmatprep.subr.bf16.mxu0 %v4567_v3 }
  0x75   :  { %4137 = vmatpush3.bf16.msra.mxu0 %v4567_v3 }
  0x76   :  { %4138 = vmatprep.subr.bf16.mxu0 %v4568_v7 }
  0x79   :  { %4139 = vmatpush3.bf16.msra.mxu0 %v4568_v7 }
  0x7a   :  { %4140 = vmatprep.subr.bf16.mxu0 %v4569_v8 }
  0x7d   :  { %4141 = vmatpush3.bf16.msra.mxu0 %v4569_v8 }
  0x7e   :  { %4142 = vmatprep.subr.bf16.mxu0 %v4570_v9 }
  0x81   :  { %4143 = vmatpush3.bf16.msra.mxu0 %v4570_v9 }
  0x82   :  { %4144 = vmatprep.subr.bf16.mxu0 %v4571_v10 }
  0x85   :  { %4145 = vmatpush3.bf16.msra.mxu0 %v4571_v10 }
  0x88   :  { %4147 = vmatmul.mubr.bf16.vlgmr.msra.gmra.mrb[0].mxu0 %v143_v15 }
  0x89   :  { %4150 = vmatprep.mubr.bf16.mxu0 %v144_v16 }
  0x90   :  { %4151 = vmatmul.mubr.bf16.gmra.mrb[4].mxu0 %v145_v19 }
 0x15b   :  { %v4148_v21 = vpop.f32.mrb[0].mxu0 }
 0x15c   :  { %v260_v22 = vadd.f32 %v4148_v21, %v3768_v20  ;;  %v251_v23 = vpop.f32.mrb[1].mxu0 }
 0x15d   :  { %v252_v24 = vadd.f32 %v3768_v20, %v251_v23  ;;  %v4149_v25 = vpop.f32.mrb[2].mxu0 }
 0x15e   :  { %v284_v26 = vmax.f32 %v260_v22, 0.0  ;;  %v263_v27 = vadd.f32 %v4149_v25, %v3768_v20  ;;  %v254_v28 = vpop.f32.mrb[3].mxu0 }
 0x15f   :  { %v282_v29 = vmax.f32 %v252_v24, 0.0  ;;  %v255_v30 = vadd.f32 %v3768_v20, %v254_v28  ;;  %v4575_v28 = vld [vmem:[#allocation8 + $0x18] sm:$0xff]  }
 0x160   :  { %296 = vadd.xlane.f32.xlu1 %v284_v26  ;;  %v285_v31 = vmax.f32 %v263_v27, 0.0  ;;  %v4574_v27 = vld [vmem:[#allocation8 + $0x10] sm:$0xff]  }
 0x161   :  { %292 = vadd.xlane.f32.xlu0 %v282_v29  ;;  %v283_v32 = vmax.f32 %v255_v30, 0.0  ;;  %v4577_v30 = vld [vmem:[#allocation8 + $0x28] sm:$0xff]  }
 0x163   :  { %v4152_v33 = vpop.f32.mrb[4].mxu0 }
 0x164   :  { %298 = vadd.xlane.f32.xlu1 %v285_v31  ;;  %v267_v34 = vpop.f32.mrb[5].mxu0  ;;  %v276_v35 = vadd.f32 %v4152_v33, %v3768_v20 }
 0x165   :  { %v268_v36 = vadd.f32 %v3768_v20, %v267_v34  ;;  %v4153_v37 = vpop.f32.mrb[6].mxu0  ;;  %294 = vadd.xlane.f32.xlu0 %v283_v32 }
 0x166   :  { %v270_v38 = vpop.f32.mrb[7].mxu0  ;;  %v279_v40 = vadd.f32 %v4153_v37, %v3768_v20  ;;  %v288_v42 = vmax.f32 %v276_v35, 0.0 }
 0x167   :  { %v286_v39 = vmax.f32 %v268_v36, 0.0  ;;  %v271_v41 = vadd.f32 %v3768_v20, %v270_v38 }
 0x168   :  { %v289_v44 = vmax.f32 %v279_v40, 0.0 }
 0x169   :  { %v287_v43 = vmax.f32 %v271_v41, 0.0  ;;  %300 = vadd.xlane.f32.xlu0 %v286_v39 }
 0x16b   :  { %302 = vadd.xlane.f32.xlu1 %v287_v43 }
 0x16d   :  { %304 = vadd.xlane.f32.xlu0 %v288_v42 }
 0x16f   :  { %306 = vadd.xlane.f32.xlu1 %v289_v44 }
 0x1ed   :  { %v297_v48 = vpop.xlane.xlu1 %296 }
 0x1ee   :  { %v311_v49 = vmul.f32 0.03125, %v297_v48  ;;  %v293_v50 = vpop.xlane.xlu0 %292 }
 0x1ef   :  { %v309_v51 = vmul.f32 0.03125, %v293_v50 }
 0x1f0   :  { %v319_v54 = vsub.f32 %v284_v26, %v311_v49  ;;  %v4573_v26 = vld [vmem:[#allocation8 + $0x8] sm:$0xff]  }
 0x1f1   :  { %v317_v55 = vsub.f32 %v282_v29, %v309_v51  ;;  %v299_v56 = vpop.xlane.xlu1 %298  ;;  %4156 = vmatprep.subr.bf16.mxu1 %v4573_v26  ;;  %v4576_v29 = vld [vmem:[#allocation8 + $0x20] sm:$0xff]  }
 0x1f2   :  { %v312_v57 = vmul.f32 0.03125, %v299_v56  ;;  %v295_v58 = vpop.xlane.xlu0 %294  ;;  %v5353_v0 = vmul.f32 %v5345_v53, %v319_v54  ;;  %4157 = vmatpush3.bf16.msra.mxu1 %v4573_v26 }
 0x1f3   :  { %v310_v59 = vmul.f32 0.03125, %v295_v58  ;;  %v5348_v60 = vmul.f32 %v5345_v53, %v317_v55  ;;  %4158 = vmatprep.subr.bf16.mxu1 %v4574_v27 }
 0x1f4   :  { %v320_v61 = vsub.f32 %v285_v31, %v312_v57  ;;  %v335_v8 = vmul.f32 %v5353_v0, %v5353_v0  ;;  %v4578_v31 = vld [vmem:[#allocation8 + $0x30] sm:$0xff]  }
 0x1f5   :  { %v318_v62 = vsub.f32 %v283_v32, %v310_v59  ;;  %v333_v63 = vmul.f32 %v5348_v60, %v5348_v60  ;;  %v4579_v32 = vld [vmem:[#allocation8 + $0x38] sm:$0xff]  }
 0x1f6   :  { %v301_v1 = vpop.xlane.xlu0 %300  ;;  %v5359_v5 = vmul.f32 %v5345_v53, %v320_v61  ;;  %4159 = vmatpush3.bf16.msra.mxu1 %v4574_v27 }
 0x1f7   :  { %v313_v2 = vmul.f32 0.03125, %v301_v1  ;;  %341 = vadd.xlane.f32.xlu0 %v333_v63  ;;  %v5356_v3 = vmul.f32 %v5345_v53, %v318_v62  ;;  %4160 = vmatprep.subr.bf16.mxu1 %v4575_v28  ;;  %v3777_v62 = vld [vmem:[%s6547_s5] ss:$0 sm:$0xff] }
 0x1f8   :  { %v303_v4 = vpop.xlane.xlu1 %302  ;;  %v336_v15 = vmul.f32 %v5359_v5, %v5359_v5 }
 0x1f9   :  { %v321_v6 = vsub.f32 %v286_v39, %v313_v2  ;;  %v314_v7 = vmul.f32 0.03125, %v303_v4  ;;  %v334_v9 = vmul.f32 %v5356_v3, %v5356_v3 }
 0x1fa   :  { %v305_v10 = vpop.xlane.xlu0 %304  ;;  %4161 = vmatpush3.bf16.msra.mxu1 %v4575_v28 }
 0x1fb   :  { %v322_v11 = vsub.f32 %v287_v43, %v314_v7  ;;  %v315_v12 = vmul.f32 0.03125, %v305_v10  ;;  %345 = vadd.xlane.f32.xlu0 %v335_v8  ;;  %343 = vadd.xlane.f32.xlu1 %v334_v9  ;;  %v5366_v13 = vmul.f32 %v5345_v53, %v321_v6  ;;  %v3778_v7 = vld [vmem:[%s6548_s6] ss:$0 sm:$0xff] }
 0x1fc   :  { %v307_v14 = vpop.xlane.xlu1 %306  ;;  %4162 = vmatprep.subr.bf16.mxu1 %v4576_v29 }
 0x1fd   :  { %v323_v16 = vsub.f32 %v288_v42, %v315_v12  ;;  %v316_v17 = vmul.f32 0.03125, %v307_v14  ;;  %v337_v18 = vmul.f32 %v5366_v13, %v5366_v13  ;;  %v5373_v19 = vmul.f32 %v5345_v53, %v322_v11 }
 0x1fe   :  { %4163 = vmatpush3.bf16.msra.mxu1 %v4576_v29 }
 0x1ff   :  { %v324_v20 = vsub.f32 %v289_v44, %v316_v17  ;;  %347 = vadd.xlane.f32.xlu1 %v336_v15  ;;  %349 = vadd.xlane.f32.xlu0 %v337_v18  ;;  %v5376_v21 = vmul.f32 %v5345_v53, %v323_v16  ;;  %v338_v22 = vmul.f32 %v5373_v19, %v5373_v19 }
 0x200   :  { %4164 = vmatprep.subr.bf16.mxu1 %v4577_v30 }
 0x201   :  { %v339_v23 = vmul.f32 %v5376_v21, %v5376_v21  ;;  %v5383_v24 = vmul.f32 %v5345_v53, %v324_v20 }
 0x202   :  { %4165 = vmatpush3.bf16.msra.mxu1 %v4577_v30 }
 0x203   :  { %351 = vadd.xlane.f32.xlu1 %v338_v22  ;;  %353 = vadd.xlane.f32.xlu0 %v339_v23  ;;  %v340_v25 = vmul.f32 %v5383_v24, %v5383_v24 }
 0x204   :  { %4166 = vmatprep.subr.bf16.mxu1 %v4578_v31 }
 0x206   :  { %4167 = vmatpush3.bf16.msra.mxu1 %v4578_v31 }
 0x207   :  { %355 = vadd.xlane.f32.xlu1 %v340_v25  ;;  %4168 = vmatprep.subr.bf16.mxu1 %v4579_v32 }
 0x20a   :  { %4169 = vmatpush3.bf16.msra.mxu1 %v4579_v32 }
 0x284   :  { %v342_v33 = vpop.xlane.xlu0 %341 }
 0x285   :  { %v357_v34 = vmul.f32 0.03125, %v342_v33 }
 0x287   :  { %v365_v35 = vadd.f32 1e-05, %v357_v34 }
 0x288   :  { %v344_v36 = vpop.xlane.xlu1 %343  ;;  %v346_v37 = vpop.xlane.xlu0 %345 }
 0x289   :  { %4708 = vrsqrt.f32 %v365_v35  ;;  %v358_v38 = vmul.f32 0.03125, %v344_v36  ;;  %v359_v39 = vmul.f32 0.03125, %v346_v37 }
 0x28b   :  { %v366_v40 = vadd.f32 1e-05, %v358_v38  ;;  %v367_v41 = vadd.f32 1e-05, %v359_v39 }
 0x28c   :  { %v348_v42 = vpop.xlane.xlu1 %347  ;;  %v350_v43 = vpop.xlane.xlu0 %349 }
 0x28d   :  { %4710 = vrsqrt.f32 %v366_v40  ;;  %v360_v44 = vmul.f32 0.03125, %v348_v42  ;;  %v361_v45 = vmul.f32 0.03125, %v350_v43 }
 0x28e   :  { %4712 = vrsqrt.f32 %v367_v41 }
 0x28f   :  { %v368_v47 = vadd.f32 1e-05, %v360_v44  ;;  %v369_v48 = vadd.f32 1e-05, %v361_v45 }
 0x290   :  { %v352_v49 = vpop.xlane.xlu1 %351  ;;  %v354_v50 = vpop.xlane.xlu0 %353 }
 0x291   :  { %4714 = vrsqrt.f32 %v368_v47  ;;  %v362_v51 = vmul.f32 0.03125, %v352_v49  ;;  %v363_v54 = vmul.f32 0.03125, %v354_v50 }
 0x292   :  { %4716 = vrsqrt.f32 %v369_v48 }
 0x293   :  { %v4709_v55 = vpop.eup %4708  ;;  %v370_v56 = vadd.f32 1e-05, %v362_v51  ;;  %v371_v57 = vadd.f32 1e-05, %v363_v54 }
 0x294   :  { %v356_v58 = vpop.xlane.xlu1 %355  ;;  %v381_v59 = vmul.f32 %v4709_v55, %v5348_v60 }
 0x295   :  { %4718 = vrsqrt.f32 %v370_v56  ;;  %v364_v61 = vmul.f32 0.03125, %v356_v58 }
 0x296   :  { %4720 = vrsqrt.f32 %v371_v57  ;;  %v395_v6 = vmul.f32 %v3777_v62, %v381_v59 }
 0x297   :  { %v4711_v63 = vpop.eup %4710  ;;  %v372_v1 = vadd.f32 1e-05, %v364_v61 }
 0x298   :  { %v4713_v2 = vpop.eup %4712  ;;  %v382_v4 = vmul.f32 %v4711_v63, %v5356_v3  ;;  %v409_v11 = vadd.f32 %v3778_v7, %v395_v6  ;;  %v6571_v63 = vmov 0   ;;  %v4586_v6 = vld [vmem:[#allocation9 + $0x8] ss:$12 sps:$4 sm:$0xff]  }
 0x299   :  { %4722 = vrsqrt.f32 %v372_v1  ;;  %v383_v60 = vmul.f32 %v4713_v2, %v5353_v0  ;;  %4562 = vset.pattern.permute.xlu0 %v6571_v63  ;;  %904 = vmatprep.mubr.bf16.mxu0 %v6571_v63  ;;  %v4580_v1 = vld [vmem:[#allocation9] ss:$12 sps:$4 sm:$0xff]   ;;  %v4582_v2 = vld [vmem:[#allocation9 + $0x4] ss:$12 sps:$4 sm:$0xff]  }
 0x29a   :  { %v396_v8 = vmul.f32 %v3777_v62, %v382_v4  ;;  %4563 = vset.pattern.permute.xlu1 %v6571_v63  ;;  %v4585_v4 = vld [vmem:[#allocation9 + $0x1c] ss:$12 sps:$4 sm:$0xff]   ;;  %872 = vmatprep.subr.bf16.mxu0 %v4582_v2 }
 0x29b   :  { %v4715_v9 = vpop.eup %4714  ;;  %v397_v15 = vmul.f32 %v3777_v62, %v383_v60  ;;  %873 = vmatpush1.bf16.msra.mxu0 %v4580_v1  ;;  %4178 = vmatprep.subr.bf16.mxu1 %v4586_v6  ;;  %v1068_v1 = vld [vmem:[%s6589_s3] sm:$0xff] }
 0x29c   :  { %v4717_v10 = vpop.eup %4716  ;;  %v410_v12 = vadd.f32 %v3778_v7, %v396_v8  ;;  %v384_v14 = vmul.f32 %v4715_v9, %v5359_v5  ;;  %874 = vmatprep.subr.bf16.mxu0 %v4585_v4  ;;  %v4603_v2 = vld [vmem:[#allocation9 + $0x90] ss:$12 sps:$4 sm:$0xff]   ;;  %v4610_v4 = vld [vmem:[#allocation9 + $0x98] ss:$12 sps:$4 sm:$0xff]  }
 0x29d   :  { %v385_v16 = vmul.f32 %v4717_v10, %v5366_v13  ;;  %v411_v22 = vadd.f32 %v3778_v7, %v397_v15 }
 0x29e   :  { %v417_v17 = vpack.c.bf16 %v410_v12, %v409_v11  ;;  %v398_v3 = vmul.f32 %v3777_v62, %v384_v14 }
 0x29f   :  { %v4719_v18 = vpop.eup %4718  ;;  %v399_v0 = vmul.f32 %v3777_v62, %v385_v16 }
 0x2a0   :  { %v4721_v20 = vpop.eup %4720  ;;  %4170 = vmatprep.mubr.bf16.mxu1 %v417_v17  ;;  %v412_v23 = vadd.f32 %v3778_v7, %v398_v3  ;;  %v386_v25 = vmul.f32 %v4719_v18, %v5373_v19  ;;  %v3779_v19 = vld [vmem:[%s6550_s8] ss:$0 sm:$0xff] }
 0x2a1   :  { %v387_v26 = vmul.f32 %v4721_v20, %v5376_v21  ;;  %v413_v5 = vadd.f32 %v3778_v7, %v399_v0 }
 0x2a2   :  { %v418_v27 = vpack.c.bf16 %v412_v23, %v411_v22  ;;  %v400_v28 = vmul.f32 %v3777_v62, %v386_v25 }
 0x2a3   :  { %v4723_v29 = vpop.eup %4722  ;;  %v401_v31 = vmul.f32 %v3777_v62, %v387_v26 }
 0x2a4   :  { %4171 = vmatmul.mubr.bf16.vlgmr.msra.gmra.mrb[0].mxu1 %v418_v27  ;;  %v414_v30 = vadd.f32 %v3778_v7, %v400_v28  ;;  %v388_v13 = vmul.f32 %v4723_v29, %v5383_v24 }
 0x2a5   :  { %v415_v34 = vadd.f32 %v3778_v7, %v401_v31  ;;  %4179 = vmatpush3.bf16.msra.mxu1 %v4586_v6  ;;  %v4609_v6 = vld [vmem:[#allocation9 + $0xac] ss:$12 sps:$4 sm:$0xff]  }
 0x2a6   :  { %v419_v32 = vpack.c.bf16 %v414_v30, %v413_v5  ;;  %v402_v33 = vmul.f32 %v3777_v62, %v388_v13 }
 0x2a8   :  { %4174 = vmatprep.mubr.bf16.mxu1 %v419_v32  ;;  %v416_v35 = vadd.f32 %v3778_v7, %v402_v33  ;;  %v4583_v7 = vld [vmem:[#allocation9 + $0x18] ss:$12 sps:$4 sm:$0xff]  }
 0x2a9   :  { %875 = vmatpush1.bf16.msra.mxu0 %v4583_v7  ;;  %v4607_v7 = vld [vmem:[#allocation9 + $0xa8] ss:$12 sps:$4 sm:$0xff]  }
 0x2aa   :  { %v420_v36 = vpack.c.bf16 %v416_v35, %v415_v34 }
 0x2ac   :  { %4175 = vmatmul.mubr.bf16.gmra.mrb[4].mxu1 %v420_v36 }
 0x377   :  { %v4172_v21 = vpop.f32.mrb[0].mxu1 }
 0x378   :  { %v526_v37 = vpop.f32.mrb[1].mxu1  ;;  %v535_v41 = vadd.f32 %v4172_v21, %v3779_v19 }
 0x379   :  { %v527_v38 = vadd.f32 %v3779_v19, %v526_v37  ;;  %v4173_v39 = vpop.f32.mrb[2].mxu1 }
 0x37a   :  { %v529_v40 = vpop.f32.mrb[3].mxu1  ;;  %v538_v43 = vadd.f32 %v4173_v39, %v3779_v19  ;;  %v559_v45 = vmax.f32 %v535_v41, 0.0 }
 0x37b   :  { %v557_v42 = vmax.f32 %v527_v38, 0.0  ;;  %v530_v24 = vadd.f32 %v3779_v19, %v529_v40 }
 0x37c   :  { %v560_v49 = vmax.f32 %v538_v43, 0.0 }
 0x37d   :  { %v558_v44 = vmax.f32 %v530_v24, 0.0  ;;  %567 = vadd.xlane.f32.xlu0 %v557_v42 }
 0x37f   :  { %569 = vadd.xlane.f32.xlu1 %v558_v44  ;;  %v4176_v47 = vpop.f32.mrb[4].mxu1 }
 0x380   :  { %v542_v48 = vpop.f32.mrb[5].mxu1  ;;  %v551_v55 = vadd.f32 %v4176_v47, %v3779_v19  ;;  %v4587_v47 = vld [vmem:[#allocation9 + $0x30] ss:$12 sps:$4 sm:$0xff]  }
 0x381   :  { %v543_v50 = vadd.f32 %v3779_v19, %v542_v48  ;;  %571 = vadd.xlane.f32.xlu0 %v559_v45  ;;  %v4177_v51 = vpop.f32.mrb[6].mxu1  ;;  %v4594_v48 = vld [vmem:[#allocation9 + $0x38] ss:$12 sps:$4 sm:$0xff]  }
 0x382   :  { %v545_v54 = vpop.f32.mrb[7].mxu1  ;;  %v554_v58 = vadd.f32 %v4177_v51, %v3779_v19  ;;  %v563_v61 = vmax.f32 %v551_v55, 0.0  ;;  %v4598_v51 = vld [vmem:[#allocation9 + $0x50] ss:$12 sps:$4 sm:$0xff]   ;;  %v4595_v55 = vld [vmem:[#allocation9 + $0x60] ss:$12 sps:$4 sm:$0xff]  }
 0x383   :  { %v561_v56 = vmax.f32 %v543_v50, 0.0  ;;  %v546_v57 = vadd.f32 %v3779_v19, %v545_v54  ;;  %573 = vadd.xlane.f32.xlu1 %v560_v49  ;;  %v4591_v50 = vld [vmem:[#allocation9 + $0x48] ss:$12 sps:$4 sm:$0xff]   ;;  %v4597_v54 = vld [vmem:[#allocation9 + $0x64] ss:$12 sps:$4 sm:$0xff]  }
 0x384   :  { %v564_v62 = vmax.f32 %v554_v58, 0.0  ;;  %v4599_v58 = vld [vmem:[#allocation9 + $0x78] ss:$12 sps:$4 sm:$0xff]  }
 0x385   :  { %v562_v59 = vmax.f32 %v546_v57, 0.0  ;;  %575 = vadd.xlane.f32.xlu0 %v561_v56  ;;  %v4601_v57 = vld [vmem:[#allocation9 + $0x7c] ss:$12 sps:$4 sm:$0xff]  }
 0x387   :  { %577 = vadd.xlane.f32.xlu1 %v562_v59 }
 0x389   :  { %579 = vadd.xlane.f32.xlu0 %v563_v61 }
 0x38b   :  { %581 = vadd.xlane.f32.xlu1 %v564_v62 }
 0x40a   :  { %v568_v60 = vpop.xlane.xlu0 %567 }
 0x40b   :  { %v583_v8 = vmul.f32 0.03125, %v568_v60  ;;  %v4611_v60 = vld [vmem:[#allocation9 + $0xb0] ss:$12 sps:$4 sm:$0xff]  }
 0x40c   :  { %v570_v9 = vpop.xlane.xlu1 %569 }
 0x40d   :  { %v591_v10 = vsub.f32 %v557_v42, %v583_v8  ;;  %v584_v11 = vmul.f32 0.03125, %v570_v9  ;;  %v5453_v8 = vld [vmem:[#allocation11 + $0x4] ss:$12 sps:$4 sm:$0xff]   ;;  %v3921_v9 = vld [vmem:[%s6589_s3 + $0x18] sm:$0xff] }
 0x40e   :  { %v572_v12 = vpop.xlane.xlu0 %571 }
 0x40f   :  { %v592_v14 = vsub.f32 %v558_v44, %v584_v11  ;;  %v585_v15 = vmul.f32 0.03125, %v572_v12  ;;  %v5408_v16 = vmul.f32 %v5345_v53, %v591_v10  ;;  %v4590_v44 = vld [vmem:[#allocation9 + $0x20] ss:$12 sps:$4 sm:$0xff]   ;;  %v3927_v10 = vld [vmem:[%s6589_s3 + $0x28] sm:$0xff] }
 0x410   :  { %v574_v17 = vpop.xlane.xlu1 %573  ;;  %4180 = vmatprep.subr.bf16.mxu1 %v4590_v44  ;;  %v3933_v11 = vld [vmem:[%s6589_s3 + $0x38] sm:$0xff]  ;;  %v3844_v12 = vld [vmem:[%s6589_s3 + $0x10] sm:$0xff] }
 0x411   :  { %v593_v3 = vsub.f32 %v559_v45, %v585_v15  ;;  %v586_v18 = vmul.f32 0.03125, %v574_v17  ;;  %v607_v20 = vmul.f32 %v5408_v16, %v5408_v16  ;;  %v5413_v22 = vmul.f32 %v5345_v53, %v592_v14  ;;  %v4589_v45 = vld [vmem:[#allocation9 + $0x34] ss:$12 sps:$4 sm:$0xff]   ;;  %4181 = vmatpush3.bf16.msra.mxu1 %v4590_v44 }
 0x412   :  { %v576_v23 = vpop.xlane.xlu0 %575  ;;  %876 = vmatprep.subr.bf16.mxu0 %v4589_v45  ;;  %4182 = vmatprep.subr.bf16.mxu1 %v4594_v48  ;;  %v3850_v14 = vld [vmem:[%s6589_s3 + $0x20] sm:$0xff]  ;;  %v3856_v15 = vld [vmem:[%s6589_s3 + $0x30] sm:$0xff] }
 0x413   :  { %v594_v25 = vsub.f32 %v560_v49, %v586_v18  ;;  %v587_v0 = vmul.f32 0.03125, %v576_v23  ;;  %615 = vadd.xlane.f32.xlu0 %v607_v20  ;;  %v608_v26 = vmul.f32 %v5413_v22, %v5413_v22  ;;  %v5418_v27 = vmul.f32 %v5345_v53, %v593_v3  ;;  %877 = vmatpush1.bf16.msra.mxu0 %v4587_v47  ;;  %v4593_v49 = vld [vmem:[#allocation9 + $0x4c] ss:$12 sps:$4 sm:$0xff]  }
 0x414   :  { %v578_v28 = vpop.xlane.xlu1 %577  ;;  %878 = vmatprep.subr.bf16.mxu0 %v4593_v49 }
 0x415   :  { %v595_v29 = vsub.f32 %v561_v56, %v587_v0  ;;  %v588_v5 = vmul.f32 0.03125, %v578_v28  ;;  %617 = vadd.xlane.f32.xlu1 %v608_v26  ;;  %v609_v30 = vmul.f32 %v5418_v27, %v5418_v27  ;;  %v5423_v13 = vmul.f32 %v5345_v53, %v594_v25  ;;  %4183 = vmatpush3.bf16.msra.mxu1 %v4594_v48  ;;  %v4602_v56 = vld [vmem:[#allocation9 + $0x68] ss:$12 sps:$4 sm:$0xff]  }
 0x416   :  { %v580_v31 = vpop.xlane.xlu0 %579  ;;  %4184 = vmatprep.subr.bf16.mxu1 %v4598_v51 }
 0x417   :  { %v596_v32 = vsub.f32 %v562_v59, %v588_v5  ;;  %v589_v33 = vmul.f32 0.03125, %v580_v31  ;;  %619 = vadd.xlane.f32.xlu0 %v609_v30  ;;  %v610_v34 = vmul.f32 %v5423_v13, %v5423_v13  ;;  %v5428_v35 = vmul.f32 %v5345_v53, %v595_v29  ;;  %879 = vmatpush1.bf16.msra.mxu0 %v4591_v50  ;;  %v4606_v59 = vld [vmem:[#allocation9 + $0x80] ss:$12 sps:$4 sm:$0xff]  }
 0x418   :  { %v582_v36 = vpop.xlane.xlu1 %581  ;;  %880 = vmatprep.subr.bf16.mxu0 %v4597_v54  ;;  %v3789_v54 = vld [vmem:[%s6552_s10] ss:$0 sm:$0xff] }
 0x419   :  { %v597_v19 = vsub.f32 %v563_v61, %v589_v33  ;;  %v590_v21 = vmul.f32 0.03125, %v582_v36  ;;  %621 = vadd.xlane.f32.xlu1 %v610_v34  ;;  %v611_v37 = vmul.f32 %v5428_v35, %v5428_v35  ;;  %v5433_v38 = vmul.f32 %v5345_v53, %v596_v32  ;;  %4185 = vmatpush3.bf16.msra.mxu1 %v4598_v51  ;;  %v3915_v61 = vld [vmem:[%s6589_s3 + $0x8] sm:$0xff] }
 0x41a   :  { %4186 = vmatprep.subr.bf16.mxu1 %v4602_v56 }
 0x41b   :  { %v598_v39 = vsub.f32 %v564_v62, %v590_v21  ;;  %623 = vadd.xlane.f32.xlu0 %v611_v37  ;;  %v612_v40 = vmul.f32 %v5433_v38, %v5433_v38  ;;  %v5438_v41 = vmul.f32 %v5345_v53, %v597_v19  ;;  %881 = vmatpush1.bf16.msra.mxu0 %v4595_v55  ;;  %v4605_v62 = vld [vmem:[#allocation9 + $0x94] ss:$12 sps:$4 sm:$0xff]  }
 0x41c   :  { %882 = vmatprep.subr.bf16.mxu0 %v4601_v57 }
 0x41d   :  { %625 = vadd.xlane.f32.xlu1 %v612_v40  ;;  %v613_v42 = vmul.f32 %v5438_v41, %v5438_v41  ;;  %v5443_v24 = vmul.f32 %v5345_v53, %v598_v39  ;;  %4187 = vmatpush3.bf16.msra.mxu1 %v4602_v56 }
 0x41e   :  { %4188 = vmatprep.subr.bf16.mxu1 %v4606_v59 }
 0x41f   :  { %627 = vadd.xlane.f32.xlu0 %v613_v42  ;;  %v614_v43 = vmul.f32 %v5443_v24, %v5443_v24  ;;  %883 = vmatpush1.bf16.msra.mxu0 %v4599_v58  ;;  %v3788_v42 = vld [vmem:[%s6551_s9] ss:$0 sm:$0xff] }
 0x420   :  { %884 = vmatprep.subr.bf16.mxu0 %v4605_v62 }
 0x421   :  { %629 = vadd.xlane.f32.xlu1 %v614_v43  ;;  %4189 = vmatpush3.bf16.msra.mxu1 %v4606_v59 }
 0x422   :  { %4190 = vmatprep.subr.bf16.mxu1 %v4610_v4 }
 0x423   :  { %885 = vmatpush1.bf16.msra.mxu0 %v4603_v2 }
 0x424   :  { %886 = vmatprep.subr.bf16.mxu0 %v4609_v6 }
 0x425   :  { %4191 = vmatpush3.bf16.msra.mxu1 %v4610_v4  ;;  %v5487_v4 = vld [vmem:[#allocation11 + $0x1c] ss:$12 sps:$4 sm:$0xff]  }
 0x426   :  { %4192 = vmatprep.subr.bf16.mxu1 %v4611_v60 }
 0x427   :  { %887 = vmatpush1.bf16.msra.mxu0 %v4607_v7 }
 0x428   :  { %1207 = vmatprep.subr.bf16.mxu0 %v5453_v8 }
 0x429   :  { %4193 = vmatpush3.bf16.msra.mxu1 %v4611_v60 }
 0x42a   :  { %4202 = vmatprep.subr.bf16.mxu1 %v6573_v52 }
 0x432   :  { %1321 = vperm.xlu1 %4563, %v3915_v61  }
 0x435   :  { %1071 = vperm.xlu0 %4562, %v1068_v1  }
 0x436   :  { %1439 = vperm.xlu1 %4563, %v3844_v12  }
 0x439   :  { %2786 = vperm.xlu0 %4562, %v3915_v61  }
 0x43a   :  { %1557 = vperm.xlu1 %4563, %v3921_v9  }
 0x43d   :  { %3016 = vperm.xlu0 %4562, %v3921_v9  }
 0x43e   :  { %1675 = vperm.xlu1 %4563, %v3850_v14  }
 0x441   :  { %3246 = vperm.xlu0 %4562, %v3927_v10  }
 0x442   :  { %1793 = vperm.xlu1 %4563, %v3927_v10  }
 0x445   :  { %3476 = vperm.xlu0 %4562, %v3933_v11  }
 0x446   :  { %1911 = vperm.xlu1 %4563, %v3856_v15  }
 0x44a   :  { %2029 = vperm.xlu1 %4563, %v3933_v11   ;;  %v5492_v11 = vld [vmem:[#allocation11 + $0x18] ss:$12 sps:$4 sm:$0xff]  }
 0x44e   :  { %2537 = vperm.xlu1 %4563, %v1068_v1   ;;  %v5485_v1 = vld [vmem:[#allocation11] ss:$12 sps:$4 sm:$0xff]  }
 0x452   :  { %2901 = vperm.xlu1 %4563, %v3844_v12   ;;  %v5494_v12 = vld [vmem:[#allocation11 + $0x8] ss:$12 sps:$4 sm:$0xff]  }
 0x456   :  { %3131 = vperm.xlu1 %4563, %v3850_v14   ;;  %v5498_v14 = vld [vmem:[#allocation11 + $0x34] ss:$12 sps:$4 sm:$0xff]  }
 0x45a   :  { %3361 = vperm.xlu1 %4563, %v3856_v15  }
 0x4a0   :  { %v616_v17 = vpop.xlane.xlu0 %615 }
 0x4a1   :  { %v631_v3 = vmul.f32 0.03125, %v616_v17 }
 0x4a2   :  { %v618_v18 = vpop.xlane.xlu1 %617 }
 0x4a3   :  { %v639_v20 = vadd.f32 1e-05, %v631_v3  ;;  %v632_v23 = vmul.f32 0.03125, %v618_v18 }
 0x4a4   :  { %v620_v25 = vpop.xlane.xlu0 %619 }
 0x4a5   :  { %4724 = vrsqrt.f32 %v639_v20  ;;  %v640_v0 = vadd.f32 1e-05, %v632_v23  ;;  %v633_v26 = vmul.f32 0.03125, %v620_v25  ;;  %v5504_v25 = vld [vmem:[#allocation11 + $0x30] ss:$12 sps:$4 sm:$0xff]  }
 0x4a6   :  { %v622_v28 = vpop.xlane.xlu1 %621 }
 0x4a7   :  { %4726 = vrsqrt.f32 %v640_v0  ;;  %v641_v29 = vadd.f32 1e-05, %v633_v26  ;;  %v634_v5 = vmul.f32 0.03125, %v622_v28  ;;  %v5506_v0 = vld [vmem:[#allocation11 + $0x20] ss:$12 sps:$4 sm:$0xff]  }
 0x4a8   :  { %v624_v30 = vpop.xlane.xlu0 %623  ;;  %v5510_v26 = vld [vmem:[#allocation11 + $0x4c] ss:$12 sps:$4 sm:$0xff]  }
 0x4a9   :  { %4728 = vrsqrt.f32 %v641_v29  ;;  %v642_v31 = vadd.f32 1e-05, %v634_v5  ;;  %v635_v32 = vmul.f32 0.03125, %v624_v30  ;;  %v5514_v5 = vld [vmem:[#allocation11 + $0x48] ss:$12 sps:$4 sm:$0xff]  }
 0x4aa   :  { %v626_v33 = vpop.xlane.xlu1 %625  ;;  %v5516_v30 = vld [vmem:[#allocation11 + $0x38] ss:$12 sps:$4 sm:$0xff]  }
 0x4ab   :  { %4730 = vrsqrt.f32 %v642_v31  ;;  %v643_v34 = vadd.f32 1e-05, %v635_v32  ;;  %v636_v36 = vmul.f32 0.03125, %v626_v33  ;;  %v5520_v32 = vld [vmem:[#allocation11 + $0x64] ss:$12 sps:$4 sm:$0xff]  }
 0x4ac   :  { %v628_v19 = vpop.xlane.xlu0 %627  ;;  %v5525_v33 = vld [vmem:[#allocation11 + $0x60] ss:$12 sps:$4 sm:$0xff]  }
 0x4ad   :  { %4732 = vrsqrt.f32 %v643_v34  ;;  %v644_v21 = vadd.f32 1e-05, %v636_v36  ;;  %v637_v37 = vmul.f32 0.03125, %v628_v19  ;;  %v5527_v34 = vld [vmem:[#allocation11 + $0x50] ss:$12 sps:$4 sm:$0xff]  }
 0x4ae   :  { %v630_v39 = vpop.xlane.xlu1 %629  ;;  %v5531_v36 = vld [vmem:[#allocation11 + $0x7c] ss:$12 sps:$4 sm:$0xff]   ;;  %v5537_v19 = vld [vmem:[#allocation11 + $0x78] ss:$12 sps:$4 sm:$0xff]  }
 0x4af   :  { %v4725_v40 = vpop.eup %4724  ;;  %4734 = vrsqrt.f32 %v644_v21  ;;  %v645_v43 = vadd.f32 1e-05, %v637_v37  ;;  %v638_v44 = vmul.f32 0.03125, %v630_v39  ;;  %v5539_v21 = vld [vmem:[#allocation11 + $0x68] ss:$12 sps:$4 sm:$0xff]  }
 0x4b0   :  { %v655_v45 = vmul.f32 %v4725_v40, %v5408_v16  ;;  %v5543_v37 = vld [vmem:[#allocation11 + $0x94] ss:$12 sps:$4 sm:$0xff]   ;;  %v5548_v40 = vld [vmem:[#allocation11 + $0x90] ss:$12 sps:$4 sm:$0xff]  }
 0x4b1   :  { %v4727_v47 = vpop.eup %4726  ;;  %4736 = vrsqrt.f32 %v645_v43  ;;  %v646_v48 = vadd.f32 1e-05, %v638_v44  ;;  %v1067_v39 = vld [vmem:[#allocation3] sm:$0xff]  ;;  %v5554_v43 = vld [vmem:[#allocation11 + $0xac] ss:$12 sps:$4 sm:$0xff]  }
 0x4b2   :  { %v669_v49 = vmul.f32 %v3788_v42, %v655_v45  ;;  %v656_v50 = vmul.f32 %v4727_v47, %v5413_v22  ;;  %v5560_v47 = vld [vmem:[#allocation11 + $0xa8] ss:$12 sps:$4 sm:$0xff]  }
 0x4b3   :  { %v4729_v51 = vpop.eup %4728  ;;  %4738 = vrsqrt.f32 %v646_v48  ;;  %v5562_v48 = vld [vmem:[#allocation11 + $0x98] ss:$12 sps:$4 sm:$0xff]  }
 0x4b4   :  { %v670_v55 = vmul.f32 %v3788_v42, %v656_v50  ;;  %v657_v56 = vmul.f32 %v4729_v51, %v5418_v27  ;;  %v683_v16 = vadd.f32 %v3789_v54, %v669_v49  ;;  %v1072_v44 = vpop.permute.xlu0 %1071  ;;  %v5571_v50 = vld [vmem:[#allocation11 + $0xb0] ss:$12 sps:$4 sm:$0xff]   ;;  %v5613_v51 = vshrl.u32 %v129_v46, 7 }
 0x4b5   :  { %v4731_v57 = vpop.eup %4730  ;;  %v5556_v45 = vmul.f32 %v1072_v44, %v1067_v39 }
 0x4b6   :  { %v671_v58 = vmul.f32 %v3788_v42, %v657_v56  ;;  %v658_v59 = vmul.f32 %v4731_v57, %v5423_v13  ;;  %v684_v61 = vadd.f32 %v3789_v54, %v670_v55  ;;  %6590 = vst [vmem:[#allocation21_spill] sm:$0xff] %v5613_v51  ;;  %v6568_v55 = vsub.s32 2, %v5613_v51  ;;  %v727_v56 = vld [vmem:[%s6555_s13] sm:$0x7] }
 0x4b7   :  { %v4733_v62 = vpop.eup %4732  ;;  %v1078_v49 = vpack.c.bf16 %v5556_v45, %v5556_v45  ;;  %v6569_v57 = vsub.s32 1, %v5613_v51 }
 0x4b8   :  { %v672_v2 = vmul.f32 %v3788_v42, %v658_v59  ;;  %v691_v22 = vpack.c.bf16 %v684_v61, %v683_v16  ;;  %v659_v6 = vmul.f32 %v4733_v62, %v5428_v35  ;;  %v685_v60 = vadd.f32 %v3789_v54, %v671_v58 }
 0x4b9   :  { %v4735_v7 = vpop.eup %4734  ;;  %v5625_v61 = vrot.slane %v727_v56, %v6568_v55  ;;  %v736_v46 = vrot.slane %v727_v56, %v6569_v57 }
 0x4ba   :  { %905 = vmatmul.mubr.bf16.vlgmr.msra.gmra.mrb[8].mxu0 %v691_v22  ;;  %4194 = vmatprep.mubr.bf16.mxu1 %v691_v22  ;;  %v686_v27 = vadd.f32 %v3789_v54, %v672_v2  ;;  %v660_v9 = vmul.f32 %v4735_v7, %v5433_v38  ;;  %v673_v10 = vmul.f32 %v3788_v42, %v659_v6 }
 0x4bb   :  { %v4737_v13 = vpop.eup %4736  ;;  %1208 = vmatpush1.bf16.msra.mxu0 %v5485_v1  ;;  %914 = vmatprep.mubr.bf16.mxu0 %v6571_v63 }
 0x4bc   :  { %1209 = vmatprep.subr.bf16.mxu0 %v5487_v4  ;;  %v692_v35 = vpack.c.bf16 %v686_v27, %v685_v60  ;;  %v674_v15 = vmul.f32 %v3788_v42, %v660_v9  ;;  %v661_v17 = vmul.f32 %v4737_v13, %v5438_v41  ;;  %v687_v38 = vadd.f32 %v3789_v54, %v673_v10 }
 0x4bd   :  { %v4739_v3 = vpop.eup %4738 }
 0x4be   :  { %4195 = vmatmul.mubr.bf16.vlgmr.msra.gmra.mrb[8].mxu1 %v692_v35  ;;  %v688_v18 = vadd.f32 %v3789_v54, %v674_v15  ;;  %v662_v20 = vmul.f32 %v4739_v3, %v5443_v24  ;;  %v675_v23 = vmul.f32 %v3788_v42, %v661_v17 }
 0x4bf   :  { %1210 = vmatpush1.bf16.msra.mxu0 %v5492_v11  ;;  %4203 = vmatpush3.bf16.msra.mxu1 %v5494_v12 }
 0x4c0   :  { %1211 = vmatprep.subr.bf16.mxu0 %v5498_v14  ;;  %4204 = vmatprep.subr.bf16.mxu1 %v6573_v52  ;;  %v693_v41 = vpack.c.bf16 %v688_v18, %v687_v38  ;;  %v676_v28 = vmul.f32 %v3788_v42, %v662_v20  ;;  %v689_v24 = vadd.f32 %v3789_v54, %v675_v23  ;;  %v5550_v42 = vld [vmem:[#allocation11 + $0x80] ss:$12 sps:$4 sm:$0xff]  }
 0x4c2   :  { %915 = vmatmul.mubr.bf16.gmra.mrb[12].mxu0 %v692_v35  ;;  %4198 = vmatprep.mubr.bf16.mxu1 %v693_v41  ;;  %v690_v29 = vadd.f32 %v3789_v54, %v676_v28  ;;  %v6570_v54 = vsub.s32 0, %v5613_v51 }
 0x4c3   :  { %1212 = vmatpush1.bf16.msra.mxu0 %v5504_v25  ;;  %4205 = vmatpush3.bf16.msra.mxu1 %v5506_v0 }
 0x4c4   :  { %1213 = vmatprep.subr.bf16.mxu0 %v5510_v26  ;;  %4206 = vmatprep.subr.bf16.mxu1 %v6573_v52  ;;  %v694_v31 = vpack.c.bf16 %v690_v29, %v689_v24  ;;  %v732_v59 = vrot.slane %v727_v56, %v6570_v54 }
 0x4c5   :  { %924 = vmatprep.mubr.bf16.mxu0 %v6571_v63 }
 0x4c6   :  { %4199 = vmatmul.mubr.bf16.gmra.mrb[12].mxu1 %v694_v31 }
 0x4c7   :  { %1214 = vmatpush1.bf16.msra.mxu0 %v5514_v5  ;;  %4207 = vmatpush3.bf16.msra.mxu1 %v5516_v30 }
 0x4c8   :  { %1215 = vmatprep.subr.bf16.mxu0 %v5520_v32  ;;  %4208 = vmatprep.subr.bf16.mxu1 %v6573_v52 }
 0x4c9   :  { %4218 = vmatprep.mubr.msk.bf16.mxu1 %vm5143_vm1, %v6573_v52 }
 0x4ca   :  { %925 = vmatmul.mubr.bf16.gmra.mrb[16].mxu0 %v693_v41 }
 0x4cb   :  { %1216 = vmatpush1.bf16.msra.mxu0 %v5525_v33  ;;  %4209 = vmatpush3.bf16.msra.mxu1 %v5527_v34 }
 0x4cc   :  { %1217 = vmatprep.subr.bf16.mxu0 %v5531_v36  ;;  %4210 = vmatprep.subr.bf16.mxu1 %v6573_v52 }
 0x4cd   :  { %934 = vmatprep.mubr.bf16.mxu0 %v6571_v63 }
 0x4cf   :  { %1218 = vmatpush1.bf16.msra.mxu0 %v5537_v19  ;;  %4211 = vmatpush3.bf16.msra.mxu1 %v5539_v21 }
 0x4d0   :  { %1219 = vmatprep.subr.bf16.mxu0 %v5543_v37  ;;  %4212 = vmatprep.subr.bf16.mxu1 %v6573_v52 }
 0x4d2   :  { %935 = vmatmul.mubr.bf16.gmra.mrb[20].mxu0 %v694_v31 }
 0x4d3   :  { %1220 = vmatpush1.bf16.msra.mxu0 %v5548_v40  ;;  %4213 = vmatpush3.bf16.msra.mxu1 %v5550_v42 }
 0x4d4   :  { %1221 = vmatprep.subr.bf16.mxu0 %v5554_v43  ;;  %4214 = vmatprep.subr.bf16.mxu1 %v6573_v52 }
 0x4d5   :  { %1239 = vmatprep.mubr.bf16.mxu0 %v6571_v63 }
 0x4d7   :  { %1222 = vmatpush1.bf16.msra.mxu0 %v5560_v47  ;;  %4215 = vmatpush3.bf16.msra.mxu1 %v5562_v48 }
 0x4d8   :  { %4216 = vmatprep.subr.bf16.mxu1 %v6573_v52  ;;  %1330 = vmatprep.subr.bf16.mxu0 %v5453_v8 }
 0x4da   :  { %1240 = vmatmul.mubr.bf16.vlgmr.msra.gmra.mrb[24].mxu0 %v1078_v49 }
 0x4db   :  { %4217 = vmatpush3.bf16.msra.mxu1 %v5571_v50  ;;  %1331 = vmatpush1.bf16.msra.mxu0 %v5485_v1 }
 0x4dc   :  { %4222 = vmatprep.subr.bf16.mxu1 %v6573_v52  ;;  %1332 = vmatprep.subr.bf16.mxu0 %v5487_v4 }
 0x4dd   :  { %1362 = vmatprep.mubr.bf16.mxu0 %v6571_v63 }
 0x4de   :  { %4219 = vmatmul.mubr.bf16.vlgmr.msra.gmra.mrb[16].mxu1 %v1078_v49 }
 0x4df   :  { %4223 = vmatpush3.bf16.msra.mxu1 %v5494_v12  ;;  %1333 = vmatpush1.bf16.msra.mxu0 %v5492_v11 }
 0x4e0   :  { %4224 = vmatprep.subr.bf16.mxu1 %v6573_v52  ;;  %1334 = vmatprep.subr.bf16.mxu0 %v5498_v14 }
 0x4e1   :  { %4238 = vmatprep.mubr.msk.bf16.mxu1 %vm5143_vm1, %v6573_v52 }
 0x4e3   :  { %4225 = vmatpush3.bf16.msra.mxu1 %v5506_v0  ;;  %1335 = vmatpush1.bf16.msra.mxu0 %v5504_v25 }
 0x4e4   :  { %4226 = vmatprep.subr.bf16.mxu1 %v6573_v52  ;;  %1336 = vmatprep.subr.bf16.mxu0 %v5510_v26 }
 0x4e7   :  { %4227 = vmatpush3.bf16.msra.mxu1 %v5516_v30  ;;  %1337 = vmatpush1.bf16.msra.mxu0 %v5514_v5 }
 0x4e8   :  { %4228 = vmatprep.subr.bf16.mxu1 %v6573_v52  ;;  %1338 = vmatprep.subr.bf16.mxu0 %v5520_v32 }
 0x4eb   :  { %4229 = vmatpush3.bf16.msra.mxu1 %v5527_v34  ;;  %1339 = vmatpush1.bf16.msra.mxu0 %v5525_v33 }
 0x4ec   :  { %4230 = vmatprep.subr.bf16.mxu1 %v6573_v52  ;;  %1340 = vmatprep.subr.bf16.mxu0 %v5531_v36 }
 0x4ef   :  { %4231 = vmatpush3.bf16.msra.mxu1 %v5539_v21  ;;  %1341 = vmatpush1.bf16.msra.mxu0 %v5537_v19 }
 0x4f0   :  { %4232 = vmatprep.subr.bf16.mxu1 %v6573_v52  ;;  %1342 = vmatprep.subr.bf16.mxu0 %v5543_v37 }
 0x4f3   :  { %4233 = vmatpush3.bf16.msra.mxu1 %v5550_v42  ;;  %1343 = vmatpush1.bf16.msra.mxu0 %v5548_v40 }
 0x4f4   :  { %4234 = vmatprep.subr.bf16.mxu1 %v6573_v52  ;;  %1344 = vmatprep.subr.bf16.mxu0 %v5554_v43 }
 0x4f7   :  { %4235 = vmatpush3.bf16.msra.mxu1 %v5562_v48  ;;  %1345 = vmatpush1.bf16.msra.mxu0 %v5560_v47 }
 0x4f8   :  { %4236 = vmatprep.subr.bf16.mxu1 %v6573_v52  ;;  %1448 = vmatprep.subr.bf16.mxu0 %v5453_v8 }
 0x4fb   :  { %4237 = vmatpush3.bf16.msra.mxu1 %v5571_v50 }
 0x4fc   :  { %4242 = vmatprep.subr.bf16.mxu1 %v6573_v52 }
 0x58d   :  { %v906_v58 = vpop.f32.mrb[8].mxu0 }
 0x58e   :  { %v908_v16 = vpop.f32.mrb[9].mxu0 }
 0x58f   :  { %v910_v62 = vpop.f32.mrb[10].mxu0  ;;  %v909_v54 = vadd.f32 %v908_v16, %v736_v46 }
 0x590   :  { %v5629_v2 = vadd.f32 %v910_v62, %v732_v59  ;;  %v912_v22 = vpop.f32.mrb[11].mxu0 }
 0x591   :  { %v5631_v6 = vadd.f32 %v912_v22, %v736_v46  ;;  %v4196_v7 = vpop.f32.mrb[8].mxu1 }
 0x592   :  { %v5634_v60 = vadd.f32 %v4196_v7, %v5625_v61  ;;  %v979_v27 = vpop.f32.mrb[9].mxu1 }
 0x593   :  { %v4197_v9 = vpop.f32.mrb[10].mxu1 }
 0x594   :  { %v5637_v10 = vadd.f32 %v4197_v9, %v5625_v61  ;;  %v982_v13 = vpop.f32.mrb[11].mxu1 }
 0x595   :  { %v5640_v35 = vadd.f32 %v982_v13, %v5625_v61  ;;  %v916_v15 = vpop.f32.mrb[12].mxu0 }
 0x596   :  { %v5642_v17 = vadd.f32 %v916_v15, %v732_v59  ;;  %v918_v3 = vpop.f32.mrb[13].mxu0 }
 0x597   :  { %v5644_v38 = vadd.f32 %v918_v3, %v736_v46  ;;  %v920_v18 = vpop.f32.mrb[14].mxu0 }
 0x598   :  { %v5646_v20 = vadd.f32 %v920_v18, %v732_v59  ;;  %v922_v23 = vpop.f32.mrb[15].mxu0 }
 0x599   :  { %v5648_v41 = vadd.f32 %v922_v23, %v736_v46  ;;  %v4200_v28 = vpop.f32.mrb[12].mxu1 }
 0x59a   :  { %v5651_v24 = vadd.f32 %v4200_v28, %v5625_v61  ;;  %v995_v29 = vpop.f32.mrb[13].mxu1 }
 0x59b   :  { %v5654_v31 = vadd.f32 %v995_v29, %v5625_v61  ;;  %v4201_v39 = vpop.f32.mrb[14].mxu1 }
 0x59c   :  { %6591 = vst [vmem:[#allocation22_spill] sm:$0xff] %v5651_v24  ;;  %v5657_v44 = vadd.f32 %v4201_v39, %v5625_v61  ;;  %v998_v49 = vpop.f32.mrb[15].mxu1 }
 0x59d   :  { %v5660_v56 = vadd.f32 %v998_v49, %v5625_v61  ;;  %v926_v62 = vpop.f32.mrb[16].mxu0 }
 0x59e   :  { %6592 = vst [vmem:[#allocation23_spill] sm:$0xff] %v5657_v44  ;;  %v5662_v22 = vadd.f32 %v926_v62, %v732_v59  ;;  %v928_v7 = vpop.f32.mrb[17].mxu0 }
 0x59f   :  { %v5664_v9 = vadd.f32 %v928_v7, %v736_v46  ;;  %v930_v13 = vpop.f32.mrb[18].mxu0  ;;  %v907_v7 = vadd.f32 %v906_v58, %v732_v59 }
 0x5a0   :  { %v5666_v15 = vadd.f32 %v930_v13, %v732_v59  ;;  %v932_v3 = vpop.f32.mrb[19].mxu0 }
 0x5a1   :  { %v5668_v18 = vadd.f32 %v932_v3, %v736_v46 }
 0x5a5   :  { %v936_v23 = vpop.f32.mrb[20].mxu0 }
 0x5a6   :  { %v5670_v28 = vadd.f32 %v936_v23, %v732_v59  ;;  %v938_v29 = vpop.f32.mrb[21].mxu0 }
 0x5a7   :  { %v5672_v39 = vadd.f32 %v938_v29, %v736_v46  ;;  %v940_v49 = vpop.f32.mrb[22].mxu0 }
 0x5a8   :  { %6593 = vst [vmem:[#allocation24_spill] sm:$0xff] %v5670_v28  ;;  %v5674_v55 = vadd.f32 %v940_v49, %v732_v59  ;;  %v942_v62 = vpop.f32.mrb[23].mxu0 }
 0x5a9   :  { %6594 = vst [vmem:[#allocation25_spill] sm:$0xff] %v5672_v39  ;;  %v5676_v57 = vadd.f32 %v942_v62, %v736_v46 }
 0x5aa   :  { %6595 = vst [vmem:[#allocation26_spill] sm:$0xff] %v5674_v55 }
 0x5ad   :  { %v1241_v63 = vpop.f32.mrb[24].mxu0 }
 0x5ae   :  { %v1288_v13 = vadd.f32 %v1241_v63, %v907_v7  ;;  %v1243_v52 = vpop.f32.mrb[25].mxu0  ;;  %v5681_v63 = vld [vmem:[%s6556_s14] ss:$0 sm:$0xff] }
 0x5af   :  { %v1295_v53 = vadd.f32 %v1243_v52, %v909_v54  ;;  %v1245_v3 = vpop.f32.mrb[26].mxu0 }
 0x5b0   :  { %v3838_v51 = vmul.f32 -1.442695, %v1288_v13  ;;  %v1246_v44 = vpop.f32.mrb[27].mxu0 }
 0x5b1   :  { %v1282_v23 = vpop.f32.mrb[16].mxu1  ;;  %v3839_v28 = vmul.f32 -1.442695, %v1295_v53 }
 0x5b2   :  { %4740 = vpow2.f32 %v3838_v51  ;;  %v4220_v24 = vpop.f32.mrb[17].mxu1  ;;  %v1308_v54 = vadd.f32 %v5681_v63, %v1282_v23  ;;  %v980_v51 = vadd.f32 %v979_v27, %v5625_v61  ;;  %v6596_v61 = vmov 0.0  }
 0x5b3   :  { %v1285_v29 = vpop.f32.mrb[18].mxu1  ;;  %4742 = vpow2.f32 %v3839_v28 }
 0x5b4   :  { %v4221_v39 = vpop.f32.mrb[19].mxu1 }
 0x5b5   :  { %v1322_v39 = vpop.permute.xlu1 %1321 }
 0x5bc   :  { %v4741_v49 = vpop.eup %4740 }
 0x5bd   :  { %v1292_v55 = vadd.f32 1.0, %v4741_v49  ;;  %v4743_v62 = vpop.eup %4742 }
 0x5be   :  { %v1299_v52 = vadd.f32 1.0, %v4743_v62 }
 0x5bf   :  { %4744 = vrcp.f32 %v1292_v55 }
 0x5c0   :  { %4746 = vrcp.f32 %v1299_v52 }
 0x5c9   :  { %v4745_v58 = vpop.eup %4744 }
 0x5ca   :  { %v1309_v59 = vmul.f32 %v4745_v58, %v1308_v54  ;;  %v4747_v53 = vpop.eup %4746 }
 0x5cb   :  { %v1312_v46 = vsub.f32 1.0, %v4747_v53  ;;  %v1314_v44 = vmul.f32 %v4747_v53, %v5556_v45  ;;  %v6597_v45 = vmov 0  }
 0x5cc   :  { %v1310_v16 = vadd.f32 %v1309_v59, %v980_v51 }
 0x5ce   :  { %4748 = vtanh.f32 %v1310_v16 }
 0x5d8   :  { %v4749_v24 = vpop.eup %4748 }
 0x5d9   :  { %v1313_v55 = vmul.f32 %v4749_v24, %v1312_v46 }
 0x5db   :  { %v5686_v28 = vadd.f32 %v1314_v44, %v1313_v55 }
 0x5dd   :  { %v5689_v7 = vmul.f32 %v1322_v39, %v5686_v28 }
 0x5df   :  { %v1329_v13 = vpack.c.bf16 %v5689_v7, %v5689_v7 }
 0x5e1   :  { %1363 = vmatmul.mubr.bf16.vlgmr.msra.gmra.mrb[28].mxu0 %v1329_v13  ;;  %4239 = vmatmul.mubr.bf16.vlgmr.msra.gmra.mrb[20].mxu1 %v1329_v13 }
 0x5e2   :  { %1449 = vmatpush1.bf16.msra.mxu0 %v5485_v1  ;;  %4243 = vmatpush3.bf16.msra.mxu1 %v5494_v12 }
 0x5e3   :  { %1450 = vmatprep.subr.bf16.mxu0 %v5487_v4  ;;  %4244 = vmatprep.subr.bf16.mxu1 %v6596_v61 }
 0x5e4   :  { %1480 = vmatprep.mubr.bf16.mxu0 %v6597_v45  ;;  %4258 = vmatprep.mubr.msk.bf16.mxu1 %vm5143_vm1, %v6596_v61 }
 0x5e6   :  { %1451 = vmatpush1.bf16.msra.mxu0 %v5492_v11  ;;  %4245 = vmatpush3.bf16.msra.mxu1 %v5506_v0 }
 0x5e7   :  { %1452 = vmatprep.subr.bf16.mxu0 %v5498_v14  ;;  %4246 = vmatprep.subr.bf16.mxu1 %v6596_v61 }
 0x5ea   :  { %1453 = vmatpush1.bf16.msra.mxu0 %v5504_v25  ;;  %4247 = vmatpush3.bf16.msra.mxu1 %v5516_v30 }
 0x5eb   :  { %1454 = vmatprep.subr.bf16.mxu0 %v5510_v26  ;;  %4248 = vmatprep.subr.bf16.mxu1 %v6596_v61 }
 0x5ee   :  { %1455 = vmatpush1.bf16.msra.mxu0 %v5514_v5  ;;  %4249 = vmatpush3.bf16.msra.mxu1 %v5527_v34 }
 0x5ef   :  { %1456 = vmatprep.subr.bf16.mxu0 %v5520_v32  ;;  %4250 = vmatprep.subr.bf16.mxu1 %v6596_v61 }
 0x5f2   :  { %1457 = vmatpush1.bf16.msra.mxu0 %v5525_v33  ;;  %4251 = vmatpush3.bf16.msra.mxu1 %v5539_v21 }
 0x5f3   :  { %1458 = vmatprep.subr.bf16.mxu0 %v5531_v36  ;;  %4252 = vmatprep.subr.bf16.mxu1 %v6596_v61 }
 0x5f6   :  { %1459 = vmatpush1.bf16.msra.mxu0 %v5537_v19  ;;  %4253 = vmatpush3.bf16.msra.mxu1 %v5550_v42 }
 0x5f7   :  { %1460 = vmatprep.subr.bf16.mxu0 %v5543_v37  ;;  %4254 = vmatprep.subr.bf16.mxu1 %v6596_v61 }
 0x5fa   :  { %1461 = vmatpush1.bf16.msra.mxu0 %v5548_v40  ;;  %4255 = vmatpush3.bf16.msra.mxu1 %v5562_v48 }
 0x5fb   :  { %1462 = vmatprep.subr.bf16.mxu0 %v5554_v43  ;;  %4256 = vmatprep.subr.bf16.mxu1 %v6596_v61 }
 0x5fe   :  { %1463 = vmatpush1.bf16.msra.mxu0 %v5560_v47  ;;  %4257 = vmatpush3.bf16.msra.mxu1 %v5571_v50 }
 0x5ff   :  { %1566 = vmatprep.subr.bf16.mxu0 %v5453_v8  ;;  %4262 = vmatprep.subr.bf16.mxu1 %v6596_v61 }
 0x6b4   :  { %v1364_v27 = vpop.f32.mrb[28].mxu0  ;;  %v1405_v3 = vpop.f32.mrb[20].mxu1 }
 0x6b5   :  { %v1411_v23 = vadd.f32 %v1364_v27, %v5629_v2  ;;  %v1366_v29 = vpop.f32.mrb[29].mxu0  ;;  %v4240_v49 = vpop.f32.mrb[21].mxu1  ;;  %v1425_v44 = vadd.f32 %v5681_v63, %v1405_v3 }
 0x6b6   :  { %v1418_v62 = vadd.f32 %v1366_v29, %v5631_v6  ;;  %v1368_v52 = vpop.f32.mrb[30].mxu0  ;;  %v1408_v54 = vpop.f32.mrb[22].mxu1 }
 0x6b7   :  { %v3842_v58 = vmul.f32 -1.442695, %v1411_v23  ;;  %v1369_v51 = vpop.f32.mrb[31].mxu0  ;;  %v4241_v59 = vpop.f32.mrb[23].mxu1 }
 0x6b8   :  { %v3843_v16 = vmul.f32 -1.442695, %v1418_v62  ;;  %v1440_v52 = vpop.permute.xlu1 %1439 }
 0x6b9   :  { %4750 = vpow2.f32 %v3842_v58 }
 0x6ba   :  { %4752 = vpow2.f32 %v3843_v16 }
 0x6c3   :  { %v4751_v53 = vpop.eup %4750 }
 0x6c4   :  { %v1415_v46 = vadd.f32 1.0, %v4751_v53  ;;  %v4753_v24 = vpop.eup %4752 }
 0x6c5   :  { %v1422_v55 = vadd.f32 1.0, %v4753_v24 }
 0x6c6   :  { %4754 = vrcp.f32 %v1415_v46 }
 0x6c7   :  { %4756 = vrcp.f32 %v1422_v55 }
 0x6d0   :  { %v4755_v2 = vpop.eup %4754 }
 0x6d1   :  { %v1426_v39 = vmul.f32 %v4755_v2, %v1425_v44  ;;  %v4757_v13 = vpop.eup %4756 }
 0x6d2   :  { %v1429_v27 = vsub.f32 1.0, %v4757_v13  ;;  %v1431_v49 = vmul.f32 %v4757_v13, %v5689_v7 }
 0x6d3   :  { %v1427_v6 = vadd.f32 %v1426_v39, %v5640_v35 }
 0x6d5   :  { %4758 = vtanh.f32 %v1427_v6 }
 0x6df   :  { %v4759_v23 = vpop.eup %4758 }
 0x6e0   :  { %v1430_v29 = vmul.f32 %v4759_v23, %v1429_v27 }
 0x6e2   :  { %v5733_v62 = vadd.f32 %v1431_v49, %v1430_v29 }
 0x6e4   :  { %v5736_v54 = vmul.f32 %v1440_v52, %v5733_v62 }
 0x6e6   :  { %v1447_v3 = vpack.c.bf16 %v5736_v54, %v5736_v54 }
 0x6e8   :  { %1481 = vmatmul.mubr.bf16.vlgmr.msra.gmra.mrb[32].mxu0 %v1447_v3  ;;  %4259 = vmatmul.mubr.bf16.vlgmr.msra.gmra.mrb[24].mxu1 %v1447_v3 }
 0x6e9   :  { %1567 = vmatpush1.bf16.msra.mxu0 %v5485_v1  ;;  %4263 = vmatpush3.bf16.msra.mxu1 %v5494_v12 }
 0x6ea   :  { %1568 = vmatprep.subr.bf16.mxu0 %v5487_v4  ;;  %4264 = vmatprep.subr.bf16.mxu1 %v6596_v61 }
 0x6eb   :  { %1598 = vmatprep.mubr.bf16.mxu0 %v6597_v45  ;;  %4278 = vmatprep.mubr.msk.bf16.mxu1 %vm5143_vm1, %v6596_v61 }
 0x6ed   :  { %1569 = vmatpush1.bf16.msra.mxu0 %v5492_v11  ;;  %4265 = vmatpush3.bf16.msra.mxu1 %v5506_v0 }
 0x6ee   :  { %1570 = vmatprep.subr.bf16.mxu0 %v5498_v14  ;;  %4266 = vmatprep.subr.bf16.mxu1 %v6596_v61 }
 0x6f1   :  { %1571 = vmatpush1.bf16.msra.mxu0 %v5504_v25  ;;  %4267 = vmatpush3.bf16.msra.mxu1 %v5516_v30 }
 0x6f2   :  { %1572 = vmatprep.subr.bf16.mxu0 %v5510_v26  ;;  %4268 = vmatprep.subr.bf16.mxu1 %v6596_v61 }
 0x6f5   :  { %1573 = vmatpush1.bf16.msra.mxu0 %v5514_v5  ;;  %4269 = vmatpush3.bf16.msra.mxu1 %v5527_v34 }
 0x6f6   :  { %1574 = vmatprep.subr.bf16.mxu0 %v5520_v32  ;;  %4270 = vmatprep.subr.bf16.mxu1 %v6596_v61 }
 0x6f9   :  { %1575 = vmatpush1.bf16.msra.mxu0 %v5525_v33  ;;  %4271 = vmatpush3.bf16.msra.mxu1 %v5539_v21 }
 0x6fa   :  { %1576 = vmatprep.subr.bf16.mxu0 %v5531_v36  ;;  %4272 = vmatprep.subr.bf16.mxu1 %v6596_v61 }
 0x6fd   :  { %1577 = vmatpush1.bf16.msra.mxu0 %v5537_v19  ;;  %4273 = vmatpush3.bf16.msra.mxu1 %v5550_v42 }
 0x6fe   :  { %1578 = vmatprep.subr.bf16.mxu0 %v5543_v37  ;;  %4274 = vmatprep.subr.bf16.mxu1 %v6596_v61 }
 0x701   :  { %1579 = vmatpush1.bf16.msra.mxu0 %v5548_v40  ;;  %4275 = vmatpush3.bf16.msra.mxu1 %v5562_v48 }
 0x702   :  { %1580 = vmatprep.subr.bf16.mxu0 %v5554_v43  ;;  %4276 = vmatprep.subr.bf16.mxu1 %v6596_v61 }
 0x705   :  { %1581 = vmatpush1.bf16.msra.mxu0 %v5560_v47  ;;  %4277 = vmatpush3.bf16.msra.mxu1 %v5571_v50 }
 0x706   :  { %1684 = vmatprep.subr.bf16.mxu0 %v5453_v8  ;;  %4282 = vmatprep.subr.bf16.mxu1 %v6596_v61 }
 0x7bb   :  { %v1482_v35 = vpop.f32.mrb[32].mxu0  ;;  %v1523_v7 = vpop.f32.mrb[24].mxu1 }
 0x7bc   :  { %v1529_v58 = vadd.f32 %v1482_v35, %v5642_v17  ;;  %v1484_v51 = vpop.f32.mrb[33].mxu0  ;;  %v4260_v59 = vpop.f32.mrb[25].mxu1  ;;  %v1543_v23 = vadd.f32 %v5681_v63, %v1523_v7 }
 0x7bd   :  { %v1536_v16 = vadd.f32 %v1484_v51, %v5644_v38  ;;  %v1486_v53 = vpop.f32.mrb[34].mxu0  ;;  %v1526_v46 = vpop.f32.mrb[26].mxu1 }
 0x7be   :  { %v3845_v24 = vmul.f32 -1.442695, %v1529_v58  ;;  %v1487_v55 = vpop.f32.mrb[35].mxu0  ;;  %v4261_v44 = vpop.f32.mrb[27].mxu1 }
 0x7bf   :  { %v3846_v2 = vmul.f32 -1.442695, %v1536_v16  ;;  %v1558_v59 = vpop.permute.xlu1 %1557 }
 0x7c0   :  { %4760 = vpow2.f32 %v3845_v24 }
 0x7c1   :  { %4762 = vpow2.f32 %v3846_v2 }
 0x7ca   :  { %v4761_v39 = vpop.eup %4760 }
 0x7cb   :  { %v1533_v6 = vadd.f32 1.0, %v4761_v39  ;;  %v4763_v13 = vpop.eup %4762 }
 0x7cc   :  { %v1540_v27 = vadd.f32 1.0, %v4763_v13 }
 0x7cd   :  { %4764 = vrcp.f32 %v1533_v6 }
 0x7ce   :  { %4766 = vrcp.f32 %v1540_v27 }
 0x7d7   :  { %v4765_v17 = vpop.eup %4764 }
 0x7d8   :  { %v1544_v29 = vmul.f32 %v4765_v17, %v1543_v23  ;;  %v4767_v49 = vpop.eup %4766 }
 0x7d9   :  { %v1547_v52 = vsub.f32 1.0, %v4767_v49  ;;  %v1549_v58 = vmul.f32 %v4767_v49, %v5736_v54 }
 0x7da   :  { %v1545_v38 = vadd.f32 %v1544_v29, %v5634_v60 }
 0x7dc   :  { %4768 = vtanh.f32 %v1545_v38 }
 0x7e6   :  { %v4769_v3 = vpop.eup %4768 }
 0x7e7   :  { %v1548_v35 = vmul.f32 %v4769_v3, %v1547_v52 }
 0x7e9   :  { %v5780_v51 = vadd.f32 %v1549_v58, %v1548_v35 }
 0x7eb   :  { %v5783_v16 = vmul.f32 %v1558_v59, %v5780_v51 }
 0x7ed   :  { %v1565_v7 = vpack.c.bf16 %v5783_v16, %v5783_v16 }
 0x7ef   :  { %1599 = vmatmul.mubr.bf16.vlgmr.msra.gmra.mrb[36].mxu0 %v1565_v7  ;;  %4279 = vmatmul.mubr.bf16.vlgmr.msra.gmra.mrb[28].mxu1 %v1565_v7 }
 0x7f0   :  { %1685 = vmatpush1.bf16.msra.mxu0 %v5485_v1  ;;  %4283 = vmatpush3.bf16.msra.mxu1 %v5494_v12 }
 0x7f1   :  { %1686 = vmatprep.subr.bf16.mxu0 %v5487_v4  ;;  %4284 = vmatprep.subr.bf16.mxu1 %v6596_v61 }
 0x7f2   :  { %1716 = vmatprep.mubr.bf16.mxu0 %v6597_v45  ;;  %4298 = vmatprep.mubr.msk.bf16.mxu1 %vm5143_vm1, %v6596_v61 }
 0x7f4   :  { %1687 = vmatpush1.bf16.msra.mxu0 %v5492_v11  ;;  %4285 = vmatpush3.bf16.msra.mxu1 %v5506_v0 }
 0x7f5   :  { %1688 = vmatprep.subr.bf16.mxu0 %v5498_v14  ;;  %4286 = vmatprep.subr.bf16.mxu1 %v6596_v61 }
 0x7f8   :  { %1689 = vmatpush1.bf16.msra.mxu0 %v5504_v25  ;;  %4287 = vmatpush3.bf16.msra.mxu1 %v5516_v30 }
 0x7f9   :  { %1690 = vmatprep.subr.bf16.mxu0 %v5510_v26  ;;  %4288 = vmatprep.subr.bf16.mxu1 %v6596_v61 }
 0x7fc   :  { %1691 = vmatpush1.bf16.msra.mxu0 %v5514_v5  ;;  %4289 = vmatpush3.bf16.msra.mxu1 %v5527_v34 }
 0x7fd   :  { %1692 = vmatprep.subr.bf16.mxu0 %v5520_v32  ;;  %4290 = vmatprep.subr.bf16.mxu1 %v6596_v61 }
 0x800   :  { %1693 = vmatpush1.bf16.msra.mxu0 %v5525_v33  ;;  %4291 = vmatpush3.bf16.msra.mxu1 %v5539_v21 }
 0x801   :  { %1694 = vmatprep.subr.bf16.mxu0 %v5531_v36  ;;  %4292 = vmatprep.subr.bf16.mxu1 %v6596_v61 }
 0x804   :  { %1695 = vmatpush1.bf16.msra.mxu0 %v5537_v19  ;;  %4293 = vmatpush3.bf16.msra.mxu1 %v5550_v42 }
 0x805   :  { %1696 = vmatprep.subr.bf16.mxu0 %v5543_v37  ;;  %4294 = vmatprep.subr.bf16.mxu1 %v6596_v61 }
 0x808   :  { %1697 = vmatpush1.bf16.msra.mxu0 %v5548_v40  ;;  %4295 = vmatpush3.bf16.msra.mxu1 %v5562_v48 }
 0x809   :  { %1698 = vmatprep.subr.bf16.mxu0 %v5554_v43  ;;  %4296 = vmatprep.subr.bf16.mxu1 %v6596_v61 }
 0x80c   :  { %1699 = vmatpush1.bf16.msra.mxu0 %v5560_v47  ;;  %4297 = vmatpush3.bf16.msra.mxu1 %v5571_v50 }
 0x80d   :  { %1802 = vmatprep.subr.bf16.mxu0 %v5453_v8  ;;  %4302 = vmatprep.subr.bf16.mxu1 %v6596_v61 }
 0x8c2   :  { %v1600_v60 = vpop.f32.mrb[36].mxu0  ;;  %v1641_v54 = vpop.f32.mrb[28].mxu1 }
 0x8c3   :  { %v1647_v53 = vadd.f32 %v1600_v60, %v5646_v20  ;;  %v1602_v46 = vpop.f32.mrb[37].mxu0  ;;  %v4280_v24 = vpop.f32.mrb[29].mxu1  ;;  %v1661_v38 = vadd.f32 %v5681_v63, %v1641_v54 }
 0x8c4   :  { %v1654_v55 = vadd.f32 %v1602_v46, %v5648_v41  ;;  %v1604_v44 = vpop.f32.mrb[38].mxu0  ;;  %v1644_v2 = vpop.f32.mrb[30].mxu1 }
 0x8c5   :  { %v3848_v39 = vmul.f32 -1.442695, %v1647_v53  ;;  %v1605_v6 = vpop.f32.mrb[39].mxu0  ;;  %v4281_v13 = vpop.f32.mrb[31].mxu1 }
 0x8c6   :  { %v3849_v27 = vmul.f32 -1.442695, %v1654_v55  ;;  %v1676_v60 = vpop.permute.xlu1 %1675 }
 0x8c7   :  { %4770 = vpow2.f32 %v3848_v39 }
 0x8c8   :  { %4772 = vpow2.f32 %v3849_v27 }
 0x8d1   :  { %v4771_v23 = vpop.eup %4770 }
 0x8d2   :  { %v1651_v8 = vadd.f32 1.0, %v4771_v23  ;;  %v4773_v17 = vpop.eup %4772 }
 0x8d3   :  { %v1658_v29 = vadd.f32 1.0, %v4773_v17 }
 0x8d4   :  { %4774 = vrcp.f32 %v1651_v8 }
 0x8d5   :  { %4776 = vrcp.f32 %v1658_v29 }
 0x8de   :  { %v4775_v20 = vpop.eup %4774 }
 0x8df   :  { %v1662_v49 = vmul.f32 %v4775_v20, %v1661_v38  ;;  %v4777_v52 = vpop.eup %4776 }
 0x8e0   :  { %v1665_v3 = vsub.f32 1.0, %v4777_v52  ;;  %v1667_v59 = vmul.f32 %v4777_v52, %v5783_v16 }
 0x8e1   :  { %v1663_v41 = vadd.f32 %v1662_v49, %v5637_v10  ;;  %v5867_v10 = vld [vmem:[#allocation11 + $0x4] ss:$12 sps:$4 sm:$0xff]  }
 0x8e3   :  { %4778 = vtanh.f32 %v1663_v41 }
 0x8ed   :  { %v4779_v35 = vpop.eup %4778 }
 0x8ee   :  { %v1666_v58 = vmul.f32 %v4779_v35, %v1665_v3 }
 0x8f0   :  { %v5827_v7 = vadd.f32 %v1667_v59, %v1666_v58 }
 0x8f2   :  { %v5830_v53 = vmul.f32 %v1676_v60, %v5827_v7 }
 0x8f4   :  { %v1683_v54 = vpack.c.bf16 %v5830_v53, %v5830_v53 }
 0x8f6   :  { %1717 = vmatmul.mubr.bf16.vlgmr.msra.gmra.mrb[40].mxu0 %v1683_v54  ;;  %4299 = vmatmul.mubr.bf16.vlgmr.msra.gmra.mrb[32].mxu1 %v1683_v54  ;;  %v1794_v54 = vpop.permute.xlu1 %1793 }
 0x8f7   :  { %1803 = vmatpush1.bf16.msra.mxu0 %v5485_v1  ;;  %4303 = vmatpush3.bf16.msra.mxu1 %v5494_v12 }
 0x8f8   :  { %1804 = vmatprep.subr.bf16.mxu0 %v5487_v4  ;;  %4304 = vmatprep.subr.bf16.mxu1 %v6596_v61 }
 0x8f9   :  { %1834 = vmatprep.mubr.bf16.mxu0 %v6597_v45  ;;  %4318 = vmatprep.mubr.msk.bf16.mxu1 %vm5143_vm1, %v6596_v61 }
 0x8fb   :  { %1805 = vmatpush1.bf16.msra.mxu0 %v5492_v11  ;;  %4305 = vmatpush3.bf16.msra.mxu1 %v5506_v0 }
 0x8fc   :  { %1806 = vmatprep.subr.bf16.mxu0 %v5498_v14  ;;  %4306 = vmatprep.subr.bf16.mxu1 %v6596_v61 }
 0x8ff   :  { %1807 = vmatpush1.bf16.msra.mxu0 %v5504_v25  ;;  %4307 = vmatpush3.bf16.msra.mxu1 %v5516_v30 }
 0x900   :  { %1808 = vmatprep.subr.bf16.mxu0 %v5510_v26  ;;  %4308 = vmatprep.subr.bf16.mxu1 %v6596_v61 }
 0x903   :  { %1809 = vmatpush1.bf16.msra.mxu0 %v5514_v5  ;;  %4309 = vmatpush3.bf16.msra.mxu1 %v5527_v34 }
 0x904   :  { %1810 = vmatprep.subr.bf16.mxu0 %v5520_v32  ;;  %4310 = vmatprep.subr.bf16.mxu1 %v6596_v61 }
 0x907   :  { %1811 = vmatpush1.bf16.msra.mxu0 %v5525_v33  ;;  %4311 = vmatpush3.bf16.msra.mxu1 %v5539_v21 }
 0x908   :  { %1812 = vmatprep.subr.bf16.mxu0 %v5531_v36  ;;  %4312 = vmatprep.subr.bf16.mxu1 %v6596_v61 }
 0x90b   :  { %1813 = vmatpush1.bf16.msra.mxu0 %v5537_v19  ;;  %4313 = vmatpush3.bf16.msra.mxu1 %v5550_v42 }
 0x90c   :  { %1814 = vmatprep.subr.bf16.mxu0 %v5543_v37  ;;  %4314 = vmatprep.subr.bf16.mxu1 %v6596_v61 }
 0x90f   :  { %1815 = vmatpush1.bf16.msra.mxu0 %v5548_v40  ;;  %4315 = vmatpush3.bf16.msra.mxu1 %v5562_v48 }
 0x910   :  { %1816 = vmatprep.subr.bf16.mxu0 %v5554_v43  ;;  %4316 = vmatprep.subr.bf16.mxu1 %v6596_v61 }
 0x913   :  { %1817 = vmatpush1.bf16.msra.mxu0 %v5560_v47  ;;  %4317 = vmatpush3.bf16.msra.mxu1 %v5571_v50 }
 0x914   :  { %1920 = vmatprep.subr.bf16.mxu0 %v5867_v10  ;;  %4322 = vmatprep.subr.bf16.mxu1 %v6596_v61 }
 0x9c9   :  { %v1718_v16 = vpop.f32.mrb[40].mxu0  ;;  %v1759_v46 = vpop.f32.mrb[32].mxu1 }
 0x9ca   :  { %v1765_v24 = vadd.f32 %v1718_v16, %v5662_v22  ;;  %v1720_v55 = vpop.f32.mrb[41].mxu0  ;;  %v4300_v44 = vpop.f32.mrb[33].mxu1  ;;  %v1779_v49 = vadd.f32 %v5681_v63, %v1759_v46 }
 0x9cb   :  { %v1772_v2 = vadd.f32 %v1720_v55, %v5664_v9  ;;  %v1722_v39 = vpop.f32.mrb[42].mxu0  ;;  %v1762_v6 = vpop.f32.mrb[34].mxu1  ;;  %v4917_v55 = vld [vmem:[#allocation11] ss:$12 sps:$4 sm:$0xff]   ;;  %v4919_v44 = vld [vmem:[#allocation11 + $0x1c] ss:$12 sps:$4 sm:$0xff]  }
 0x9cc   :  { %v3851_v13 = vmul.f32 -1.442695, %v1765_v24  ;;  %v1723_v27 = vpop.f32.mrb[43].mxu0  ;;  %v4301_v23 = vpop.f32.mrb[35].mxu1  ;;  %v4921_v39 = vld [vmem:[#allocation11 + $0x20] ss:$12 sps:$4 sm:$0xff]  }
 0x9cd   :  { %v3852_v8 = vmul.f32 -1.442695, %v1772_v2  ;;  %v4920_v2 = vld [vmem:[#allocation11 + $0x18] ss:$12 sps:$4 sm:$0xff]   ;;  %v4922_v6 = vld [vmem:[#allocation11 + $0x34] ss:$12 sps:$4 sm:$0xff]  }
 0x9ce   :  { %4780 = vpow2.f32 %v3851_v13  ;;  %v4923_v13 = vld [vmem:[#allocation11 + $0x30] ss:$12 sps:$4 sm:$0xff]   ;;  %v4924_v27 = vld [vmem:[#allocation11 + $0x38] ss:$12 sps:$4 sm:$0xff]  }
 0x9cf   :  { %4782 = vpow2.f32 %v3852_v8  ;;  %v4925_v23 = vld [vmem:[#allocation11 + $0x4c] ss:$12 sps:$4 sm:$0xff]   ;;  %v4926_v8 = vld [vmem:[#allocation11 + $0x48] ss:$12 sps:$4 sm:$0xff]  }
 0x9d8   :  { %v4781_v17 = vpop.eup %4780 }
 0x9d9   :  { %v1769_v29 = vadd.f32 1.0, %v4781_v17  ;;  %v4783_v38 = vpop.eup %4782  ;;  %v4927_v17 = vld [vmem:[#allocation11 + $0x50] ss:$12 sps:$4 sm:$0xff]  }
 0x9da   :  { %v1776_v20 = vadd.f32 1.0, %v4783_v38  ;;  %v4929_v38 = vld [vmem:[#allocation11 + $0x60] ss:$12 sps:$4 sm:$0xff]  }
 0x9db   :  { %4784 = vrcp.f32 %v1769_v29  ;;  %v4928_v29 = vld [vmem:[#allocation11 + $0x64] ss:$12 sps:$4 sm:$0xff]  }
 0x9dc   :  { %4786 = vrcp.f32 %v1776_v20  ;;  %v4930_v20 = vld [vmem:[#allocation11 + $0x68] ss:$12 sps:$4 sm:$0xff]  }
 0x9e5   :  { %v4785_v22 = vpop.eup %4784 }
 0x9e6   :  { %v1780_v41 = vmul.f32 %v4785_v22, %v1779_v49  ;;  %v4787_v52 = vpop.eup %4786  ;;  %v4931_v49 = vld [vmem:[#allocation11 + $0x7c] ss:$12 sps:$4 sm:$0xff]   ;;  %v4932_v22 = vld [vmem:[#allocation11 + $0x78] ss:$12 sps:$4 sm:$0xff]  }
 0x9e7   :  { %v1783_v3 = vsub.f32 1.0, %v4787_v52  ;;  %v1785_v59 = vmul.f32 %v4787_v52, %v5830_v53  ;;  %v1912_v53 = vpop.permute.xlu1 %1911  ;;  %v4935_v52 = vld [vmem:[#allocation11 + $0x90] ss:$12 sps:$4 sm:$0xff]  }
 0x9e8   :  { %v1781_v9 = vadd.f32 %v1780_v41, %v5654_v31  ;;  %v4933_v41 = vld [vmem:[#allocation11 + $0x80] ss:$12 sps:$4 sm:$0xff]  }
 0x9ea   :  { %4788 = vtanh.f32 %v1781_v9  ;;  %v4934_v9 = vld [vmem:[#allocation11 + $0x94] ss:$12 sps:$4 sm:$0xff]  }
 0x9f4   :  { %v4789_v35 = vpop.eup %4788 }
 0x9f5   :  { %v1784_v58 = vmul.f32 %v4789_v35, %v1783_v3  ;;  %v4936_v3 = vld [vmem:[#allocation11 + $0x98] ss:$12 sps:$4 sm:$0xff]  }
 0x9f6   :  { %v4937_v35 = vld [vmem:[#allocation11 + $0xac] ss:$12 sps:$4 sm:$0xff]  }
 0x9f7   :  { %v5876_v60 = vadd.f32 %v1785_v59, %v1784_v58  ;;  %v4938_v58 = vld [vmem:[#allocation11 + $0xa8] ss:$12 sps:$4 sm:$0xff]   ;;  %v4939_v59 = vld [vmem:[#allocation11 + $0xb0] ss:$12 sps:$4 sm:$0xff]  }
 0x9f9   :  { %v5879_v16 = vmul.f32 %v1794_v54, %v5876_v60  ;;  %v4646_v54 = vld [vmem:[#allocation9 + $0xc4] ss:$12 sps:$4 sm:$0xff]  }
 0x9fb   :  { %v1801_v46 = vpack.c.bf16 %v5879_v16, %v5879_v16 }
 0x9fd   :  { %1835 = vmatmul.mubr.bf16.vlgmr.msra.gmra.mrb[44].mxu0 %v1801_v46  ;;  %4319 = vmatmul.mubr.bf16.vlgmr.msra.gmra.mrb[36].mxu1 %v1801_v46 }
 0x9fe   :  { %1921 = vmatpush1.bf16.msra.mxu0 %v5485_v1  ;;  %4323 = vmatpush3.bf16.msra.mxu1 %v5494_v12 }
 0x9ff   :  { %1922 = vmatprep.subr.bf16.mxu0 %v5487_v4  ;;  %4324 = vmatprep.subr.bf16.mxu1 %v6596_v61 }
 0xa00   :  { %1952 = vmatprep.mubr.bf16.mxu0 %v6597_v45  ;;  %4338 = vmatprep.mubr.msk.bf16.mxu1 %vm5143_vm1, %v6596_v61 }
 0xa02   :  { %1923 = vmatpush1.bf16.msra.mxu0 %v5492_v11  ;;  %4325 = vmatpush3.bf16.msra.mxu1 %v5506_v0 }
 0xa03   :  { %1924 = vmatprep.subr.bf16.mxu0 %v5498_v14  ;;  %4326 = vmatprep.subr.bf16.mxu1 %v6596_v61 }
 0xa06   :  { %1925 = vmatpush1.bf16.msra.mxu0 %v5504_v25  ;;  %4327 = vmatpush3.bf16.msra.mxu1 %v5516_v30 }
 0xa07   :  { %1926 = vmatprep.subr.bf16.mxu0 %v5510_v26  ;;  %4328 = vmatprep.subr.bf16.mxu1 %v6596_v61 }
 0xa0a   :  { %1927 = vmatpush1.bf16.msra.mxu0 %v5514_v5  ;;  %4329 = vmatpush3.bf16.msra.mxu1 %v5527_v34 }
 0xa0b   :  { %1928 = vmatprep.subr.bf16.mxu0 %v5520_v32  ;;  %4330 = vmatprep.subr.bf16.mxu1 %v6596_v61 }
 0xa0e   :  { %1929 = vmatpush1.bf16.msra.mxu0 %v5525_v33  ;;  %4331 = vmatpush3.bf16.msra.mxu1 %v5539_v21 }
 0xa0f   :  { %1930 = vmatprep.subr.bf16.mxu0 %v5531_v36  ;;  %4332 = vmatprep.subr.bf16.mxu1 %v6596_v61 }
 0xa12   :  { %1931 = vmatpush1.bf16.msra.mxu0 %v5537_v19  ;;  %4333 = vmatpush3.bf16.msra.mxu1 %v5550_v42 }
 0xa13   :  { %1932 = vmatprep.subr.bf16.mxu0 %v5543_v37  ;;  %4334 = vmatprep.subr.bf16.mxu1 %v6596_v61 }
 0xa16   :  { %1933 = vmatpush1.bf16.msra.mxu0 %v5548_v40  ;;  %4335 = vmatpush3.bf16.msra.mxu1 %v5562_v48 }
 0xa17   :  { %1934 = vmatprep.subr.bf16.mxu0 %v5554_v43  ;;  %4336 = vmatprep.subr.bf16.mxu1 %v6596_v61 }
 0xa1a   :  { %1935 = vmatpush1.bf16.msra.mxu0 %v5560_v47  ;;  %4337 = vmatpush3.bf16.msra.mxu1 %v5571_v50 }
 0xa1b   :  { %2038 = vmatprep.subr.bf16.mxu0 %v5867_v10  ;;  %4342 = vmatprep.subr.bf16.mxu1 %v6596_v61 }
 0xad0   :  { %v1836_v1 = vpop.f32.mrb[44].mxu0  ;;  %v1877_v4 = vpop.f32.mrb[36].mxu1 }
 0xad1   :  { %v1883_v11 = vadd.f32 %v1836_v1, %v5666_v15  ;;  %v1838_v12 = vpop.f32.mrb[45].mxu0  ;;  %v4320_v14 = vpop.f32.mrb[37].mxu1  ;;  %v1897_v37 = vadd.f32 %v5681_v63, %v1877_v4  ;;  %v6598_v4 = vld [vmem:[#allocation24_spill] sm:$0xff] }
 0xad2   :  { %v1890_v25 = vadd.f32 %v1838_v12, %v5668_v18  ;;  %v1840_v0 = vpop.f32.mrb[46].mxu0  ;;  %v1880_v26 = vpop.f32.mrb[38].mxu1 }
 0xad3   :  { %v3854_v5 = vmul.f32 -1.442695, %v1883_v11  ;;  %v1841_v30 = vpop.f32.mrb[47].mxu0  ;;  %v4321_v32 = vpop.f32.mrb[39].mxu1 }
 0xad4   :  { %v3855_v33 = vmul.f32 -1.442695, %v1890_v25  ;;  %v6599_v25 = vld [vmem:[#allocation25_spill] sm:$0xff] }
 0xad5   :  { %4790 = vpow2.f32 %v3854_v5 }
 0xad6   :  { %4792 = vpow2.f32 %v3855_v33 }
 0xadf   :  { %v4791_v34 = vpop.eup %4790 }
 0xae0   :  { %v1887_v36 = vadd.f32 1.0, %v4791_v34  ;;  %v4793_v19 = vpop.eup %4792 }
 0xae1   :  { %v1894_v21 = vadd.f32 1.0, %v4793_v19 }
 0xae2   :  { %4794 = vrcp.f32 %v1887_v36 }
 0xae3   :  { %4796 = vrcp.f32 %v1894_v21 }
 0xaec   :  { %v4795_v40 = vpop.eup %4794 }
 0xaed   :  { %v1898_v42 = vmul.f32 %v4795_v40, %v1897_v37  ;;  %v4797_v47 = vpop.eup %4796 }
 0xaee   :  { %v1901_v48 = vsub.f32 1.0, %v4797_v47  ;;  %v1903_v15 = vmul.f32 %v4797_v47, %v5879_v16  ;;  %v4647_v16 = vld [vmem:[#allocation9 + $0xc8] ss:$12 sps:$4 sm:$0xff]   ;;  %v6600_v47 = vld [vmem:[#allocation22_spill] sm:$0xff] }
 0xaef   :  { %v1899_v43 = vadd.f32 %v1898_v42, %v5660_v56  ;;  %v4918_v56 = vld [vmem:[#allocation11 + $0x8] ss:$12 sps:$4 sm:$0xff]  }
 0xaf1   :  { %4798 = vtanh.f32 %v1899_v43 }
 0xafb   :  { %v4799_v50 = vpop.eup %4798 }
 0xafc   :  { %v1902_v31 = vmul.f32 %v4799_v50, %v1901_v48 }
 0xafe   :  { %v5923_v18 = vadd.f32 %v1903_v15, %v1902_v31 }
 0xb00   :  { %v5926_v10 = vmul.f32 %v1912_v53, %v5923_v18 }
 0xb02   :  { %v1919_v24 = vpack.c.bf16 %v5926_v10, %v5926_v10 }
 0xb04   :  { %1953 = vmatmul.mubr.bf16.vlgmr.msra.gmra.mrb[48].mxu0 %v1919_v24  ;;  %4339 = vmatmul.mubr.bf16.vlgmr.msra.gmra.mrb[40].mxu1 %v1919_v24 }
 0xb05   :  { %2039 = vmatpush1.bf16.msra.mxu0 %v4917_v55  ;;  %4343 = vmatpush3.bf16.msra.mxu1 %v4918_v56  ;;  %v2030_v56 = vpop.permute.xlu1 %2029 }
 0xb06   :  { %2040 = vmatprep.subr.bf16.mxu0 %v4919_v44  ;;  %4344 = vmatprep.subr.bf16.mxu1 %v6596_v61 }
 0xb07   :  { %2070 = vmatprep.mubr.bf16.mxu0 %v6597_v45  ;;  %4358 = vmatprep.mubr.msk.bf16.mxu1 %vm5143_vm1, %v6596_v61 }
 0xb09   :  { %2041 = vmatpush1.bf16.msra.mxu0 %v4920_v2  ;;  %4345 = vmatpush3.bf16.msra.mxu1 %v4921_v39  ;;  %v4644_v2 = vld [vmem:[#allocation9 + $0xc0] ss:$12 sps:$4 sm:$0xff]   ;;  %v4650_v39 = vld [vmem:[#allocation9 + $0xdc] ss:$12 sps:$4 sm:$0xff]  }
 0xb0a   :  { %2042 = vmatprep.subr.bf16.mxu0 %v4922_v6  ;;  %4346 = vmatprep.subr.bf16.mxu1 %v6596_v61  ;;  %v4651_v6 = vld [vmem:[#allocation9 + $0xe0] ss:$12 sps:$4 sm:$0xff]  }
 0xb0d   :  { %2043 = vmatpush1.bf16.msra.mxu0 %v4923_v13  ;;  %4347 = vmatpush3.bf16.msra.mxu1 %v4924_v27  ;;  %v2152_v13 = vpack.c.bf16 %v5733_v62, %v5686_v28  ;;  %v4654_v27 = vld [vmem:[#allocation9 + $0xf4] ss:$12 sps:$4 sm:$0xff]   ;;  %v4662_v62 = vld [vmem:[#allocation9 + $0x124] ss:$12 sps:$4 sm:$0xff]  }
 0xb0e   :  { %2044 = vmatprep.subr.bf16.mxu0 %v4925_v23  ;;  %4348 = vmatprep.subr.bf16.mxu1 %v6596_v61  ;;  %v4655_v23 = vld [vmem:[#allocation9 + $0xf8] ss:$12 sps:$4 sm:$0xff]   ;;  %v4656_v28 = vld [vmem:[#allocation9 + $0x108] ss:$12 sps:$4 sm:$0xff]  }
 0xb11   :  { %2045 = vmatpush1.bf16.msra.mxu0 %v4926_v8  ;;  %4349 = vmatpush3.bf16.msra.mxu1 %v4927_v17  ;;  %v4652_v8 = vld [vmem:[#allocation9 + $0xf0] ss:$12 sps:$4 sm:$0xff]   ;;  %v4658_v17 = vld [vmem:[#allocation9 + $0x10c] ss:$12 sps:$4 sm:$0xff]  }
 0xb12   :  { %2046 = vmatprep.subr.bf16.mxu0 %v4928_v29  ;;  %4350 = vmatprep.subr.bf16.mxu1 %v6596_v61  ;;  %v4659_v29 = vld [vmem:[#allocation9 + $0x110] ss:$12 sps:$4 sm:$0xff]  }
 0xb15   :  { %2047 = vmatpush1.bf16.msra.mxu0 %v4929_v38  ;;  %4351 = vmatpush3.bf16.msra.mxu1 %v4930_v20  ;;  %v4663_v38 = vld [vmem:[#allocation9 + $0x128] ss:$12 sps:$4 sm:$0xff]   ;;  %v4660_v20 = vld [vmem:[#allocation9 + $0x120] ss:$12 sps:$4 sm:$0xff]  }
 0xb16   :  { %2048 = vmatprep.subr.bf16.mxu0 %v4931_v49  ;;  %4352 = vmatprep.subr.bf16.mxu1 %v6596_v61  ;;  %v4666_v49 = vld [vmem:[#allocation9 + $0x13c] ss:$12 sps:$4 sm:$0xff]  }
 0xb19   :  { %2049 = vmatpush1.bf16.msra.mxu0 %v4932_v22  ;;  %4353 = vmatpush3.bf16.msra.mxu1 %v4933_v41  ;;  %v4667_v22 = vld [vmem:[#allocation9 + $0x140] ss:$12 sps:$4 sm:$0xff]   ;;  %v4664_v41 = vld [vmem:[#allocation9 + $0x138] ss:$12 sps:$4 sm:$0xff]  }
 0xb1a   :  { %2050 = vmatprep.subr.bf16.mxu0 %v4934_v9  ;;  %4354 = vmatprep.subr.bf16.mxu1 %v6596_v61  ;;  %v4670_v9 = vld [vmem:[#allocation9 + $0x154] ss:$12 sps:$4 sm:$0xff]  }
 0xb1d   :  { %2051 = vmatpush1.bf16.msra.mxu0 %v4935_v52  ;;  %4355 = vmatpush3.bf16.msra.mxu1 %v4936_v3  ;;  %v4671_v52 = vld [vmem:[#allocation9 + $0x158] ss:$12 sps:$4 sm:$0xff]   ;;  %v4668_v3 = vld [vmem:[#allocation9 + $0x150] ss:$12 sps:$4 sm:$0xff]  }
 0xb1e   :  { %2052 = vmatprep.subr.bf16.mxu0 %v4937_v35  ;;  %4356 = vmatprep.subr.bf16.mxu1 %v6596_v61  ;;  %v4674_v35 = vld [vmem:[#allocation9 + $0x16c] ss:$12 sps:$4 sm:$0xff]  }
 0xb21   :  { %2053 = vmatpush1.bf16.msra.mxu0 %v4938_v58  ;;  %4357 = vmatpush3.bf16.msra.mxu1 %v4939_v59  ;;  %v4675_v58 = vld [vmem:[#allocation9 + $0x170] ss:$12 sps:$4 sm:$0xff]   ;;  %v4672_v59 = vld [vmem:[#allocation9 + $0x168] ss:$12 sps:$4 sm:$0xff]  }
 0xb22   :  { %2335 = vmatprep.subr.bf16.mxu0 %v4646_v54  ;;  %4362 = vmatprep.subr.bf16.mxu1 %v4647_v16  ;;  %v2153_v54 = vpack.c.bf16 %v5827_v7, %v5780_v51  ;;  %v5967_v51 = vld [vmem:[#allocation11 + $0xc8] ss:$12 sps:$4 sm:$0xff]  }
 0xb23   :  { %v5972_v7 = vld [vmem:[#allocation11 + $0xdc] ss:$12 sps:$4 sm:$0xff]  }
 0xbd7   :  { %v1954_v46 = vpop.f32.mrb[48].mxu0  ;;  %v1995_v1 = vpop.f32.mrb[40].mxu1 }
 0xbd8   :  { %v2001_v11 = vadd.f32 %v1954_v46, %v6598_v4  ;;  %v1956_v12 = vpop.f32.mrb[49].mxu0  ;;  %v4340_v14 = vpop.f32.mrb[41].mxu1  ;;  %v2015_v40 = vadd.f32 %v5681_v63, %v1995_v1  ;;  %v5963_v46 = vld [vmem:[#allocation11 + $0xc4] ss:$12 sps:$4 sm:$0xff]   ;;  %v5965_v1 = vld [vmem:[#allocation11 + $0xc0] ss:$12 sps:$4 sm:$0xff]  }
 0xbd9   :  { %v2008_v0 = vadd.f32 %v1956_v12, %v6599_v25  ;;  %v1958_v26 = vpop.f32.mrb[50].mxu0  ;;  %v1998_v5 = vpop.f32.mrb[42].mxu1  ;;  %v5982_v4 = vld [vmem:[#allocation11 + $0xf4] ss:$12 sps:$4 sm:$0xff]   ;;  %v5987_v12 = vld [vmem:[#allocation11 + $0xf8] ss:$12 sps:$4 sm:$0xff]  }
 0xbda   :  { %v3857_v30 = vmul.f32 -1.442695, %v2001_v11  ;;  %v1959_v32 = vpop.f32.mrb[51].mxu0  ;;  %v4341_v33 = vpop.f32.mrb[43].mxu1  ;;  %v5985_v11 = vld [vmem:[#allocation11 + $0xf0] ss:$12 sps:$4 sm:$0xff]  }
 0xbdb   :  { %v3858_v34 = vmul.f32 -1.442695, %v2008_v0  ;;  %v5992_v14 = vld [vmem:[#allocation11 + $0x10c] ss:$12 sps:$4 sm:$0xff]   ;;  %v5995_v25 = vld [vmem:[#allocation11 + $0x108] ss:$12 sps:$4 sm:$0xff]  }
 0xbdc   :  { %4800 = vpow2.f32 %v3857_v30  ;;  %v5997_v0 = vld [vmem:[#allocation11 + $0x110] ss:$12 sps:$4 sm:$0xff]   ;;  %v6005_v5 = vld [vmem:[#allocation11 + $0x120] ss:$12 sps:$4 sm:$0xff]   ;;  %v6007_v30 = vld [vmem:[#allocation11 + $0x128] ss:$12 sps:$4 sm:$0xff]  }
 0xbdd   :  { %4802 = vpow2.f32 %v3858_v34  ;;  %v6002_v26 = vld [vmem:[#allocation11 + $0x124] ss:$12 sps:$4 sm:$0xff]   ;;  %v6012_v32 = vld [vmem:[#allocation11 + $0x13c] ss:$12 sps:$4 sm:$0xff]   ;;  %v6017_v34 = vld [vmem:[#allocation11 + $0x140] ss:$12 sps:$4 sm:$0xff]  }
 0xbde   :  { %v6015_v33 = vld [vmem:[#allocation11 + $0x138] ss:$12 sps:$4 sm:$0xff]  }
 0xbe6   :  { %v4801_v36 = vpop.eup %4800 }
 0xbe7   :  { %v2005_v19 = vadd.f32 1.0, %v4801_v36  ;;  %v4803_v21 = vpop.eup %4802  ;;  %v6022_v36 = vld [vmem:[#allocation11 + $0x154] ss:$12 sps:$4 sm:$0xff]  }
 0xbe8   :  { %v2012_v37 = vadd.f32 1.0, %v4803_v21  ;;  %v6027_v21 = vld [vmem:[#allocation11 + $0x158] ss:$12 sps:$4 sm:$0xff]  }
 0xbe9   :  { %4804 = vrcp.f32 %v2005_v19  ;;  %v6025_v19 = vld [vmem:[#allocation11 + $0x150] ss:$12 sps:$4 sm:$0xff]  }
 0xbea   :  { %4806 = vrcp.f32 %v2012_v37  ;;  %v6032_v37 = vld [vmem:[#allocation11 + $0x16c] ss:$12 sps:$4 sm:$0xff]  }
 0xbf3   :  { %v4805_v42 = vpop.eup %4804 }
 0xbf4   :  { %v2016_v43 = vmul.f32 %v4805_v42, %v2015_v40  ;;  %v4807_v50 = vpop.eup %4806  ;;  %v6034_v40 = vld [vmem:[#allocation11 + $0x168] ss:$12 sps:$4 sm:$0xff]   ;;  %v6036_v42 = vld [vmem:[#allocation11 + $0x170] ss:$12 sps:$4 sm:$0xff]  }
 0xbf5   :  { %v2019_v31 = vsub.f32 1.0, %v4807_v50  ;;  %v2021_v24 = vmul.f32 %v4807_v50, %v5926_v10  ;;  %v4648_v10 = vld [vmem:[#allocation9 + $0xd8] ss:$12 sps:$4 sm:$0xff]  }
 0xbf6   :  { %v2017_v48 = vadd.f32 %v2016_v43, %v6600_v47 }
 0xbf8   :  { %4808 = vtanh.f32 %v2017_v48  ;;  %v6601_v48 = vld [vmem:[#allocation26_spill] sm:$0xff] }
 0xc02   :  { %v4809_v15 = vpop.eup %4808 }
 0xc03   :  { %v2020_v53 = vmul.f32 %v4809_v15, %v2019_v31 }
 0xc05   :  { %v5945_v55 = vadd.f32 %v2021_v24, %v2020_v53 }
 0xc07   :  { %v5948_v44 = vmul.f32 %v2030_v56, %v5945_v55 }
 0xc09   :  { %v2037_v63 = vpack.c.bf16 %v5948_v44, %v5948_v44 }
 0xc0b   :  { %2071 = vmatmul.mubr.bf16.vlgmr.msra.gmra.mrb[52].mxu0 %v2037_v63  ;;  %4359 = vmatmul.mubr.bf16.vlgmr.msra.gmra.mrb[44].mxu1 %v2037_v63 }
 0xc0c   :  { %2336 = vmatpush1.bf16.msra.mxu0 %v4644_v2  ;;  %4363 = vmatpush3.bf16.msra.mxu1 %v4647_v16  ;;  %v2154_v16 = vpack.c.bf16 %v5923_v18, %v5876_v60  ;;  %v5975_v60 = vld [vmem:[#allocation11 + $0xd8] ss:$12 sps:$4 sm:$0xff]   ;;  %v5977_v18 = vld [vmem:[#allocation11 + $0xe0] ss:$12 sps:$4 sm:$0xff]  }
 0xc0d   :  { %4378 = vmatprep.mubr.bf16.mxu1 %v2152_v13  ;;  %2337 = vmatprep.subr.bf16.mxu0 %v4650_v39 }
 0xc0e   :  { %4364 = vmatprep.subr.bf16.mxu1 %v4651_v6  ;;  %2367 = vmatprep.mubr.bf16.mxu0 %v6597_v45 }
 0xc10   :  { %2338 = vmatpush1.bf16.msra.mxu0 %v4648_v10  ;;  %4365 = vmatpush3.bf16.msra.mxu1 %v4651_v6 }
 0xc11   :  { %2339 = vmatprep.subr.bf16.mxu0 %v4654_v27  ;;  %4366 = vmatprep.subr.bf16.mxu1 %v4655_v23 }
 0xc14   :  { %2340 = vmatpush1.bf16.msra.mxu0 %v4652_v8  ;;  %4367 = vmatpush3.bf16.msra.mxu1 %v4655_v23  ;;  %v4940_v8 = vld [vmem:[%s6556_s14] ss:$0 sm:$0xff] }
 0xc15   :  { %2341 = vmatprep.subr.bf16.mxu0 %v4658_v17  ;;  %4368 = vmatprep.subr.bf16.mxu1 %v4659_v29 }
 0xc18   :  { %2342 = vmatpush1.bf16.msra.mxu0 %v4656_v28  ;;  %4369 = vmatpush3.bf16.msra.mxu1 %v4659_v29  ;;  %v6602_v28 = vld [vmem:[#allocation23_spill] sm:$0xff] }
 0xc19   :  { %2343 = vmatprep.subr.bf16.mxu0 %v4662_v62  ;;  %4370 = vmatprep.subr.bf16.mxu1 %v4663_v38 }
 0xc1c   :  { %2344 = vmatpush1.bf16.msra.mxu0 %v4660_v20  ;;  %4371 = vmatpush3.bf16.msra.mxu1 %v4663_v38 }
 0xc1d   :  { %2345 = vmatprep.subr.bf16.mxu0 %v4666_v49  ;;  %4372 = vmatprep.subr.bf16.mxu1 %v4667_v22 }
 0xc20   :  { %2346 = vmatpush1.bf16.msra.mxu0 %v4664_v41  ;;  %4373 = vmatpush3.bf16.msra.mxu1 %v4667_v22 }
 0xc21   :  { %2347 = vmatprep.subr.bf16.mxu0 %v4670_v9  ;;  %4374 = vmatprep.subr.bf16.mxu1 %v4671_v52 }
 0xc24   :  { %2348 = vmatpush1.bf16.msra.mxu0 %v4668_v3  ;;  %4375 = vmatpush3.bf16.msra.mxu1 %v4671_v52 }
 0xc25   :  { %2349 = vmatprep.subr.bf16.mxu0 %v4674_v35  ;;  %4376 = vmatprep.subr.bf16.mxu1 %v4675_v58 }
 0xc28   :  { %2350 = vmatpush1.bf16.msra.mxu0 %v4672_v59  ;;  %4377 = vmatpush3.bf16.msra.mxu1 %v4675_v58 }
 0xc29   :  { %4386 = vmatprep.subr.bf16.mxu1 %v6596_v61  ;;  %2673 = vmatprep.subr.bf16.mxu0 %v5963_v46 }
 0xc2b   :  { %2368 = vmatmul.mubr.bf16.vlgmr.msra.gmra.mrb[56].mxu0 %v2152_v13  ;;  %4379 = vmatmul.mubr.bf16.vlgmr.msra.gmra.mrb[48].mxu1 %v2153_v54 }
 0xc2c   :  { %4382 = vmatprep.mubr.bf16.mxu1 %v2154_v16  ;;  %2377 = vmatprep.mubr.bf16.mxu0 %v6597_v45 }
 0xc2d   :  { %2674 = vmatpush1.bf16.msra.mxu0 %v5965_v1  ;;  %4387 = vmatpush3.bf16.msra.mxu1 %v5967_v51 }
 0xc2e   :  { %4388 = vmatprep.subr.bf16.mxu1 %v6596_v61  ;;  %2675 = vmatprep.subr.bf16.mxu0 %v5972_v7 }
 0xc31   :  { %2676 = vmatpush1.bf16.msra.mxu0 %v5975_v60  ;;  %4389 = vmatpush3.bf16.msra.mxu1 %v5977_v18 }
 0xc32   :  { %4390 = vmatprep.subr.bf16.mxu1 %v6596_v61  ;;  %2677 = vmatprep.subr.bf16.mxu0 %v5982_v4 }
 0xc33   :  { %2378 = vmatmul.mubr.bf16.gmra.mrb[60].mxu0 %v2153_v54 }
 0xc34   :  { %2387 = vmatprep.mubr.bf16.mxu0 %v6597_v45 }
 0xc35   :  { %2678 = vmatpush1.bf16.msra.mxu0 %v5985_v11  ;;  %4391 = vmatpush3.bf16.msra.mxu1 %v5987_v12 }
 0xc36   :  { %4392 = vmatprep.subr.bf16.mxu1 %v6596_v61  ;;  %2679 = vmatprep.subr.bf16.mxu0 %v5992_v14 }
 0xc39   :  { %2680 = vmatpush1.bf16.msra.mxu0 %v5995_v25  ;;  %4393 = vmatpush3.bf16.msra.mxu1 %v5997_v0 }
 0xc3a   :  { %4394 = vmatprep.subr.bf16.mxu1 %v6596_v61  ;;  %2681 = vmatprep.subr.bf16.mxu0 %v6002_v26 }
 0xc3b   :  { %2388 = vmatmul.mubr.bf16.gmra.mrb[64].mxu0 %v2154_v16 }
 0xc3c   :  { %2397 = vmatprep.mubr.bf16.mxu0 %v6597_v45 }
 0xc3d   :  { %2682 = vmatpush1.bf16.msra.mxu0 %v6005_v5  ;;  %4395 = vmatpush3.bf16.msra.mxu1 %v6007_v30 }
 0xc3e   :  { %4396 = vmatprep.subr.bf16.mxu1 %v6596_v61  ;;  %2683 = vmatprep.subr.bf16.mxu0 %v6012_v32 }
 0xc41   :  { %2684 = vmatpush1.bf16.msra.mxu0 %v6015_v33  ;;  %4397 = vmatpush3.bf16.msra.mxu1 %v6017_v34 }
 0xc42   :  { %4398 = vmatprep.subr.bf16.mxu1 %v6596_v61  ;;  %2685 = vmatprep.subr.bf16.mxu0 %v6022_v36 }
 0xc45   :  { %2686 = vmatpush1.bf16.msra.mxu0 %v6025_v19  ;;  %4399 = vmatpush3.bf16.msra.mxu1 %v6027_v21 }
 0xc46   :  { %4400 = vmatprep.subr.bf16.mxu1 %v6596_v61  ;;  %2687 = vmatprep.subr.bf16.mxu0 %v6032_v37 }
 0xc49   :  { %2688 = vmatpush1.bf16.msra.mxu0 %v6034_v40  ;;  %4401 = vmatpush3.bf16.msra.mxu1 %v6036_v42 }
 0xc4a   :  { %2794 = vmatprep.subr.bf16.mxu0 %v5963_v46  ;;  %4406 = vmatprep.subr.bf16.mxu1 %v6596_v61 }
 0xcde   :  { %v2072_v43 = vpop.f32.mrb[52].mxu0  ;;  %v2113_v47 = vpop.f32.mrb[44].mxu1 }
 0xcdf   :  { %v2119_v50 = vadd.f32 %v2072_v43, %v6601_v48  ;;  %v2074_v31 = vpop.f32.mrb[53].mxu0  ;;  %v4360_v15 = vpop.f32.mrb[45].mxu1  ;;  %v2133_v17 = vadd.f32 %v4940_v8, %v2113_v47 }
 0xce0   :  { %v2126_v53 = vadd.f32 %v2074_v31, %v5676_v57  ;;  %v2076_v24 = vpop.f32.mrb[54].mxu0  ;;  %v2116_v56 = vpop.f32.mrb[46].mxu1 }
 0xce1   :  { %v3860_v2 = vmul.f32 -1.442695, %v2119_v50  ;;  %v2077_v63 = vpop.f32.mrb[55].mxu0  ;;  %v4361_v39 = vpop.f32.mrb[47].mxu1  ;;  %v2533_v24 = vld [vmem:[#allocation3 + $0x8] sm:$0xff] }
 0xce2   :  { %v3861_v6 = vmul.f32 -1.442695, %v2126_v53  ;;  %v2538_v63 = vpop.permute.xlu1 %2537 }
 0xce3   :  { %4810 = vpow2.f32 %v3860_v2 }
 0xce4   :  { %4812 = vpow2.f32 %v3861_v6  ;;  %v3862_v6 = vld [vmem:[%s6555_s13 + $0x3] sm:$0x7] }
 0xced   :  { %v4811_v13 = vpop.eup %4810 }
 0xcee   :  { %v2123_v10 = vadd.f32 1.0, %v4811_v13  ;;  %v4813_v27 = vpop.eup %4812 }
 0xcef   :  { %v2130_v23 = vadd.f32 1.0, %v4813_v27 }
 0xcf0   :  { %4814 = vrcp.f32 %v2123_v10 }
 0xcf1   :  { %4816 = vrcp.f32 %v2130_v23 }
 0xcfa   :  { %v4815_v29 = vpop.eup %4814 }
 0xcfb   :  { %v2134_v57 = vmul.f32 %v4815_v29, %v2133_v17  ;;  %v4817_v35 = vpop.eup %4816  ;;  %v6608_v29 = vld [vmem:[#allocation21_spill] sm:$0xff] }
 0xcfc   :  { %v2137_v54 = vsub.f32 1.0, %v4817_v35  ;;  %v2139_v50 = vmul.f32 %v4817_v35, %v5948_v44  ;;  %v6087_v44 = vmul.f32 %v2538_v63, %v2533_v24 }
 0xcfd   :  { %v2135_v62 = vadd.f32 %v2134_v57, %v6602_v28  ;;  %v6609_v57 = vsub.s32 0, %v6608_v29 }
 0xcfe   :  { %v6050_v38 = vpop.f32.mrb[56].mxu0  ;;  %v6052_v20 = vpop.f32.mrb[48].mxu1 }
 0xcff   :  { %4818 = vtanh.f32 %v2135_v62  ;;  %v6054_v49 = vpop.f32.mrb[57].mxu0  ;;  %v6056_v22 = vpop.f32.mrb[49].mxu1  ;;  %v6143_v28 = vrot.slane %v3862_v6, %v6609_v57 }
 0xd00   :  { %v6058_v41 = vpop.f32.mrb[58].mxu0  ;;  %v6060_v9 = vpop.f32.mrb[50].mxu1 }
 0xd01   :  { %v6062_v52 = vpop.f32.mrb[59].mxu0  ;;  %v6064_v3 = vpop.f32.mrb[51].mxu1 }
 0xd06   :  { %v6066_v58 = vpop.f32.mrb[60].mxu0 }
 0xd07   :  { %v6068_v59 = vpop.f32.mrb[61].mxu0 }
 0xd08   :  { %v6070_v16 = vpop.f32.mrb[62].mxu0 }
 0xd09   :  { %v4819_v43 = vpop.eup %4818  ;;  %v6072_v47 = vpop.f32.mrb[63].mxu0 }
 0xd0a   :  { %v2138_v48 = vmul.f32 %v4819_v43, %v2137_v54  ;;  %v6612_v54 = vsub.s32 1, %v6608_v29 }
 0xd0c   :  { %v2140_v31 = vadd.f32 %v2139_v50, %v2138_v48  ;;  %v6151_v43 = vrot.slane %v3862_v6, %v6612_v54  ;;  %v2370_v48 = vadd.f32 %v6050_v38, %v6143_v28 }
 0xd0e   :  { %2143 = vst [vmem:[#allocation13] sm:$0xff] %v2140_v31  ;;  %v6075_v15 = vpop.f32.mrb[64].mxu0  ;;  %v2155_v53 = vpack.c.bf16 %v2140_v31, %v5945_v55  ;;  %v2544_v55 = vpack.c.bf16 %v6087_v44, %v6087_v44  ;;  %v2372_v50 = vadd.f32 %v6054_v49, %v6151_v43  ;;  %v6160_v49 = vld [vmem:[%s6556_s14 + $0x1] ss:$0 sm:$0xff] }
 0xd0f   :  { %v6078_v56 = vpop.f32.mrb[65].mxu0 }
 0xd10   :  { %v6080_v2 = vpop.f32.mrb[66].mxu0  ;;  %2398 = vmatmul.mubr.bf16.gmra.mrb[68].mxu0 %v2155_v53  ;;  %4383 = vmatmul.mubr.bf16.gmra.mrb[52].mxu1 %v2155_v53 }
 0xd11   :  { %v6082_v39 = vpop.f32.mrb[67].mxu0  ;;  %2705 = vmatprep.mubr.bf16.mxu0 %v6597_v45  ;;  %4402 = vmatprep.mubr.msk.bf16.mxu1 %vm5143_vm1, %v6596_v61 }
 0xd18   :  { %2706 = vmatmul.mubr.bf16.vlgmr.msra.gmra.mrb[72].mxu0 %v2544_v55  ;;  %4403 = vmatmul.mubr.bf16.vlgmr.msra.gmra.mrb[56].mxu1 %v2544_v55 }
 0xd19   :  { %2795 = vmatpush1.bf16.msra.mxu0 %v5965_v1  ;;  %4407 = vmatpush3.bf16.msra.mxu1 %v5967_v51 }
 0xd1a   :  { %2796 = vmatprep.subr.bf16.mxu0 %v5972_v7  ;;  %4408 = vmatprep.subr.bf16.mxu1 %v6596_v61 }
 0xd1b   :  { %2826 = vmatprep.mubr.bf16.mxu0 %v6597_v45  ;;  %4422 = vmatprep.mubr.msk.bf16.mxu1 %vm5143_vm1, %v6596_v61 }
 0xd1d   :  { %2797 = vmatpush1.bf16.msra.mxu0 %v5975_v60  ;;  %4409 = vmatpush3.bf16.msra.mxu1 %v5977_v18 }
 0xd1e   :  { %2798 = vmatprep.subr.bf16.mxu0 %v5982_v4  ;;  %4410 = vmatprep.subr.bf16.mxu1 %v6596_v61 }
 0xd21   :  { %2799 = vmatpush1.bf16.msra.mxu0 %v5985_v11  ;;  %4411 = vmatpush3.bf16.msra.mxu1 %v5987_v12 }
 0xd22   :  { %2800 = vmatprep.subr.bf16.mxu0 %v5992_v14  ;;  %4412 = vmatprep.subr.bf16.mxu1 %v6596_v61 }
 0xd25   :  { %2801 = vmatpush1.bf16.msra.mxu0 %v5995_v25  ;;  %4413 = vmatpush3.bf16.msra.mxu1 %v5997_v0 }
 0xd26   :  { %2802 = vmatprep.subr.bf16.mxu0 %v6002_v26  ;;  %4414 = vmatprep.subr.bf16.mxu1 %v6596_v61 }
 0xd29   :  { %2803 = vmatpush1.bf16.msra.mxu0 %v6005_v5  ;;  %4415 = vmatpush3.bf16.msra.mxu1 %v6007_v30 }
 0xd2a   :  { %2804 = vmatprep.subr.bf16.mxu0 %v6012_v32  ;;  %4416 = vmatprep.subr.bf16.mxu1 %v6596_v61 }
 0xd2d   :  { %2805 = vmatpush1.bf16.msra.mxu0 %v6015_v33  ;;  %4417 = vmatpush3.bf16.msra.mxu1 %v6017_v34 }
 0xd2e   :  { %2806 = vmatprep.subr.bf16.mxu0 %v6022_v36  ;;  %4418 = vmatprep.subr.bf16.mxu1 %v6596_v61 }
 0xd31   :  { %2807 = vmatpush1.bf16.msra.mxu0 %v6025_v19  ;;  %4419 = vmatpush3.bf16.msra.mxu1 %v6027_v21 }
 0xd32   :  { %2808 = vmatprep.subr.bf16.mxu0 %v6032_v37  ;;  %4420 = vmatprep.subr.bf16.mxu1 %v6596_v61 }
 0xd35   :  { %2809 = vmatpush1.bf16.msra.mxu0 %v6034_v40  ;;  %4421 = vmatpush3.bf16.msra.mxu1 %v6036_v42 }
 0xd36   :  { %2909 = vmatprep.subr.bf16.mxu0 %v5963_v46  ;;  %4426 = vmatprep.subr.bf16.mxu1 %v6596_v61 }
 0xde3   :  { %v6129_v13 = vpop.f32.mrb[68].mxu0  ;;  %v6131_v10 = vpop.f32.mrb[52].mxu1 }
 0xde4   :  { %6603 = vst [vmem:[#allocation24_spill] sm:$0xff] %v6129_v13  ;;  %6604 = vst [vmem:[#allocation25_spill] sm:$0xff] %v6131_v10  ;;  %v6133_v27 = vpop.f32.mrb[69].mxu0  ;;  %v6135_v23 = vpop.f32.mrb[53].mxu1 }
 0xde5   :  { %6605 = vst [vmem:[#allocation22_spill] sm:$0xff] %v6133_v27  ;;  %v6137_v8 = vpop.f32.mrb[70].mxu0  ;;  %v6139_v17 = vpop.f32.mrb[54].mxu1 }
 0xde6   :  { %6606 = vst [vmem:[#allocation26_spill] sm:$0xff] %v6137_v8  ;;  %6607 = vst [vmem:[#allocation23_spill] sm:$0xff] %v6139_v17  ;;  %v6145_v62 = vpop.f32.mrb[71].mxu0  ;;  %v6147_v35 = vpop.f32.mrb[55].mxu1 }
 0xde7   :  { %6610 = vst [vmem:[#allocation21_spill] sm:$0xff] %v6145_v62  ;;  %6611 = vst [vmem:[#allocation27_spill] sm:$0xff] %v6147_v35 }
 0xdeb   :  { %v2707_v31 = vpop.f32.mrb[72].mxu0  ;;  %v2748_v53 = vpop.f32.mrb[56].mxu1 }
 0xdec   :  { %v2754_v24 = vadd.f32 %v2707_v31, %v2370_v48  ;;  %v2709_v63 = vpop.f32.mrb[73].mxu0  ;;  %v4404_v55 = vpop.f32.mrb[57].mxu1  ;;  %v6613_v48 = vsub.s32 2, %v6608_v29 }
 0xded   :  { %v2761_v57 = vadd.f32 %v2709_v63, %v2372_v50  ;;  %v2711_v17 = vpop.f32.mrb[74].mxu0  ;;  %v2751_v62 = vpop.f32.mrb[58].mxu1 }
 0xdee   :  { %v3912_v8 = vmul.f32 -1.442695, %v2754_v24  ;;  %v2712_v10 = vpop.f32.mrb[75].mxu0  ;;  %v4405_v27 = vpop.f32.mrb[59].mxu1  ;;  %v6164_v50 = vrot.slane %v3862_v6, %v6613_v48 }
 0xdef   :  { %v3913_v54 = vmul.f32 -1.442695, %v2761_v57  ;;  %v2774_v10 = vadd.f32 %v6160_v49, %v2748_v53  ;;  %v2787_v6 = vpop.permute.xlu0 %2786  ;;  %v2376_v53 = vadd.f32 %v6062_v52, %v6151_v43 }
 0xdf0   :  { %4820 = vpow2.f32 %v3912_v8  ;;  %v2443_v8 = vadd.f32 %v6056_v22, %v6164_v50 }
 0xdf1   :  { %4822 = vpow2.f32 %v3913_v54 }
 0xdfa   :  { %v4821_v13 = vpop.eup %4820 }
 0xdfb   :  { %v2758_v35 = vadd.f32 1.0, %v4821_v13  ;;  %v4823_v38 = vpop.eup %4822 }
 0xdfc   :  { %v2765_v17 = vadd.f32 1.0, %v4823_v38 }
 0xdfd   :  { %4824 = vrcp.f32 %v2758_v35 }
 0xdfe   :  { %4826 = vrcp.f32 %v2765_v17 }
 0xe07   :  { %v4825_v27 = vpop.eup %4824 }
 0xe08   :  { %v2775_v62 = vmul.f32 %v4825_v27, %v2774_v10  ;;  %v4827_v35 = vpop.eup %4826 }
 0xe09   :  { %v2778_v31 = vsub.f32 1.0, %v4827_v35  ;;  %v2780_v55 = vmul.f32 %v4827_v35, %v6087_v44  ;;  %v2374_v44 = vadd.f32 %v6058_v41, %v6143_v28 }
 0xe0a   :  { %v2776_v13 = vadd.f32 %v2775_v62, %v2443_v8 }
 0xe0c   :  { %4828 = vtanh.f32 %v2776_v13 }
 0xe16   :  { %v4829_v24 = vpop.eup %4828 }
 0xe17   :  { %v2779_v63 = vmul.f32 %v4829_v24, %v2778_v31 }
 0xe19   :  { %v6170_v29 = vadd.f32 %v2780_v55, %v2779_v63 }
 0xe1b   :  { %v6173_v57 = vmul.f32 %v2787_v6, %v6170_v29  ;;  %3600 = vadd.xlane.f32.xlu1 %v6170_v29 }
 0xe1d   :  { %v2793_v22 = vpack.c.bf16 %v6173_v57, %v6173_v57 }
 0xe1f   :  { %2827 = vmatmul.mubr.bf16.vlgmr.msra.gmra.mrb[76].mxu0 %v2793_v22  ;;  %4423 = vmatmul.mubr.bf16.vlgmr.msra.gmra.mrb[60].mxu1 %v2793_v22 }
 0xe20   :  { %2910 = vmatpush1.bf16.msra.mxu0 %v5965_v1  ;;  %4427 = vmatpush3.bf16.msra.mxu1 %v5967_v51 }
 0xe21   :  { %2911 = vmatprep.subr.bf16.mxu0 %v5972_v7  ;;  %4428 = vmatprep.subr.bf16.mxu1 %v6596_v61 }
 0xe22   :  { %2941 = vmatprep.mubr.bf16.mxu0 %v6597_v45  ;;  %4442 = vmatprep.mubr.msk.bf16.mxu1 %vm5143_vm1, %v6596_v61 }
 0xe24   :  { %2912 = vmatpush1.bf16.msra.mxu0 %v5975_v60  ;;  %4429 = vmatpush3.bf16.msra.mxu1 %v5977_v18 }
 0xe25   :  { %2913 = vmatprep.subr.bf16.mxu0 %v5982_v4  ;;  %4430 = vmatprep.subr.bf16.mxu1 %v6596_v61 }
 0xe28   :  { %2914 = vmatpush1.bf16.msra.mxu0 %v5985_v11  ;;  %4431 = vmatpush3.bf16.msra.mxu1 %v5987_v12 }
 0xe29   :  { %2915 = vmatprep.subr.bf16.mxu0 %v5992_v14  ;;  %4432 = vmatprep.subr.bf16.mxu1 %v6596_v61 }
 0xe2c   :  { %2916 = vmatpush1.bf16.msra.mxu0 %v5995_v25  ;;  %4433 = vmatpush3.bf16.msra.mxu1 %v5997_v0 }
 0xe2d   :  { %2917 = vmatprep.subr.bf16.mxu0 %v6002_v26  ;;  %4434 = vmatprep.subr.bf16.mxu1 %v6596_v61 }
 0xe30   :  { %2918 = vmatpush1.bf16.msra.mxu0 %v6005_v5  ;;  %4435 = vmatpush3.bf16.msra.mxu1 %v6007_v30 }
 0xe31   :  { %2919 = vmatprep.subr.bf16.mxu0 %v6012_v32  ;;  %4436 = vmatprep.subr.bf16.mxu1 %v6596_v61 }
 0xe34   :  { %2920 = vmatpush1.bf16.msra.mxu0 %v6015_v33  ;;  %4437 = vmatpush3.bf16.msra.mxu1 %v6017_v34 }
 0xe35   :  { %2921 = vmatprep.subr.bf16.mxu0 %v6022_v36  ;;  %4438 = vmatprep.subr.bf16.mxu1 %v6596_v61 }
 0xe38   :  { %2922 = vmatpush1.bf16.msra.mxu0 %v6025_v19  ;;  %4439 = vmatpush3.bf16.msra.mxu1 %v6027_v21 }
 0xe39   :  { %2923 = vmatprep.subr.bf16.mxu0 %v6032_v37  ;;  %4440 = vmatprep.subr.bf16.mxu1 %v6596_v61 }
 0xe3c   :  { %2924 = vmatpush1.bf16.msra.mxu0 %v6034_v40  ;;  %4441 = vmatpush3.bf16.msra.mxu1 %v6036_v42 }
 0xe3d   :  { %3024 = vmatprep.subr.bf16.mxu0 %v5963_v46  ;;  %4446 = vmatprep.subr.bf16.mxu1 %v6596_v61 }
 0xef2   :  { %v2828_v54 = vpop.f32.mrb[76].mxu0  ;;  %v2869_v38 = vpop.f32.mrb[60].mxu1 }
 0xef3   :  { %v2875_v48 = vadd.f32 %v2828_v54, %v2374_v44  ;;  %v2830_v17 = vpop.f32.mrb[77].mxu0  ;;  %v4424_v10 = vpop.f32.mrb[61].mxu1  ;;  %v2889_v52 = vadd.f32 %v6160_v49, %v2869_v38  ;;  %v2446_v44 = vadd.f32 %v6064_v3, %v6164_v50  ;;  %v2382_v38 = vadd.f32 %v6068_v59, %v6151_v43 }
 0xef4   :  { %v2882_v27 = vadd.f32 %v2830_v17, %v2376_v53  ;;  %v2832_v8 = vpop.f32.mrb[78].mxu0  ;;  %v2872_v62 = vpop.f32.mrb[62].mxu1 }
 0xef5   :  { %v3916_v13 = vmul.f32 -1.442695, %v2875_v48  ;;  %v2833_v35 = vpop.f32.mrb[79].mxu0  ;;  %v4425_v31 = vpop.f32.mrb[63].mxu1 }
 0xef6   :  { %v3917_v24 = vmul.f32 -1.442695, %v2882_v27 }
 0xef7   :  { %4830 = vpow2.f32 %v3916_v13  ;;  %v2902_v13 = vpop.permute.xlu1 %2901 }
 0xef8   :  { %4832 = vpow2.f32 %v3917_v24 }
 0xf01   :  { %v4831_v63 = vpop.eup %4830 }
 0xf02   :  { %v2879_v55 = vadd.f32 1.0, %v4831_v63  ;;  %v4833_v41 = vpop.eup %4832 }
 0xf03   :  { %v2886_v6 = vadd.f32 1.0, %v4833_v41 }
 0xf04   :  { %4834 = vrcp.f32 %v2879_v55 }
 0xf05   :  { %4836 = vrcp.f32 %v2886_v6 }
 0xf0e   :  { %v4835_v22 = vpop.eup %4834 }
 0xf0f   :  { %v2890_v53 = vmul.f32 %v4835_v22, %v2889_v52  ;;  %v4837_v48 = vpop.eup %4836 }
 0xf10   :  { %v2893_v17 = vsub.f32 1.0, %v4837_v48  ;;  %v2895_v8 = vmul.f32 %v4837_v48, %v6173_v57  ;;  %v2380_v57 = vadd.f32 %v6066_v58, %v6143_v28 }
 0xf11   :  { %v2891_v54 = vadd.f32 %v2890_v53, %v2446_v44 }
 0xf13   :  { %4838 = vtanh.f32 %v2891_v54 }
 0xf1d   :  { %v4839_v10 = vpop.eup %4838 }
 0xf1e   :  { %v2894_v27 = vmul.f32 %v4839_v10, %v2893_v17 }
 0xf20   :  { %v6221_v62 = vadd.f32 %v2895_v8, %v2894_v27 }
 0xf22   :  { %v6224_v35 = vmul.f32 %v2902_v13, %v6221_v62  ;;  %3602 = vadd.xlane.f32.xlu0 %v6221_v62  ;;  %v2451_v13 = vadd.f32 %v6052_v20, %v6164_v50 }
 0xf24   :  { %v2908_v3 = vpack.c.bf16 %v6224_v35, %v6224_v35 }
 0xf26   :  { %2942 = vmatmul.mubr.bf16.vlgmr.msra.gmra.mrb[80].mxu0 %v2908_v3  ;;  %4443 = vmatmul.mubr.bf16.vlgmr.msra.gmra.mrb[64].mxu1 %v2908_v3 }
 0xf27   :  { %3025 = vmatpush1.bf16.msra.mxu0 %v5965_v1  ;;  %4447 = vmatpush3.bf16.msra.mxu1 %v5967_v51 }
 0xf28   :  { %3026 = vmatprep.subr.bf16.mxu0 %v5972_v7  ;;  %4448 = vmatprep.subr.bf16.mxu1 %v6596_v61 }
 0xf29   :  { %3056 = vmatprep.mubr.bf16.mxu0 %v6597_v45  ;;  %4462 = vmatprep.mubr.msk.bf16.mxu1 %vm5143_vm1, %v6596_v61 }
 0xf2b   :  { %3027 = vmatpush1.bf16.msra.mxu0 %v5975_v60  ;;  %4449 = vmatpush3.bf16.msra.mxu1 %v5977_v18 }
 0xf2c   :  { %3028 = vmatprep.subr.bf16.mxu0 %v5982_v4  ;;  %4450 = vmatprep.subr.bf16.mxu1 %v6596_v61 }
 0xf2f   :  { %3029 = vmatpush1.bf16.msra.mxu0 %v5985_v11  ;;  %4451 = vmatpush3.bf16.msra.mxu1 %v5987_v12 }
 0xf30   :  { %3030 = vmatprep.subr.bf16.mxu0 %v5992_v14  ;;  %4452 = vmatprep.subr.bf16.mxu1 %v6596_v61 }
 0xf33   :  { %3031 = vmatpush1.bf16.msra.mxu0 %v5995_v25  ;;  %4453 = vmatpush3.bf16.msra.mxu1 %v5997_v0 }
 0xf34   :  { %3032 = vmatprep.subr.bf16.mxu0 %v6002_v26  ;;  %4454 = vmatprep.subr.bf16.mxu1 %v6596_v61 }
 0xf37   :  { %3033 = vmatpush1.bf16.msra.mxu0 %v6005_v5  ;;  %4455 = vmatpush3.bf16.msra.mxu1 %v6007_v30 }
 0xf38   :  { %3034 = vmatprep.subr.bf16.mxu0 %v6012_v32  ;;  %4456 = vmatprep.subr.bf16.mxu1 %v6596_v61 }
 0xf3b   :  { %3035 = vmatpush1.bf16.msra.mxu0 %v6015_v33  ;;  %4457 = vmatpush3.bf16.msra.mxu1 %v6017_v34 }
 0xf3c   :  { %3036 = vmatprep.subr.bf16.mxu0 %v6022_v36  ;;  %4458 = vmatprep.subr.bf16.mxu1 %v6596_v61 }
 0xf3f   :  { %3037 = vmatpush1.bf16.msra.mxu0 %v6025_v19  ;;  %4459 = vmatpush3.bf16.msra.mxu1 %v6027_v21 }
 0xf40   :  { %3038 = vmatprep.subr.bf16.mxu0 %v6032_v37  ;;  %4460 = vmatprep.subr.bf16.mxu1 %v6596_v61 }
 0xf43   :  { %3039 = vmatpush1.bf16.msra.mxu0 %v6034_v40  ;;  %4461 = vmatpush3.bf16.msra.mxu1 %v6036_v42 }
 0xf44   :  { %3139 = vmatprep.subr.bf16.mxu0 %v5963_v46  ;;  %4466 = vmatprep.subr.bf16.mxu1 %v6596_v61 }
 0xff9   :  { %v2943_v31 = vpop.f32.mrb[80].mxu0  ;;  %v2984_v24 = vpop.f32.mrb[64].mxu1 }
 0xffa   :  { %v2990_v63 = vadd.f32 %v2943_v31, %v2380_v57  ;;  %v2945_v55 = vpop.f32.mrb[81].mxu0  ;;  %v4444_v41 = vpop.f32.mrb[65].mxu1  ;;  %v3004_v59 = vadd.f32 %v6160_v49, %v2984_v24  ;;  %v2386_v24 = vadd.f32 %v6072_v47, %v6151_v43 }
 0xffb   :  { %v2997_v6 = vadd.f32 %v2945_v55, %v2382_v38  ;;  %v2947_v52 = vpop.f32.mrb[82].mxu0  ;;  %v2987_v22 = vpop.f32.mrb[66].mxu1 }
 0xffc   :  { %v3919_v44 = vmul.f32 -1.442695, %v2990_v63  ;;  %v2948_v53 = vpop.f32.mrb[83].mxu0  ;;  %v4445_v54 = vpop.f32.mrb[67].mxu1 }
 0xffd   :  { %v3920_v48 = vmul.f32 -1.442695, %v2997_v6  ;;  %v3017_v52 = vpop.permute.xlu0 %3016 }
 0xffe   :  { %4840 = vpow2.f32 %v3919_v44 }
 0xfff   :  { %4842 = vpow2.f32 %v3920_v48 }
0x1008   :  { %v4841_v17 = vpop.eup %4840 }
0x1009   :  { %v2994_v10 = vadd.f32 1.0, %v4841_v17  ;;  %v4843_v58 = vpop.eup %4842 }
0x100a   :  { %v3001_v27 = vadd.f32 1.0, %v4843_v58 }
0x100b   :  { %4844 = vrcp.f32 %v2994_v10 }
0x100c   :  { %4846 = vrcp.f32 %v3001_v27 }
0x1015   :  { %v4845_v8 = vpop.eup %4844 }
0x1016   :  { %v3005_v3 = vmul.f32 %v4845_v8, %v3004_v59  ;;  %v4847_v38 = vpop.eup %4846 }
0x1017   :  { %v3008_v31 = vsub.f32 1.0, %v4847_v38  ;;  %v3010_v41 = vmul.f32 %v4847_v38, %v6224_v35  ;;  %v2384_v35 = vadd.f32 %v6070_v16, %v6143_v28 }
0x1018   :  { %v3006_v57 = vadd.f32 %v3005_v3, %v2451_v13 }
0x101a   :  { %4848 = vtanh.f32 %v3006_v57 }
0x1024   :  { %v4849_v63 = vpop.eup %4848 }
0x1025   :  { %v3009_v55 = vmul.f32 %v4849_v63, %v3008_v31 }
0x1027   :  { %v6272_v6 = vadd.f32 %v3010_v41, %v3009_v55  ;;  %v2454_v55 = vadd.f32 %v6060_v9, %v6164_v50 }
0x1029   :  { %v6275_v22 = vmul.f32 %v3017_v52, %v6272_v6  ;;  %3604 = vadd.xlane.f32.xlu0 %v6272_v6 }
0x102b   :  { %v3023_v20 = vpack.c.bf16 %v6275_v22, %v6275_v22 }
0x102d   :  { %3057 = vmatmul.mubr.bf16.vlgmr.msra.gmra.mrb[84].mxu0 %v3023_v20  ;;  %4463 = vmatmul.mubr.bf16.vlgmr.msra.gmra.mrb[68].mxu1 %v3023_v20 }
0x102e   :  { %3140 = vmatpush1.bf16.msra.mxu0 %v5965_v1  ;;  %4467 = vmatpush3.bf16.msra.mxu1 %v5967_v51 }
0x102f   :  { %3141 = vmatprep.subr.bf16.mxu0 %v5972_v7  ;;  %4468 = vmatprep.subr.bf16.mxu1 %v6596_v61 }
0x1030   :  { %3171 = vmatprep.mubr.bf16.mxu0 %v6597_v45  ;;  %4482 = vmatprep.mubr.msk.bf16.mxu1 %vm5143_vm1, %v6596_v61 }
0x1032   :  { %3142 = vmatpush1.bf16.msra.mxu0 %v5975_v60  ;;  %4469 = vmatpush3.bf16.msra.mxu1 %v5977_v18 }
0x1033   :  { %3143 = vmatprep.subr.bf16.mxu0 %v5982_v4  ;;  %4470 = vmatprep.subr.bf16.mxu1 %v6596_v61 }
0x1036   :  { %3144 = vmatpush1.bf16.msra.mxu0 %v5985_v11  ;;  %4471 = vmatpush3.bf16.msra.mxu1 %v5987_v12 }
0x1037   :  { %3145 = vmatprep.subr.bf16.mxu0 %v5992_v14  ;;  %4472 = vmatprep.subr.bf16.mxu1 %v6596_v61 }
0x103a   :  { %3146 = vmatpush1.bf16.msra.mxu0 %v5995_v25  ;;  %4473 = vmatpush3.bf16.msra.mxu1 %v5997_v0 }
0x103b   :  { %3147 = vmatprep.subr.bf16.mxu0 %v6002_v26  ;;  %4474 = vmatprep.subr.bf16.mxu1 %v6596_v61 }
0x103e   :  { %3148 = vmatpush1.bf16.msra.mxu0 %v6005_v5  ;;  %4475 = vmatpush3.bf16.msra.mxu1 %v6007_v30 }
0x103f   :  { %3149 = vmatprep.subr.bf16.mxu0 %v6012_v32  ;;  %4476 = vmatprep.subr.bf16.mxu1 %v6596_v61 }
0x1042   :  { %3150 = vmatpush1.bf16.msra.mxu0 %v6015_v33  ;;  %4477 = vmatpush3.bf16.msra.mxu1 %v6017_v34 }
0x1043   :  { %3151 = vmatprep.subr.bf16.mxu0 %v6022_v36  ;;  %4478 = vmatprep.subr.bf16.mxu1 %v6596_v61 }
0x1046   :  { %3152 = vmatpush1.bf16.msra.mxu0 %v6025_v19  ;;  %4479 = vmatpush3.bf16.msra.mxu1 %v6027_v21 }
0x1047   :  { %3153 = vmatprep.subr.bf16.mxu0 %v6032_v37  ;;  %4480 = vmatprep.subr.bf16.mxu1 %v6596_v61 }
0x104a   :  { %3154 = vmatpush1.bf16.msra.mxu0 %v6034_v40  ;;  %4481 = vmatpush3.bf16.msra.mxu1 %v6036_v42 }
0x104b   :  { %3254 = vmatprep.subr.bf16.mxu0 %v5963_v46  ;;  %4486 = vmatprep.subr.bf16.mxu1 %v6596_v61 }
0x1100   :  { %v3058_v44 = vpop.f32.mrb[84].mxu0  ;;  %v3099_v53 = vpop.f32.mrb[68].mxu1 }
0x1101   :  { %v3105_v54 = vadd.f32 %v3058_v44, %v2384_v35  ;;  %v3060_v48 = vpop.f32.mrb[85].mxu0  ;;  %v4464_v17 = vpop.f32.mrb[69].mxu1  ;;  %v3119_v47 = vadd.f32 %v6160_v49, %v3099_v53  ;;  %v2392_v53 = vadd.f32 %v6078_v56, %v6151_v43 }
0x1102   :  { %v3112_v10 = vadd.f32 %v3060_v48, %v2386_v24  ;;  %v3062_v58 = vpop.f32.mrb[86].mxu0  ;;  %v3102_v27 = vpop.f32.mrb[70].mxu1 }
0x1103   :  { %v3922_v59 = vmul.f32 -1.442695, %v3105_v54  ;;  %v3063_v8 = vpop.f32.mrb[87].mxu0  ;;  %v4465_v13 = vpop.f32.mrb[71].mxu1 }
0x1104   :  { %v3923_v3 = vmul.f32 -1.442695, %v3112_v10  ;;  %v3132_v17 = vpop.permute.xlu1 %3131 }
0x1105   :  { %4850 = vpow2.f32 %v3922_v59 }
0x1106   :  { %4852 = vpow2.f32 %v3923_v3 }
0x110f   :  { %v4851_v57 = vpop.eup %4850 }
0x1110   :  { %v3109_v38 = vadd.f32 1.0, %v4851_v57  ;;  %v4853_v16 = vpop.eup %4852 }
0x1111   :  { %v3116_v31 = vadd.f32 1.0, %v4853_v16 }
0x1112   :  { %4854 = vrcp.f32 %v3109_v38 }
0x1113   :  { %4856 = vrcp.f32 %v3116_v31 }
0x111c   :  { %v4855_v63 = vpop.eup %4854 }
0x111d   :  { %v3120_v41 = vmul.f32 %v4855_v63, %v3119_v47  ;;  %v4857_v20 = vpop.eup %4856 }
0x111e   :  { %v3123_v35 = vsub.f32 1.0, %v4857_v20  ;;  %v3125_v54 = vmul.f32 %v4857_v20, %v6275_v22  ;;  %v2390_v22 = vadd.f32 %v6075_v15, %v6143_v28  ;;  %v2459_v20 = vadd.f32 %v6135_v23, %v6164_v50 }
0x111f   :  { %v3121_v52 = vadd.f32 %v3120_v41, %v2454_v55 }
0x1121   :  { %4858 = vtanh.f32 %v3121_v52 }
0x112b   :  { %v4859_v24 = vpop.eup %4858 }
0x112c   :  { %v3124_v44 = vmul.f32 %v4859_v24, %v3123_v35 }
0x112e   :  { %v6323_v48 = vadd.f32 %v3125_v54, %v3124_v44 }
0x1130   :  { %v6326_v10 = vmul.f32 %v3132_v17, %v6323_v48  ;;  %3606 = vadd.xlane.f32.xlu1 %v6323_v48 }
0x1132   :  { %v3138_v9 = vpack.c.bf16 %v6326_v10, %v6326_v10 }
0x1134   :  { %3172 = vmatmul.mubr.bf16.vlgmr.msra.gmra.mrb[88].mxu0 %v3138_v9  ;;  %4483 = vmatmul.mubr.bf16.vlgmr.msra.gmra.mrb[72].mxu1 %v3138_v9 }
0x1135   :  { %3255 = vmatpush1.bf16.msra.mxu0 %v5965_v1  ;;  %4487 = vmatpush3.bf16.msra.mxu1 %v5967_v51 }
0x1136   :  { %3256 = vmatprep.subr.bf16.mxu0 %v5972_v7  ;;  %4488 = vmatprep.subr.bf16.mxu1 %v6596_v61 }
0x1137   :  { %3286 = vmatprep.mubr.bf16.mxu0 %v6597_v45  ;;  %4502 = vmatprep.mubr.msk.bf16.mxu1 %vm5143_vm1, %v6596_v61 }
0x1139   :  { %3257 = vmatpush1.bf16.msra.mxu0 %v5975_v60  ;;  %4489 = vmatpush3.bf16.msra.mxu1 %v5977_v18 }
0x113a   :  { %3258 = vmatprep.subr.bf16.mxu0 %v5982_v4  ;;  %4490 = vmatprep.subr.bf16.mxu1 %v6596_v61 }
0x113d   :  { %3259 = vmatpush1.bf16.msra.mxu0 %v5985_v11  ;;  %4491 = vmatpush3.bf16.msra.mxu1 %v5987_v12 }
0x113e   :  { %3260 = vmatprep.subr.bf16.mxu0 %v5992_v14  ;;  %4492 = vmatprep.subr.bf16.mxu1 %v6596_v61 }
0x1141   :  { %3261 = vmatpush1.bf16.msra.mxu0 %v5995_v25  ;;  %4493 = vmatpush3.bf16.msra.mxu1 %v5997_v0 }
0x1142   :  { %3262 = vmatprep.subr.bf16.mxu0 %v6002_v26  ;;  %4494 = vmatprep.subr.bf16.mxu1 %v6596_v61 }
0x1145   :  { %3263 = vmatpush1.bf16.msra.mxu0 %v6005_v5  ;;  %4495 = vmatpush3.bf16.msra.mxu1 %v6007_v30 }
0x1146   :  { %3264 = vmatprep.subr.bf16.mxu0 %v6012_v32  ;;  %4496 = vmatprep.subr.bf16.mxu1 %v6596_v61 }
0x1149   :  { %3265 = vmatpush1.bf16.msra.mxu0 %v6015_v33  ;;  %4497 = vmatpush3.bf16.msra.mxu1 %v6017_v34 }
0x114a   :  { %3266 = vmatprep.subr.bf16.mxu0 %v6022_v36  ;;  %4498 = vmatprep.subr.bf16.mxu1 %v6596_v61 }
0x114d   :  { %3267 = vmatpush1.bf16.msra.mxu0 %v6025_v19  ;;  %4499 = vmatpush3.bf16.msra.mxu1 %v6027_v21 }
0x114e   :  { %3268 = vmatprep.subr.bf16.mxu0 %v6032_v37  ;;  %4500 = vmatprep.subr.bf16.mxu1 %v6596_v61 }
0x1151   :  { %3269 = vmatpush1.bf16.msra.mxu0 %v6034_v40  ;;  %4501 = vmatpush3.bf16.msra.mxu1 %v6036_v42 }
0x1152   :  { %3369 = vmatprep.subr.bf16.mxu0 %v5963_v46  ;;  %4506 = vmatprep.subr.bf16.mxu1 %v6596_v61 }
0x1207   :  { %v3173_v58 = vpop.f32.mrb[88].mxu0  ;;  %v3214_v27 = vpop.f32.mrb[72].mxu1 }
0x1208   :  { %v3220_v59 = vadd.f32 %v3173_v58, %v2390_v22  ;;  %v3175_v8 = vpop.f32.mrb[89].mxu0  ;;  %v4484_v13 = vpop.f32.mrb[73].mxu1  ;;  %v3234_v56 = vadd.f32 %v6160_v49, %v3214_v27 }
0x1209   :  { %v3227_v3 = vadd.f32 %v3175_v8, %v2392_v53  ;;  %v3177_v57 = vpop.f32.mrb[90].mxu0  ;;  %v3217_v38 = vpop.f32.mrb[74].mxu1 }
0x120a   :  { %v3925_v16 = vmul.f32 -1.442695, %v3220_v59  ;;  %v3178_v31 = vpop.f32.mrb[91].mxu0  ;;  %v4485_v47 = vpop.f32.mrb[75].mxu1 }
0x120b   :  { %v3926_v46 = vmul.f32 -1.442695, %v3227_v3  ;;  %v3247_v58 = vpop.permute.xlu0 %3246  ;;  %v3362_v38 = vpop.permute.xlu1 %3361  ;;  %v4942_v47 = vld [vmem:[#allocation11 + $0xc0] ss:$12 sps:$4 sm:$0xff]  }
0x120c   :  { %4860 = vpow2.f32 %v3925_v16 }
0x120d   :  { %4862 = vpow2.f32 %v3926_v46  ;;  %v4943_v46 = vld [vmem:[#allocation11 + $0xc8] ss:$12 sps:$4 sm:$0xff]  }
0x1216   :  { %v4861_v63 = vpop.eup %4860 }
0x1217   :  { %v3224_v55 = vadd.f32 1.0, %v4861_v63  ;;  %v4863_v15 = vpop.eup %4862  ;;  %v4944_v63 = vld [vmem:[#allocation11 + $0xdc] ss:$12 sps:$4 sm:$0xff]  }
0x1218   :  { %v3231_v41 = vadd.f32 1.0, %v4863_v15  ;;  %v4946_v15 = vld [vmem:[#allocation11 + $0xe0] ss:$12 sps:$4 sm:$0xff]  }
0x1219   :  { %4864 = vrcp.f32 %v3224_v55  ;;  %v4945_v55 = vld [vmem:[#allocation11 + $0xd8] ss:$12 sps:$4 sm:$0xff]  }
0x121a   :  { %4866 = vrcp.f32 %v3231_v41  ;;  %v4947_v41 = vld [vmem:[#allocation11 + $0xf4] ss:$12 sps:$4 sm:$0xff]  }
0x1223   :  { %v4865_v52 = vpop.eup %4864 }
0x1224   :  { %v3235_v35 = vmul.f32 %v4865_v52, %v3234_v56  ;;  %v4867_v44 = vpop.eup %4866  ;;  %v4948_v56 = vld [vmem:[#allocation11 + $0xf0] ss:$12 sps:$4 sm:$0xff]   ;;  %v4949_v52 = vld [vmem:[#allocation11 + $0xf8] ss:$12 sps:$4 sm:$0xff]  }
0x1225   :  { %v3238_v54 = vsub.f32 1.0, %v4867_v44  ;;  %v3240_v22 = vmul.f32 %v4867_v44, %v6326_v10  ;;  %v4954_v44 = vld [vmem:[#allocation11 + $0x120] ss:$12 sps:$4 sm:$0xff]  }
0x1226   :  { %v3236_v24 = vadd.f32 %v3235_v35, %v2459_v20  ;;  %v4950_v20 = vld [vmem:[#allocation11 + $0x10c] ss:$12 sps:$4 sm:$0xff]   ;;  %v4952_v35 = vld [vmem:[#allocation11 + $0x110] ss:$12 sps:$4 sm:$0xff]  }
0x1228   :  { %4868 = vtanh.f32 %v3236_v24  ;;  %v4953_v24 = vld [vmem:[#allocation11 + $0x124] ss:$12 sps:$4 sm:$0xff]  }
0x1232   :  { %v4869_v17 = vpop.eup %4868 }
0x1233   :  { %v3239_v9 = vmul.f32 %v4869_v17, %v3238_v54  ;;  %v4955_v54 = vld [vmem:[#allocation11 + $0x128] ss:$12 sps:$4 sm:$0xff]  }
0x1234   :  { %v4956_v17 = vld [vmem:[#allocation11 + $0x13c] ss:$12 sps:$4 sm:$0xff]  }
0x1235   :  { %v6374_v53 = vadd.f32 %v3240_v22, %v3239_v9  ;;  %v4957_v9 = vld [vmem:[#allocation11 + $0x138] ss:$12 sps:$4 sm:$0xff]   ;;  %v4958_v22 = vld [vmem:[#allocation11 + $0x140] ss:$12 sps:$4 sm:$0xff]  }
0x1237   :  { %v6377_v59 = vmul.f32 %v3247_v58, %v6374_v53  ;;  %3608 = vadd.xlane.f32.xlu0 %v6374_v53  ;;  %v4959_v58 = vld [vmem:[#allocation11 + $0x154] ss:$12 sps:$4 sm:$0xff]  }
0x1239   :  { %v3253_v23 = vpack.c.bf16 %v6377_v59, %v6377_v59 }
0x123b   :  { %3287 = vmatmul.mubr.bf16.vlgmr.msra.gmra.mrb[92].mxu0 %v3253_v23  ;;  %4503 = vmatmul.mubr.bf16.vlgmr.msra.gmra.mrb[76].mxu1 %v3253_v23  ;;  %v4961_v23 = vld [vmem:[#allocation11 + $0x158] ss:$12 sps:$4 sm:$0xff]  }
0x123c   :  { %3370 = vmatpush1.bf16.msra.mxu0 %v5965_v1  ;;  %4507 = vmatpush3.bf16.msra.mxu1 %v5967_v51  ;;  %v4941_v1 = vld [vmem:[#allocation11 + $0xc4] ss:$12 sps:$4 sm:$0xff]   ;;  %v2394_v51 = vadd.f32 %v6080_v2, %v6143_v28 }
0x123d   :  { %3371 = vmatprep.subr.bf16.mxu0 %v5972_v7  ;;  %4508 = vmatprep.subr.bf16.mxu1 %v6596_v61  ;;  %v2396_v7 = vadd.f32 %v6082_v39, %v6151_v43 }
0x123e   :  { %3401 = vmatprep.mubr.bf16.mxu0 %v6597_v45  ;;  %4522 = vmatprep.mubr.msk.bf16.mxu1 %vm5143_vm1, %v6596_v61 }
0x1240   :  { %3372 = vmatpush1.bf16.msra.mxu0 %v5975_v60  ;;  %4509 = vmatpush3.bf16.msra.mxu1 %v5977_v18 }
0x1241   :  { %3373 = vmatprep.subr.bf16.mxu0 %v5982_v4  ;;  %4510 = vmatprep.subr.bf16.mxu1 %v6596_v61 }
0x1244   :  { %3374 = vmatpush1.bf16.msra.mxu0 %v5985_v11  ;;  %4511 = vmatpush3.bf16.msra.mxu1 %v5987_v12 }
0x1245   :  { %3375 = vmatprep.subr.bf16.mxu0 %v5992_v14  ;;  %4512 = vmatprep.subr.bf16.mxu1 %v6596_v61 }
0x1248   :  { %3376 = vmatpush1.bf16.msra.mxu0 %v5995_v25  ;;  %4513 = vmatpush3.bf16.msra.mxu1 %v5997_v0 }
0x1249   :  { %3377 = vmatprep.subr.bf16.mxu0 %v6002_v26  ;;  %4514 = vmatprep.subr.bf16.mxu1 %v6596_v61 }
0x124c   :  { %3378 = vmatpush1.bf16.msra.mxu0 %v6005_v5  ;;  %4515 = vmatpush3.bf16.msra.mxu1 %v6007_v30 }
0x124d   :  { %3379 = vmatprep.subr.bf16.mxu0 %v6012_v32  ;;  %4516 = vmatprep.subr.bf16.mxu1 %v6596_v61 }
0x1250   :  { %3380 = vmatpush1.bf16.msra.mxu0 %v6015_v33  ;;  %4517 = vmatpush3.bf16.msra.mxu1 %v6017_v34 }
0x1251   :  { %3381 = vmatprep.subr.bf16.mxu0 %v6022_v36  ;;  %4518 = vmatprep.subr.bf16.mxu1 %v6596_v61 }
0x1254   :  { %3382 = vmatpush1.bf16.msra.mxu0 %v6025_v19  ;;  %4519 = vmatpush3.bf16.msra.mxu1 %v6027_v21 }
0x1255   :  { %3383 = vmatprep.subr.bf16.mxu0 %v6032_v37  ;;  %4520 = vmatprep.subr.bf16.mxu1 %v6596_v61 }
0x1258   :  { %3384 = vmatpush1.bf16.msra.mxu0 %v6034_v40  ;;  %4521 = vmatpush3.bf16.msra.mxu1 %v6036_v42  ;;  %v6614_v40 = vld [vmem:[#allocation27_spill] sm:$0xff] }
0x1259   :  { %3484 = vmatprep.subr.bf16.mxu0 %v4941_v1  ;;  %4526 = vmatprep.subr.bf16.mxu1 %v6596_v61  ;;  %v2462_v42 = vadd.f32 %v6614_v40, %v6164_v50  ;;  %v4962_v1 = vld [vmem:[#allocation11 + $0x16c] ss:$12 sps:$4 sm:$0xff]  }
0x130e   :  { %v3288_v60 = vpop.f32.mrb[92].mxu0  ;;  %v3329_v18 = vpop.f32.mrb[76].mxu1 }
0x130f   :  { %v3335_v4 = vadd.f32 %v3288_v60, %v2394_v51  ;;  %v3290_v11 = vpop.f32.mrb[93].mxu0  ;;  %v4504_v12 = vpop.f32.mrb[77].mxu1  ;;  %v3349_v21 = vadd.f32 %v6160_v49, %v3329_v18  ;;  %v4963_v51 = vld [vmem:[#allocation11 + $0x168] ss:$12 sps:$4 sm:$0xff]  }
0x1310   :  { %v3342_v14 = vadd.f32 %v3290_v11, %v2396_v7  ;;  %v3292_v25 = vpop.f32.mrb[94].mxu0  ;;  %v3332_v0 = vpop.f32.mrb[78].mxu1  ;;  %v4964_v7 = vld [vmem:[#allocation11 + $0x170] ss:$12 sps:$4 sm:$0xff]  }
0x1311   :  { %v3928_v26 = vmul.f32 -1.442695, %v3335_v4  ;;  %v3293_v5 = vpop.f32.mrb[95].mxu0  ;;  %v4505_v30 = vpop.f32.mrb[79].mxu1  ;;  %v6615_v60 = vld [vmem:[#allocation24_spill] sm:$0xff]  ;;  %v6616_v4 = vld [vmem:[#allocation22_spill] sm:$0xff] }
0x1312   :  { %v3929_v32 = vmul.f32 -1.442695, %v3342_v14  ;;  %v2400_v18 = vadd.f32 %v6615_v60, %v6143_v28  ;;  %v2402_v11 = vadd.f32 %v6616_v4, %v6151_v43 }
0x1313   :  { %4870 = vpow2.f32 %v3928_v26 }
0x1314   :  { %4872 = vpow2.f32 %v3929_v32 }
0x131d   :  { %v4871_v33 = vpop.eup %4870 }
0x131e   :  { %v3339_v34 = vadd.f32 1.0, %v4871_v33  ;;  %v4873_v36 = vpop.eup %4872 }
0x131f   :  { %v3346_v19 = vadd.f32 1.0, %v4873_v36 }
0x1320   :  { %4874 = vrcp.f32 %v3339_v34 }
0x1321   :  { %4876 = vrcp.f32 %v3346_v19 }
0x132a   :  { %v4875_v37 = vpop.eup %4874 }
0x132b   :  { %v3350_v2 = vmul.f32 %v4875_v37, %v3349_v21  ;;  %v4877_v10 = vpop.eup %4876 }
0x132c   :  { %v3353_v27 = vsub.f32 1.0, %v4877_v10  ;;  %v3355_v3 = vmul.f32 %v4877_v10, %v6377_v59  ;;  %v4960_v59 = vld [vmem:[#allocation11 + $0x150] ss:$12 sps:$4 sm:$0xff]  }
0x132d   :  { %v3351_v39 = vadd.f32 %v3350_v2, %v2462_v42 }
0x132f   :  { %4878 = vtanh.f32 %v3351_v39  ;;  %v6617_v39 = vld [vmem:[#allocation25_spill] sm:$0xff] }
0x1330   :  { %v2467_v10 = vadd.f32 %v6617_v39, %v6164_v50  ;;  %v6619_v39 = vld [vmem:[#allocation26_spill] sm:$0xff] }
0x1339   :  { %v4879_v8 = vpop.eup %4878 }
0x133a   :  { %v3354_v13 = vmul.f32 %v4879_v8, %v3353_v27 }
0x133c   :  { %v6424_v57 = vadd.f32 %v3355_v3, %v3354_v13  ;;  %v3477_v13 = vpop.permute.xlu0 %3476  ;;  %v3601_v3 = vpop.xlane.xlu1 %3600 }
0x133e   :  { %v6427_v16 = vmul.f32 %v3362_v38, %v6424_v57  ;;  %3610 = vadd.xlane.f32.xlu1 %v6424_v57 }
0x1340   :  { %v3368_v31 = vpack.c.bf16 %v6427_v16, %v6427_v16  ;;  %v6449_v38 = vpop.xlane.xlu0 %3602 }
0x1342   :  { %3402 = vmatmul.mubr.bf16.vlgmr.msra.gmra.mrb[96].mxu0 %v3368_v31  ;;  %4523 = vmatmul.mubr.bf16.vlgmr.msra.gmra.mrb[80].mxu1 %v3368_v31 }
0x1343   :  { %3485 = vmatpush1.bf16.msra.mxu0 %v4942_v47  ;;  %4527 = vmatpush3.bf16.msra.mxu1 %v4943_v46  ;;  %v3616_v47 = vmul.f32 0.03125, %v3601_v3 }
0x1344   :  { %3486 = vmatprep.subr.bf16.mxu0 %v4944_v63  ;;  %4528 = vmatprep.subr.bf16.mxu1 %v6596_v61  ;;  %v3605_v46 = vpop.xlane.xlu0 %3604 }
0x1345   :  { %3516 = vmatprep.mubr.bf16.mxu0 %v6597_v45  ;;  %4542 = vmatprep.mubr.msk.bf16.mxu1 %vm5143_vm1, %v6596_v61  ;;  %v4951_v45 = vld [vmem:[#allocation11 + $0x108] ss:$12 sps:$4 sm:$0xff]  }
0x1347   :  { %3487 = vmatpush1.bf16.msra.mxu0 %v4945_v55  ;;  %4529 = vmatpush3.bf16.msra.mxu1 %v4946_v15  ;;  %v3624_v15 = vsub.f32 %v6170_v29, %v3616_v47 }
0x1348   :  { %3488 = vmatprep.subr.bf16.mxu0 %v4947_v41  ;;  %4530 = vmatprep.subr.bf16.mxu1 %v6596_v61  ;;  %v3609_v41 = vpop.xlane.xlu0 %3608 }
0x134b   :  { %3489 = vmatpush1.bf16.msra.mxu0 %v4948_v56  ;;  %4531 = vmatpush3.bf16.msra.mxu1 %v4949_v52 }
0x134c   :  { %3490 = vmatprep.subr.bf16.mxu0 %v4950_v20  ;;  %4532 = vmatprep.subr.bf16.mxu1 %v6596_v61 }
0x134f   :  { %3491 = vmatpush1.bf16.msra.mxu0 %v4951_v45  ;;  %4533 = vmatpush3.bf16.msra.mxu1 %v4952_v35  ;;  %v3620_v35 = vmul.f32 0.03125, %v3609_v41 }
0x1350   :  { %3492 = vmatprep.subr.bf16.mxu0 %v4953_v24  ;;  %4534 = vmatprep.subr.bf16.mxu1 %v6596_v61  ;;  %v6618_v24 = vld [vmem:[#allocation20_spill] sm:$0xff] }
0x1353   :  { %3493 = vmatpush1.bf16.msra.mxu0 %v4954_v44  ;;  %4535 = vmatpush3.bf16.msra.mxu1 %v4955_v54  ;;  %v3632_v44 = vmul.f32 %v6618_v24, %v3624_v15 }
0x1354   :  { %3494 = vmatprep.subr.bf16.mxu0 %v4956_v17  ;;  %4536 = vmatprep.subr.bf16.mxu1 %v6596_v61 }
0x1355   :  { %v3640_v29 = vmul.f32 %v3632_v44, %v3632_v44 }
0x1357   :  { %3495 = vmatpush1.bf16.msra.mxu0 %v4957_v9  ;;  %4537 = vmatpush3.bf16.msra.mxu1 %v4958_v22  ;;  %v3628_v9 = vsub.f32 %v6374_v53, %v3620_v35 }
0x1358   :  { %3496 = vmatprep.subr.bf16.mxu0 %v4959_v58  ;;  %4538 = vmatprep.subr.bf16.mxu1 %v6596_v61 }
0x135b   :  { %3497 = vmatpush1.bf16.msra.mxu0 %v4960_v59  ;;  %4539 = vmatpush3.bf16.msra.mxu1 %v4961_v23 }
0x135c   :  { %3498 = vmatprep.subr.bf16.mxu0 %v4962_v1  ;;  %4540 = vmatprep.subr.bf16.mxu1 %v6596_v61 }
0x135f   :  { %3499 = vmatpush1.bf16.msra.mxu0 %v4963_v51  ;;  %4541 = vmatpush3.bf16.msra.mxu1 %v4964_v7 }
0x1415   :  { %v3403_v12 = vpop.f32.mrb[96].mxu0  ;;  %v3444_v14 = vpop.f32.mrb[80].mxu1 }
0x1416   :  { %v3450_v25 = vadd.f32 %v3403_v12, %v2400_v18  ;;  %v3405_v0 = vpop.f32.mrb[97].mxu0  ;;  %v4524_v26 = vpop.f32.mrb[81].mxu1  ;;  %v3464_v42 = vadd.f32 %v6160_v49, %v3444_v14  ;;  %v3618_v49 = vmul.f32 0.03125, %v3605_v46 }
0x1417   :  { %v3457_v5 = vadd.f32 %v3405_v0, %v2402_v11  ;;  %v3407_v30 = vpop.f32.mrb[98].mxu0  ;;  %v3447_v32 = vpop.f32.mrb[82].mxu1 }
0x1418   :  { %v3931_v33 = vmul.f32 -1.442695, %v3450_v25  ;;  %v3408_v61 = vpop.f32.mrb[99].mxu0  ;;  %v4525_v34 = vpop.f32.mrb[83].mxu1  ;;  %v3626_v45 = vsub.f32 %v6272_v6, %v3618_v49  ;;  %v3636_v6 = vmul.f32 %v6618_v24, %v3628_v9  ;;  %v6475_v32 = vld [vmem:[%s6558_s16] ss:$0 sm:$0xff] }
0x1419   :  { %v3932_v36 = vmul.f32 -1.442695, %v3457_v5  ;;  %v6470_v5 = vld [vmem:[%s6557_s15] ss:$0 sm:$0xff]  ;;  %v6621_v9 = vld [vmem:[#allocation23_spill] sm:$0xff] }
0x141a   :  { %4880 = vpow2.f32 %v3931_v33  ;;  %v3634_v22 = vmul.f32 %v6618_v24, %v3626_v45  ;;  %v3644_v58 = vmul.f32 %v3636_v6, %v3636_v6 }
0x141b   :  { %4882 = vpow2.f32 %v3932_v36 }
0x1424   :  { %v4881_v19 = vpop.eup %4880 }
0x1425   :  { %v3454_v21 = vadd.f32 1.0, %v4881_v19  ;;  %v4883_v37 = vpop.eup %4882 }
0x1426   :  { %v3461_v40 = vadd.f32 1.0, %v4883_v37 }
0x1427   :  { %4884 = vrcp.f32 %v3454_v21 }
0x1428   :  { %4886 = vrcp.f32 %v3461_v40 }
0x1431   :  { %v4885_v2 = vpop.eup %4884 }
0x1432   :  { %v3465_v27 = vmul.f32 %v4885_v2, %v3464_v42  ;;  %v4887_v31 = vpop.eup %4886 }
0x1433   :  { %v3468_v63 = vsub.f32 1.0, %v4887_v31  ;;  %v3470_v52 = vmul.f32 %v4887_v31, %v6427_v16  ;;  %v3642_v16 = vmul.f32 %v3634_v22, %v3634_v22 }
0x1434   :  { %v3466_v8 = vadd.f32 %v3465_v27, %v2467_v10  ;;  %v2404_v10 = vadd.f32 %v6619_v39, %v6143_v28  ;;  %v6620_v27 = vld [vmem:[#allocation21_spill] sm:$0xff] }
0x1436   :  { %4888 = vtanh.f32 %v3466_v8  ;;  %v2406_v8 = vadd.f32 %v6620_v27, %v6151_v43  ;;  %v4965_v43 = vld [vmem:[%s6556_s14 + $0x1] ss:$0 sm:$0xff]  ;;  %s5144_s14 = smov [#allocation13]  }
0x1437   :  { %s3749_s29 = sshll.u32 %s5144_s14, 4  ;;  %s3750_s29 = int_to_ptr.vmem [resolvable:$true] %s3749_s29 }
0x1438   :  { %s5076_s19 = scalar_lea.vmem %s3750_s29, 256  ;;  %p5081_p13 = scmp.lt.s32.totalorder %s3750_s29, %s3750_s29 }
0x1439   :  { %p5077_p12 = scmp.ne.s32.totalorder %s3750_s29, %s5076_s19  ;;  %p5082_p0 = scmp.lt.s32.totalorder %s5076_s19, %s5076_s19 }
0x143b   :  { %p5083_p1 = por %p5082_p0, %p5081_p13 }
0x143d   :  { %p5084_p2 = pnand %p5083_p1, %p5077_p12 }
0x1440   :  { %v4889_v55 = vpop.eup %4888 }
0x1441   :  { %v3469_v56 = vmul.f32 %v4889_v55, %v3468_v63 }
0x1443   :  { %v3471_v20 = vadd.f32 %v3470_v52, %v3469_v56 }
0x1445   :  { %v6455_v54 = vmul.f32 %v3477_v13, %v3471_v20  ;;  %3612 = vadd.xlane.f32.xlu0 %v3471_v20 }
0x1447   :  { %v3483_v17 = vpack.c.bf16 %v6455_v54, %v6455_v54 }
0x1449   :  { %3517 = vmatmul.mubr.bf16.vlgmr.msra.gmra.mrb[100].mxu0 %v3483_v17  ;;  %4543 = vmatmul.mubr.bf16.vlgmr.msra.gmra.mrb[84].mxu1 %v3483_v17 }
0x144a   :  { %3648 = vadd.xlane.f32.xlu0 %v3640_v29  ;;  %v2470_v29 = vadd.f32 %v6621_v9, %v6164_v50 }
0x144e   :  { %3652 = vadd.xlane.f32.xlu0 %v3642_v16 }
0x1452   :  { %3656 = vadd.xlane.f32.xlu0 %v3644_v58 }
0x14d2   :  { %v3613_v59 = vpop.xlane.xlu0 %3612 }
0x14d3   :  { %v3622_v23 = vmul.f32 0.03125, %v3613_v59  ;;  %v3607_v59 = vpop.xlane.xlu1 %3606 }
0x14d5   :  { %v3630_v1 = vsub.f32 %v3471_v20, %v3622_v23 }
0x14d7   :  { %v3649_v51 = vpop.xlane.xlu0 %3648  ;;  %v6463_v7 = vmul.f32 %v6618_v24, %v3630_v1  ;;  %v3619_v1 = vmul.f32 0.03125, %v3607_v59 }
0x14d8   :  { %v3664_v53 = vmul.f32 0.03125, %v3649_v51 }
0x14d9   :  { %v3646_v60 = vmul.f32 %v6463_v7, %v6463_v7 }
0x14da   :  { %v3672_v18 = vadd.f32 1e-05, %v3664_v53 }
0x14db   :  { %v3653_v4 = vpop.xlane.xlu0 %3652  ;;  %3660 = vadd.xlane.f32.xlu0 %v3646_v60  ;;  %v3611_v60 = vpop.xlane.xlu1 %3610 }
0x14dc   :  { %4890 = vrsqrt.f32 %v3672_v18  ;;  %v3666_v11 = vmul.f32 0.03125, %v3653_v4  ;;  %v3621_v50 = vmul.f32 0.03125, %v3611_v60 }
0x14de   :  { %v3674_v12 = vadd.f32 1e-05, %v3666_v11  ;;  %v3627_v11 = vsub.f32 %v6323_v48, %v3619_v1 }
0x14df   :  { %v3657_v14 = vpop.xlane.xlu0 %3656 }
0x14e0   :  { %4892 = vrsqrt.f32 %v3674_v12  ;;  %v3668_v25 = vmul.f32 0.03125, %v3657_v14 }
0x14e2   :  { %v3676_v0 = vadd.f32 1e-05, %v3668_v25 }
0x14e4   :  { %4894 = vrsqrt.f32 %v3676_v0 }
0x14e6   :  { %v4891_v26 = vpop.eup %4890 }
0x14e7   :  { %v3688_v30 = vmul.f32 %v4891_v26, %v3632_v44 }
0x14e9   :  { %v3702_v33 = vmul.f32 %v6470_v5, %v3688_v30 }
0x14ea   :  { %v4893_v61 = vpop.eup %4892 }
0x14eb   :  { %v3716_v34 = vadd.f32 %v6475_v32, %v3702_v33  ;;  %v3690_v36 = vmul.f32 %v4893_v61, %v3634_v22 }
0x14ed   :  { %3724 = vst [vmem:[#allocation12] sm:$0xff] %v3716_v34  ;;  %v3704_v19 = vmul.f32 %v6470_v5, %v3690_v36 }
0x14ee   :  { %v4895_v21 = vpop.eup %4894 }
0x14ef   :  { %v3718_v37 = vadd.f32 %v6475_v32, %v3704_v19  ;;  %v3692_v40 = vmul.f32 %v4895_v21, %v3636_v6  ;;  %v3617_v6 = vmul.f32 0.03125, %v6449_v38  ;;  %v3629_v38 = vsub.f32 %v6424_v57, %v3621_v50 }
0x14f1   :  { %3726 = vst [vmem:[#allocation12 + $0x10] sm:$0xff] %v3718_v37  ;;  %v3706_v42 = vmul.f32 %v6470_v5, %v3692_v40  ;;  %v3625_v23 = vsub.f32 %v6221_v62, %v3617_v6  ;;  %v3635_v62 = vmul.f32 %v6618_v24, %v3627_v11  ;;  %v3637_v26 = vmul.f32 %v6618_v24, %v3629_v38 }
0x14f3   :  { %v3720_v2 = vadd.f32 %v6475_v32, %v3706_v42  ;;  %v3633_v14 = vmul.f32 %v6618_v24, %v3625_v23  ;;  %v3643_v0 = vmul.f32 %v3635_v62, %v3635_v62  ;;  %v3645_v30 = vmul.f32 %v3637_v26, %v3637_v26 }
0x14f5   :  { %3728 = vst [vmem:[#allocation12 + $0x20] sm:$0xff] %v3720_v2  ;;  %v3641_v25 = vmul.f32 %v3633_v14, %v3633_v14 }
0x151c   :  { %v3518_v13 = vpop.f32.mrb[100].mxu0  ;;  %v3559_v3 = vpop.f32.mrb[84].mxu1 }
0x151d   :  { %v3565_v31 = vadd.f32 %v3518_v13, %v2404_v10  ;;  %v3520_v47 = vpop.f32.mrb[101].mxu0  ;;  %v4544_v46 = vpop.f32.mrb[85].mxu1  ;;  %v3579_v44 = vadd.f32 %v4965_v43, %v3559_v3 }
0x151e   :  { %v3572_v63 = vadd.f32 %v3520_v47, %v2406_v8  ;;  %v3522_v55 = vpop.f32.mrb[102].mxu0  ;;  %v3562_v15 = vpop.f32.mrb[86].mxu1 }
0x151f   :  { %v3934_v49 = vmul.f32 -1.442695, %v3565_v31  ;;  %v3523_v41 = vpop.f32.mrb[103].mxu0  ;;  %v4545_v56 = vpop.f32.mrb[87].mxu1 }
0x1520   :  { %v3935_v52 = vmul.f32 -1.442695, %v3572_v63 }
0x1521   :  { %4896 = vpow2.f32 %v3934_v49 }
0x1522   :  { %4898 = vpow2.f32 %v3935_v52 }
0x152b   :  { %v4897_v20 = vpop.eup %4896 }
0x152c   :  { %v3569_v45 = vadd.f32 1.0, %v4897_v20  ;;  %v4899_v28 = vpop.eup %4898 }
0x152d   :  { %v3576_v35 = vadd.f32 1.0, %v4899_v28 }
0x152e   :  { %4900 = vrcp.f32 %v3569_v45 }
0x152f   :  { %4902 = vrcp.f32 %v3576_v35 }
0x1538   :  { %v4901_v17 = vpop.eup %4900 }
0x1539   :  { %v3580_v22 = vmul.f32 %v4901_v17, %v3579_v44  ;;  %v4903_v58 = vpop.eup %4902 }
0x153a   :  { %v3583_v51 = vsub.f32 1.0, %v4903_v58  ;;  %v3585_v4 = vmul.f32 %v4903_v58, %v6455_v54 }
0x153b   :  { %v3581_v16 = vadd.f32 %v3580_v22, %v2470_v29 }
0x153d   :  { %4904 = vtanh.f32 %v3581_v16 }
0x1547   :  { %v4905_v53 = vpop.eup %4904 }
0x1548   :  { %v3584_v18 = vmul.f32 %v4905_v53, %v3583_v51 }
0x154a   :  { %v3586_v12 = vadd.f32 %v3585_v4, %v3584_v18 }
0x154c   :  { %3589 = vst [vmem:[#allocation13 + $0x8] sm:$0xff] %v3586_v12  ;;  %3614 = vadd.xlane.f32.xlu1 %v3586_v12 }
0x1550   :  { %3650 = vadd.xlane.f32.xlu1 %v3641_v25 }
0x1554   :  { %3654 = vadd.xlane.f32.xlu1 %v3643_v0 }
0x1558   :  { %3658 = vadd.xlane.f32.xlu1 %v3645_v30 }
0x1568   :  { %v3661_v54 = vpop.xlane.xlu0 %3660 }
0x1569   :  { %v3670_v48 = vmul.f32 0.03125, %v3661_v54 }
0x156b   :  { %v3678_v33 = vadd.f32 1e-05, %v3670_v48 }
0x156d   :  { %4906 = vrsqrt.f32 %v3678_v33 }
0x1577   :  { %v4907_v61 = vpop.eup %4906 }
0x1578   :  { %v3694_v34 = vmul.f32 %v4907_v61, %v6463_v7 }
0x157a   :  { %v3708_v36 = vmul.f32 %v6470_v5, %v3694_v34 }
0x157c   :  { %v3722_v57 = vadd.f32 %v6475_v32, %v3708_v36 }
0x157e   :  { %3730 = vst [vmem:[#allocation12 + $0x30] sm:$0xff] %v3722_v57 }
0x15d9   :  { %v3615_v19 = vpop.xlane.xlu1 %3614 }
0x15da   :  { %v3623_v21 = vmul.f32 0.03125, %v3615_v19 }
0x15dc   :  { %v3631_v37 = vsub.f32 %v3586_v12, %v3623_v21 }
0x15dd   :  { %v3651_v40 = vpop.xlane.xlu1 %3650 }
0x15de   :  { %v3665_v42 = vmul.f32 0.03125, %v3651_v40  ;;  %v3639_v2 = vmul.f32 %v6618_v24, %v3631_v37 }
0x15e0   :  { %v3673_v39 = vadd.f32 1e-05, %v3665_v42  ;;  %v3647_v10 = vmul.f32 %v3639_v2, %v3639_v2 }
0x15e1   :  { %v3655_v27 = vpop.xlane.xlu1 %3654 }
0x15e2   :  { %4908 = vrsqrt.f32 %v3673_v39  ;;  %v3667_v8 = vmul.f32 0.03125, %v3655_v27  ;;  %3662 = vadd.xlane.f32.xlu1 %v3647_v10 }
0x15e4   :  { %v3675_v13 = vadd.f32 1e-05, %v3667_v8 }
0x15e5   :  { %v3659_v7 = vpop.xlane.xlu1 %3658 }
0x15e6   :  { %4910 = vrsqrt.f32 %v3675_v13  ;;  %v3669_v3 = vmul.f32 0.03125, %v3659_v7 }
0x15e8   :  { %v3677_v31 = vadd.f32 1e-05, %v3669_v3 }
0x15ea   :  { %4912 = vrsqrt.f32 %v3677_v31 }
0x15ec   :  { %v4909_v47 = vpop.eup %4908 }
0x15ed   :  { %v3689_v46 = vmul.f32 %v4909_v47, %v3633_v14 }
0x15ef   :  { %v3703_v63 = vmul.f32 %v6470_v5, %v3689_v46 }
0x15f0   :  { %v4911_v55 = vpop.eup %4910 }
0x15f1   :  { %v3717_v15 = vadd.f32 %v6475_v32, %v3703_v63  ;;  %v3691_v24 = vmul.f32 %v4911_v55, %v3635_v62 }
0x15f3   :  { %3725 = vst [vmem:[#allocation12 + $0x8] sm:$0xff] %v3717_v15  ;;  %v3705_v49 = vmul.f32 %v6470_v5, %v3691_v24 }
0x15f4   :  { %v4913_v41 = vpop.eup %4912 }
0x15f5   :  { %v3719_v56 = vadd.f32 %v6475_v32, %v3705_v49  ;;  %v3693_v52 = vmul.f32 %v4913_v41, %v3637_v26 }
0x15f7   :  { %3727 = vst [vmem:[#allocation12 + $0x18] sm:$0xff] %v3719_v56  ;;  %v3707_v20 = vmul.f32 %v6470_v5, %v3693_v52 }
0x15f9   :  { %v3721_v45 = vadd.f32 %v6475_v32, %v3707_v20 }
0x15fb   :  { %3729 = vst [vmem:[#allocation12 + $0x28] sm:$0xff] %v3721_v45 }
0x15fc   :  { %5087 = shalt.err (!%p5084_p2)
}
0x15fd   :  { %s5088_s4 = scalar_lea.hbm %s6560_s18, 256 }
0x15fe   :  { %p5089_p3 = scmp.ne.s32.totalorder %s6560_s18, %s5088_s4  ;;  %p5092_p4 = scmp.lt.u32.totalorder %s5088_s4, %s6560_s18 }
0x1600   :  { %p5094_p5 = pnand %p5092_p4, %p5089_p3 }
0x1602   :  { %5097 = shalt.err (!%p5094_p5)
}
0x1603   :  { %3755 = dma.vmem_to_hbm [thread:$0]  %s3750_s29, 256, %s6560_s18, [#allocation14], %s5137_s11, %s5137_s11, %s5138_s27  }
0x1604   :  { %s5145_s10 = smov [#allocation12]  }
0x1605   :  { %s3737_s8 = sshll.u32 %s5145_s10, 4  ;;  %s3738_s8 = int_to_ptr.vmem [resolvable:$true] %s3737_s8 }
0x1606   :  { %s5098_s30 = scalar_lea.vmem %s3738_s8, 1024  ;;  %p5103_p7 = scmp.lt.s32.totalorder %s3738_s8, %s3738_s8 }
0x1607   :  { %p5099_p6 = scmp.ne.s32.totalorder %s3738_s8, %s5098_s30  ;;  %p5104_p8 = scmp.lt.s32.totalorder %s5098_s30, %s5098_s30 }
0x1609   :  { %p5105_p9 = por %p5104_p8, %p5103_p7 }
0x160b   :  { %p5106_p10 = pnand %p5105_p9, %p5099_p6 }
0x166f   :  { %v3663_v28 = vpop.xlane.xlu1 %3662 }
0x1670   :  { %v3671_v35 = vmul.f32 0.03125, %v3663_v28 }
0x1672   :  { %v3679_v43 = vadd.f32 1e-05, %v3671_v35 }
0x1674   :  { %4914 = vrsqrt.f32 %v3679_v43 }
0x167e   :  { %v4915_v44 = vpop.eup %4914 }
0x167f   :  { %v3695_v17 = vmul.f32 %v4915_v44, %v3639_v2 }
0x1681   :  { %v3709_v9 = vmul.f32 %v6470_v5, %v3695_v17 }
0x1683   :  { %v3723_v29 = vadd.f32 %v6475_v32, %v3709_v9 }
0x1685   :  { %3731 = vst [vmem:[#allocation12 + $0x38] sm:$0xff] %v3723_v29 }
0x1686   :  { %5109 = shalt.err (!%p5106_p10)
}
0x1687   :  { %s5110_s28 = scalar_lea.hbm %s6559_s17, 1024 }
0x1688   :  { %p5111_p11 = scmp.ne.s32.totalorder %s6559_s17, %s5110_s28  ;;  %p5114_p12 = scmp.lt.u32.totalorder %s5110_s28, %s6559_s17 }
0x168a   :  { %p5116_p13 = pnand %p5114_p12, %p5111_p11 }
0x168c   :  { %5119 = shalt.err (!%p5116_p13)
}
0x168d   :  { %3743 = dma.vmem_to_hbm [thread:$0]  %s3738_s8, 1024, %s6559_s17, [#allocation5], %s5137_s11, %s5137_s11, %s5138_s27  }
0x168e   :  { %5126 = dma.done.wait [#allocation5], 1024  }
0x168f   :  { %5127 = vsyncadd [#allocation5], 4294966272 }
0x1690   :  { %5128 = dma.done.wait [#allocation14], 256  }
0x1691   :  { %5129 = vsyncadd [#allocation14], 4294967040 }
0x1692   :  { %3762 = vsyncpa [#allocation4], 1 }
0x1693   :  { %3763 = vsyncpa [#allocation7], 1 }
0x1694   :  { %3764 = vsyncpa [#allocation10], 1 }
0x1695   :  { %3765 = vsyncpa [#allocation5], 1 }
0x1696   :  { %3766 = vsyncpa [#allocation14], 1 }

</bundles_post_ra>
